<compile_context>
chip_gen: v5e
topology: v5e:2x2
jax: 0.10.0
libtpu: 0.0.40
codegen_flags: <defaults>
</compile_context>

<pallas_src>
import functools

import jax
import jax.numpy as jnp
from jax.experimental import pallas as pl
from jax.experimental.pallas import tpu as pltpu

_F = 1280  # encoder output channels expected by fc1


def _encoder_classifier_kernel(x_ref, wenc_ref, benc_ref,
                               w1t_ref, b1_ref, w2_ref, b2_ref, w3_ref, b3_ref,
                               o_ref, acc_ref, *, n_pad):
    """One (batch row, spatial tile) step.

    x_ref:    (1, Cp, TS) f32   spatial-lane-dense input tile for batch row b
    wenc_ref: (F, Cp)    bf16   1x1-conv ("encoder") weight, transposed, C-padded
    benc_ref: (F, 1)     f32    encoder bias (column)
    w1t_ref:  (128, F)   f32    fc1 weight, transposed, pre-scaled by 1/HW
    b1_ref:   (128, 1)   f32
    w2_ref:   (128, 8), b2_ref: (1, 8), w3_ref: (1, 8), b3_ref: (1, 1)
    o_ref:    (1, 1, 128)       lane-dense output block (value broadcast on lanes)
    acc_ref:  (F, 128)   f32    VMEM scratch: lane-partial spatial sums of features
    n_pad:    python int        number of zero-padded spatial positions (trace-time)
    """
    s = pl.program_id(1)
    n_s = pl.num_programs(1)
    _, _, TS = x_ref.shape

    @pl.when(s == 0)
    def _():
        acc_ref[...] = jnp.zeros_like(acc_ref)

    # --- synthetic encoder: 1x1 conv (Cp -> F) on the MXU, bf16 in / f32 acc ---
    xb = x_ref[0].astype(jnp.bfloat16)                          # (Cp, TS)
    feat = jnp.dot(wenc_ref[...], xb,
                   preferred_element_type=jnp.float32)          # (F, TS) f32
    feat = jnp.maximum(feat + benc_ref[...], 0.0)               # bias + ReLU

    # --- AdaptiveAvgPool2d(1): accumulate lane-partial sums (cross-lane reduce
    #     deferred to the final step; 1/HW folded into fc1 weights) ---
    part = acc_ref[...]
    for k in range(TS // 128):        # static slices at vreg boundaries (TS<=512)
        part = part + feat[:, k * 128:(k + 1) * 128]
    acc_ref[...] = part

    # --- classifier head: only on the last spatial tile of this batch row ---
    # (dropout is identity in eval mode)
    @pl.when(s == n_s - 1)
    def _():
        pooled = jnp.sum(acc_ref[...], axis=1, keepdims=True)    # (F, 1) raw sums
        if n_pad:  # exact correction: padded zero-positions contribute relu(b_enc)
            pooled = pooled - float(n_pad) * jnp.maximum(benc_ref[...], 0.0)
        # fc1 (F -> 128) on the MXU; 1/HW already folded into w1t.
        h1 = jnp.dot(w1t_ref[...], pooled,
                     preferred_element_type=jnp.float32)         # (128, 1)
        h1 = jnp.maximum(h1 + b1_ref[...], 0.0)
        # fc2 (128 -> 8) on the VPU + sublane reduce (off the MXU latency path).
        h2 = jnp.sum(w2_ref[...] * h1, axis=0, keepdims=True)    # (1, 8)
        h2 = jnp.maximum(h2 + b2_ref[...], 0.0)
        # fc3 (8 -> 1) on the VPU + lane reduce.
        out = jnp.sum(h2 * w3_ref[...], axis=1, keepdims=True) + b3_ref[...]  # (1,1)
        # Lane-dense store; the wrapper slices column 0.
        o_ref[...] = jnp.broadcast_to(out.reshape(1, 1, 1),
                                      o_ref.shape).astype(o_ref.dtype)


def _pick_spatial_tile(hw, cap=512):
    """Pad HW up to a multiple of 128; pick the largest tile (multiple of 128,
    <= cap) dividing the padded extent, preferring >= 2 tiles so the input-tile
    DMA double-buffers against compute. Returns (tile_size, padded_hw)."""
    hw_pad = ((hw + 127) // 128) * 128
    candidates = [ts for ts in range(128, min(cap, hw_pad) + 1, 128)
                  if hw_pad % ts == 0]
    multi = [ts for ts in candidates if hw_pad // ts >= 2]
    ts = max(multi) if multi else max(candidates)
    return ts, hw_pad


def encoder_classifier_forward(x_nchw, params):
    B, C, H, W = x_nchw.shape
    HW = H * W
    F = _F
    c_pad = ((C + 15) // 16) * 16          # bf16-packed contraction dim for the MXU

    TS, HW_pad = _pick_spatial_tile(HW)
    n_s = HW_pad // TS
    n_pad = HW_pad - HW

    # NCHW -> (B, Cp, HW_pad): reshape + zero-pad only, no HBM transpose.
    x3 = x_nchw.reshape(B, C, HW)
    x_p = jnp.pad(x3, ((0, 0), (0, c_pad - C), (0, n_pad)))

    # Weight layout prep (tiny, done once in the wrapper):
    wenc_t = jnp.pad(params["w_enc"].T,
                     ((0, 0), (0, c_pad - C))).astype(jnp.bfloat16)   # (F, Cp) bf16
    b_enc_c = params["b_enc"].reshape(F, 1)           # (F, 1)
    w1t_s = (params["w1"] * (1.0 / HW)).T             # (128, F), mean folded in
    b1_c = params["b1"].reshape(128, 1)               # (128, 1)
    w2 = params["w2"]                                 # (128, 8)
    b2_r = params["b2"]                               # (1, 8)
    w3_r = params["w3"].T                             # (1, 8)
    b3 = params["b3"]                                 # (1, 1)

    grid = (B, n_s)
    in_specs = [
        pl.BlockSpec((1, c_pad, TS), lambda b, s: (b, 0, s)),   # input tile
        pl.BlockSpec((F, c_pad), lambda b, s: (0, 0)),          # encoder weight (bf16)
        pl.BlockSpec((F, 1), lambda b, s: (0, 0)),              # encoder bias
        pl.BlockSpec((128, F), lambda b, s: (0, 0)),            # fc1 weight (scaled)
        pl.BlockSpec((128, 1), lambda b, s: (0, 0)),            # fc1 bias
        pl.BlockSpec((128, 8), lambda b, s: (0, 0)),            # fc2 weight
        pl.BlockSpec((1, 8), lambda b, s: (0, 0)),              # fc2 bias
        pl.BlockSpec((1, 8), lambda b, s: (0, 0)),              # fc3 weight
        pl.BlockSpec((1, 1), lambda b, s: (0, 0)),              # fc3 bias
    ]
    out_specs = pl.BlockSpec((1, 1, 128), lambda b, s: (b, 0, 0))

    flops = (2 * B * HW_pad * c_pad * F        # encoder 1x1 conv (MXU)
             + 3 * B * HW_pad * F              # bias + ReLU + lane-partial accumulate
             + 2 * B * (F * 128 + 128 * 8 + 8))
    bytes_accessed = (4 * int(x_p.size) + 2 * int(wenc_t.size)
                      + 4 * int(b_enc_c.size + w1t_s.size + b1_c.size + w2.size
                                + b2_r.size + w3_r.size + b3.size)
                      + 4 * B * 128)

    kernel = functools.partial(_encoder_classifier_kernel, n_pad=n_pad)

    out3 = pl.pallas_call(
        kernel,
        out_shape=jax.ShapeDtypeStruct((B, 1, 128), jnp.float32),
        grid_spec=pltpu.PrefetchScalarGridSpec(
            num_scalar_prefetch=0,
            grid=grid,
            in_specs=in_specs,
            out_specs=out_specs,
            scratch_shapes=[pltpu.VMEM((F, 128), jnp.float32)],
        ),
        compiler_params=pltpu.CompilerParams(
            dimension_semantics=("parallel", "arbitrary"),
            vmem_limit_bytes=48 * 1024 * 1024),
        cost_estimate=pl.CostEstimate(flops=int(flops), transcendentals=0,
                                      bytes_accessed=int(bytes_accessed)),
    )(x_p, wenc_t, b_enc_c, w1t_s, b1_c, w2, b2_r, w3_r, b3)

    return out3[:, 0, :1]   # (B, 1)


def _init_params(key, c_in):
    """Deterministic parameter init (PyTorch-Linear-style uniform)."""
    def linear(key, fan_in, fan_out):
        k_w, k_b = jax.random.split(key)
        bound = 1.0 / jnp.sqrt(fan_in)
        w = jax.random.uniform(k_w, (fan_in, fan_out), jnp.float32, -bound, bound)
        b = jax.random.uniform(k_b, (1, fan_out), jnp.float32, -bound, bound)
        return w, b

    k_enc, k1, k2, k3 = jax.random.split(key, 4)
    w_enc, b_enc = linear(k_enc, c_in, _F)
    w1, b1 = linear(k1, _F, 128)
    w2, b2 = linear(k2, 128, 8)
    w3, b3 = linear(k3, 8, 1)
    return dict(w_enc=w_enc, b_enc=b_enc, w1=w1, b1=b1,
                w2=w2, b2=b2, w3=w3, b3=b3)


def _reference_forward(x_nchw, p):
    """Pure-JAX (f32) reference with identical (eval-mode) semantics."""
    B, C, H, W = x_nchw.shape
    x = jnp.transpose(x_nchw, (0, 2, 3, 1)).reshape(B, H * W, C)
    feat = jnp.maximum(jnp.einsum("bsc,cd->bsd", x, p["w_enc"]) + p["b_enc"], 0.0)
    pooled = jnp.mean(feat, axis=1)
    h1 = jnp.maximum(pooled @ p["w1"] + p["b1"], 0.0)
    h2 = jnp.maximum(h1 @ p["w2"] + p["b2"], 0.0)
    return h2 @ p["w3"] + p["b3"]


if __name__ == "__main__":
    key = jax.random.PRNGKey(0)
    k_x, k_p = jax.random.split(key)

    B, C, H, W = 2, 4, 16, 16
    x = jax.random.normal(k_x, (B, C, H, W), jnp.float32)
    params = _init_params(k_p, C)

    out = jax.block_until_ready(encoder_classifier_forward(x, params))

    ref = _reference_forward(x, params)
    assert out.shape == (B, 1), out.shape
    # bf16 MXU operands (f32 accumulation) in the encoder -> looser tolerance.
    assert jnp.allclose(out, ref, rtol=2e-2, atol=2e-2), (out, ref)

    print("KERNEL_OK")
</pallas_src>

<mosaic_0001>
module attributes {stable_mosaic.version = 11 : i64} {
  func.func @_encoder_classifier_kernel(%arg0: i32, %arg1: i32, %arg2: memref<1x16x128xf32, #tpu.memory_space<vmem>>, %arg3: memref<1280x16xbf16, #tpu.memory_space<vmem>>, %arg4: memref<1280x1xf32, #tpu.memory_space<vmem>>, %arg5: memref<128x1280xf32, #tpu.memory_space<vmem>>, %arg6: memref<128x1xf32, #tpu.memory_space<vmem>>, %arg7: memref<128x8xf32, #tpu.memory_space<vmem>>, %arg8: memref<1x8xf32, #tpu.memory_space<vmem>>, %arg9: memref<1x8xf32, #tpu.memory_space<vmem>>, %arg10: memref<1x1xf32, #tpu.memory_space<vmem>>, %arg11: memref<1x1x128xf32, #tpu.memory_space<vmem>>, %arg12: memref<1280x128xf32, #tpu.memory_space<vmem>>) attributes {dimension_semantics = [#tpu.dimension_semantics<parallel>, #tpu.dimension_semantics<arbitrary>], iteration_bounds = array<i64: 2, 2>, scalar_prefetch = 0 : i64, scratch_operands = 1 : i64, tpu.core_type = #tpu.core_type<tc>, window_params = [{transform_indices = @transform_0, window_bounds = array<i64: 1, 16, 128>}, {pipeline_mode = #tpu.pipeline_mode<synchronous>, transform_indices = @transform_1, window_bounds = array<i64: 1280, 16>}, {pipeline_mode = #tpu.pipeline_mode<synchronous>, transform_indices = @transform_2, window_bounds = array<i64: 1280, 1>}, {pipeline_mode = #tpu.pipeline_mode<synchronous>, transform_indices = @transform_3, window_bounds = array<i64: 128, 1280>}, {pipeline_mode = #tpu.pipeline_mode<synchronous>, transform_indices = @transform_4, window_bounds = array<i64: 128, 1>}, {pipeline_mode = #tpu.pipeline_mode<synchronous>, transform_indices = @transform_5, window_bounds = array<i64: 128, 8>}, {pipeline_mode = #tpu.pipeline_mode<synchronous>, transform_indices = @transform_6, window_bounds = array<i64: 1, 8>}, {pipeline_mode = #tpu.pipeline_mode<synchronous>, transform_indices = @transform_7, window_bounds = array<i64: 1, 8>}, {pipeline_mode = #tpu.pipeline_mode<synchronous>, transform_indices = @transform_8, window_bounds = array<i64: 1, 1>}, {transform_indices = @transform_9, window_bounds = array<i64: 1, 1, 128>}]} {
    %c0_i32 = arith.constant 0 : i32
    %0 = arith.cmpi eq, %arg1, %c0_i32 : i32
    %1 = arith.extui %0 : i1 to i32
    %c0_i32_0 = arith.constant 0 : i32
    %2 = arith.cmpi ne, %1, %c0_i32_0 : i32
    scf.if %2 {
      %cst_13 = arith.constant 0.000000e+00 : f32
      %19 = vector.broadcast %cst_13 : f32 to vector<1280x128xf32>
      %c0_14 = arith.constant 0 : index
      %c0_15 = arith.constant 0 : index
      %20 = vector.load %arg12[%c0_14, %c0_15] : memref<1280x128xf32, #tpu.memory_space<vmem>>, vector<1280x128xf32>
      tpu.vector_store %arg12[%c0_14, %c0_15], %19 {strides = array<i32>} : memref<1280x128xf32, #tpu.memory_space<vmem>>, vector<1280x128xf32>,
    } else {
    }
    %c0 = arith.constant 0 : index
    %c0_1 = arith.constant 0 : index
    %c0_2 = arith.constant 0 : index
    %3 = vector.load %arg2[%c0, %c0_1, %c0_2] : memref<1x16x128xf32, #tpu.memory_space<vmem>>, vector<1x16x128xf32>
    %4 = vector.shape_cast %3 : vector<1x16x128xf32> to vector<16x128xf32>
    %5 = arith.truncf %4 : vector<16x128xf32> to vector<16x128xbf16>
    %c0_3 = arith.constant 0 : index
    %c0_4 = arith.constant 0 : index
    %6 = vector.load %arg3[%c0_3, %c0_4] : memref<1280x16xbf16, #tpu.memory_space<vmem>>, vector<1280x16xbf16>
    %cst = arith.constant dense<0.000000e+00> : vector<1280x128xf32>
    %7 = tpu.matmul %6, %5, %cst {dimension_numbers = #tpu.dot_dimension_numbers<[1], [0], [0], [1], [0, 0, 1, 1], [], []>} : vector<1280x16xbf16>, vector<16x128xbf16>, vector<1280x128xf32> -> vector<1280x128xf32>
    %c0_5 = arith.constant 0 : index
    %c0_6 = arith.constant 0 : index
    %8 = vector.load %arg4[%c0_5, %c0_6] : memref<1280x1xf32, #tpu.memory_space<vmem>>, vector<1280x1xf32>
    %9 = vector.broadcast %8 : vector<1280x1xf32> to vector<1280x128xf32>
    %10 = arith.addf %7, %9 : vector<1280x128xf32>
    %cst_7 = arith.constant 0.000000e+00 : f32
    %11 = vector.broadcast %cst_7 : f32 to vector<1280x128xf32>
    %12 = arith.maximumf %10, %11 : vector<1280x128xf32>
    %c0_8 = arith.constant 0 : index
    %c0_9 = arith.constant 0 : index
    %13 = vector.load %arg12[%c0_8, %c0_9] : memref<1280x128xf32, #tpu.memory_space<vmem>>, vector<1280x128xf32>
    %14 = arith.addf %13, %12 : vector<1280x128xf32>
    %c0_10 = arith.constant 0 : index
    %c0_11 = arith.constant 0 : index
    %15 = vector.load %arg12[%c0_10, %c0_11] : memref<1280x128xf32, #tpu.memory_space<vmem>>, vector<1280x128xf32>
    tpu.vector_store %arg12[%c0_10, %c0_11], %14 {strides = array<i32>} : memref<1280x128xf32, #tpu.memory_space<vmem>>, vector<1280x128xf32>,
    %c1_i32 = arith.constant 1 : i32
    %16 = arith.cmpi eq, %arg1, %c1_i32 : i32
    %17 = arith.extui %16 : i1 to i32
    %c0_i32_12 = arith.constant 0 : i32
    %18 = arith.cmpi ne, %17, %c0_i32_12 : i32
    scf.if %18 {
      %c0_13 = arith.constant 0 : index
      %c0_14 = arith.constant 0 : index
      %19 = vector.load %arg12[%c0_13, %c0_14] : memref<1280x128xf32, #tpu.memory_space<vmem>>, vector<1280x128xf32>
      %cst_15 = arith.constant dense<0.000000e+00> : vector<1280xf32>
      %20 = vector.multi_reduction <add>, %19, %cst_15 [1] : vector<1280x128xf32> to vector<1280xf32>
      %21 = vector.shape_cast %20 : vector<1280xf32> to vector<1280x1xf32>
      %c0_16 = arith.constant 0 : index
      %c0_17 = arith.constant 0 : index
      %22 = vector.load %arg5[%c0_16, %c0_17] : memref<128x1280xf32, #tpu.memory_space<vmem>>, vector<128x1280xf32>
      %cst_18 = arith.constant dense<0.000000e+00> : vector<128x1xf32>
      %23 = tpu.matmul %22, %21, %cst_18 {dimension_numbers = #tpu.dot_dimension_numbers<[1], [0], [0], [1], [0, 0, 1, 1], [], []>} : vector<128x1280xf32>, vector<1280x1xf32>, vector<128x1xf32> -> vector<128x1xf32>
      %c0_19 = arith.constant 0 : index
      %c0_20 = arith.constant 0 : index
      %24 = vector.load %arg6[%c0_19, %c0_20] : memref<128x1xf32, #tpu.memory_space<vmem>>, vector<128x1xf32>
      %25 = arith.addf %23, %24 : vector<128x1xf32>
      %cst_21 = arith.constant 0.000000e+00 : f32
      %26 = vector.broadcast %cst_21 : f32 to vector<128x1xf32>
      %27 = arith.maximumf %25, %26 : vector<128x1xf32>
      %c0_22 = arith.constant 0 : index
      %c0_23 = arith.constant 0 : index
      %28 = vector.load %arg7[%c0_22, %c0_23] : memref<128x8xf32, #tpu.memory_space<vmem>>, vector<128x8xf32>
      %29 = vector.broadcast %27 : vector<128x1xf32> to vector<128x8xf32>
      %30 = arith.mulf %28, %29 : vector<128x8xf32>
      %cst_24 = arith.constant dense<0.000000e+00> : vector<8xf32>
      %31 = vector.multi_reduction <add>, %30, %cst_24 [0] : vector<128x8xf32> to vector<8xf32>
      %32 = vector.shape_cast %31 : vector<8xf32> to vector<1x8xf32>
      %c0_25 = arith.constant 0 : index
      %c0_26 = arith.constant 0 : index
      %33 = vector.load %arg8[%c0_25, %c0_26] : memref<1x8xf32, #tpu.memory_space<vmem>>, vector<1x8xf32>
      %34 = arith.addf %32, %33 : vector<1x8xf32>
      %cst_27 = arith.constant 0.000000e+00 : f32
      %35 = vector.broadcast %cst_27 : f32 to vector<1x8xf32>
      %36 = arith.maximumf %34, %35 : vector<1x8xf32>
      %c0_28 = arith.constant 0 : index
      %c0_29 = arith.constant 0 : index
      %37 = vector.load %arg9[%c0_28, %c0_29] : memref<1x8xf32, #tpu.memory_space<vmem>>, vector<1x8xf32>
      %38 = arith.mulf %36, %37 : vector<1x8xf32>
      %cst_30 = arith.constant dense<0.000000e+00> : vector<1xf32>
      %39 = vector.multi_reduction <add>, %38, %cst_30 [1] : vector<1x8xf32> to vector<1xf32>
      %40 = vector.shape_cast %39 : vector<1xf32> to vector<1x1xf32>
      %c0_31 = arith.constant 0 : index
      %c0_32 = arith.constant 0 : index
      %41 = vector.load %arg10[%c0_31, %c0_32] : memref<1x1xf32, #tpu.memory_space<vmem>>, vector<1x1xf32>
      %42 = arith.addf %40, %41 : vector<1x1xf32>
      %43 = vector.shape_cast %42 : vector<1x1xf32> to vector<1x1x1xf32>
      %44 = vector.shape_cast %43 : vector<1x1x1xf32> to vector<1x1x1xf32>
      %45 = vector.broadcast %44 : vector<1x1x1xf32> to vector<1x1x128xf32>
      %c0_33 = arith.constant 0 : index
      %c0_34 = arith.constant 0 : index
      %c0_35 = arith.constant 0 : index
      %46 = vector.load %arg11[%c0_33, %c0_34, %c0_35] : memref<1x1x128xf32, #tpu.memory_space<vmem>>, vector<1x1x128xf32>
      tpu.vector_store %arg11[%c0_33, %c0_34, %c0_35], %45 {strides = array<i32>} : memref<1x1x128xf32, #tpu.memory_space<vmem>>, vector<1x1x128xf32>,
    } else {
    }
    return
  }
  func.func @transform_0(%arg0: i32, %arg1: i32) -> (i32, i32, i32) {
    %c0_i32 = arith.constant 0 : i32
    %c0_i32_0 = arith.constant 0 : i32
    return %arg0, %c0_i32, %arg1 : i32, i32, i32
  }
  func.func @transform_1(%arg0: i32, %arg1: i32) -> (i32, i32) {
    %c0_i32 = arith.constant 0 : i32
    %c0_i32_0 = arith.constant 0 : i32
    %c0_i32_1 = arith.constant 0 : i32
    return %c0_i32, %c0_i32_0 : i32, i32
  }
  func.func @transform_2(%arg0: i32, %arg1: i32) -> (i32, i32) {
    %c0_i32 = arith.constant 0 : i32
    %c0_i32_0 = arith.constant 0 : i32
    %c0_i32_1 = arith.constant 0 : i32
    return %c0_i32, %c0_i32_0 : i32, i32
  }
  func.func @transform_3(%arg0: i32, %arg1: i32) -> (i32, i32) {
    %c0_i32 = arith.constant 0 : i32
    %c0_i32_0 = arith.constant 0 : i32
    %c0_i32_1 = arith.constant 0 : i32
    return %c0_i32, %c0_i32_0 : i32, i32
  }
  func.func @transform_4(%arg0: i32, %arg1: i32) -> (i32, i32) {
    %c0_i32 = arith.constant 0 : i32
    %c0_i32_0 = arith.constant 0 : i32
    %c0_i32_1 = arith.constant 0 : i32
    return %c0_i32, %c0_i32_0 : i32, i32
  }
  func.func @transform_5(%arg0: i32, %arg1: i32) -> (i32, i32) {
    %c0_i32 = arith.constant 0 : i32
    %c0_i32_0 = arith.constant 0 : i32
    %c0_i32_1 = arith.constant 0 : i32
    return %c0_i32, %c0_i32_0 : i32, i32
  }
  func.func @transform_6(%arg0: i32, %arg1: i32) -> (i32, i32) {
    %c0_i32 = arith.constant 0 : i32
    %c0_i32_0 = arith.constant 0 : i32
    %c0_i32_1 = arith.constant 0 : i32
    return %c0_i32, %c0_i32_0 : i32, i32
  }
  func.func @transform_7(%arg0: i32, %arg1: i32) -> (i32, i32) {
    %c0_i32 = arith.constant 0 : i32
    %c0_i32_0 = arith.constant 0 : i32
    %c0_i32_1 = arith.constant 0 : i32
    return %c0_i32, %c0_i32_0 : i32, i32
  }
  func.func @transform_8(%arg0: i32, %arg1: i32) -> (i32, i32) {
    %c0_i32 = arith.constant 0 : i32
    %c0_i32_0 = arith.constant 0 : i32
    %c0_i32_1 = arith.constant 0 : i32
    return %c0_i32, %c0_i32_0 : i32, i32
  }
  func.func @transform_9(%arg0: i32, %arg1: i32) -> (i32, i32, i32) {
    %c0_i32 = arith.constant 0 : i32
    %c0_i32_0 = arith.constant 0 : i32
    %c0_i32_1 = arith.constant 0 : i32
    return %arg0, %c0_i32, %c0_i32_0 : i32, i32, i32
  }
}

</mosaic_0001>

<bundles_post_ra>
// kernel: tpu_custom_call.1
= control target key start
LH: loop header
LB: loop body
LE: loop exit
PB: predicated region body
PF: predicated region fallthrough
CT: control target
= control target key end

     0   :  { %s8108_s0 = inlined_call_operand.vmem [shape: f32[2,16,256], index: 0, kind: input, shape index: {}]   ;;  %s8109_s1 = inlined_call_operand.vmem [shape: bf16[1280,16], index: 1, kind: input, shape index: {}]   ;;  %s8110_s2 = inlined_call_operand.vmem [shape: f32[1280,1], index: 2, kind: input, shape index: {}]   ;;  %s8111_s3 = inlined_call_operand.vmem [shape: f32[128,1280], index: 3, kind: input, shape index: {}]   ;;  %s8112_s4 = inlined_call_operand.vmem [shape: f32[128,1], index: 4, kind: input, shape index: {}]   ;;  %s8113_s5 = inlined_call_operand.vmem [shape: f32[128,8], index: 5, kind: input, shape index: {}]   ;;  %s8114_s6 = inlined_call_operand.vmem [shape: f32[1,8], index: 6, kind: input, shape index: {}]   ;;  %s8115_s7 = inlined_call_operand.vmem [shape: f32[1,8], index: 7, kind: input, shape index: {}]   ;;  %s8116_s8 = inlined_call_operand.<no memory space> [shape: f32[1,1], index: 8, kind: input, shape index: {}]   ;;  %s8117_s9 = inlined_call_operand.hbm [shape: f32[2,1,128], index: 9, kind: output, shape index: {}]  }
   0x1   :  { %8123 = sst [smem:[#allocation52_spill]] %s8108_s0  ;;  %v14_v0 = vstv %s8116_s8 }
   0x2   :  { %15 = vst [vmem:[#allocation3] sm:$0x1] %v14_v0 }
   0x3   :  { %16 = vsyncpa [#allocation6], 0 }
   0x4   :  { %18 = vsyncpa [#allocation6 + $0x1], 0  ;;  %s5737_s11 = smov 0   ;;  %s5739_s12 = smov 0  }
   0x5   :  { %s5741_s13 = smov 0   ;;  %s5743_s14 = smov 0  }
   0x6   :  { %s5745_s15 = smov 0   ;;  %s5747_s16 = smov 0  }
   0x7   :  { %s5749_s17 = smov 0   ;;  %s5751_s18 = smov 0  }
   0x8   :  { %s5753_s8 = smov 0   ;;  %s5755_s19 = smov 0  }
   0x9 LB: > { %8124 = sst [smem:[#allocation8_spill]] %s5643_s11  ;;  %s4945_s20 = sadd.s32 4294967295, %s5679_s19   ;;  %s5679_s19 = sphi %s5755_s19, %s24_s19   ;;  %s5675_s8 = sphi %s5753_s8, %s8225_s8   ;;  %s5671_s18 = sphi %s5751_s18, %s8224_s18   ;;  %s5667_s17 = sphi %s5749_s17, %s8223_s17   ;;  %s5663_s16 = sphi %s5747_s16, %s8222_s16   ;;  %s5659_s15 = sphi %s5745_s15, %s8221_s15   ;;  %s5655_s14 = sphi %s5743_s14, %s8220_s14   ;;  %s5651_s13 = sphi %s5741_s13, %s8219_s13   ;;  %s5647_s12 = sphi %s5739_s12, %s8218_s12   ;;  %s5643_s11 = sphi %s5737_s11, %s8217_s11  }
   0xa   : > { %s4946_s21 = sadd.s32 4294967294, %s5679_s19   ;;  %s33_s22 = sadd.s32 1, %s5671_s18 }
   0xb   : > { %s36_s23 = sadd.s32 1, %s5675_s8  ;;  %p34_p0 = scmp.ge.s32.totalorder %s33_s22, 2 }
   0xc   : > { %s45_s24 = sadd.s32 1, %s5659_s15  ;;  %p52_p1 = scmp.ne.s32.totalorder %s5659_s15, %s5655_s14 }
   0xd   : > { %p53_p2 = scmp.eq.s32.totalorder %s5679_s19, 0  ;;  %s8227_s22 = smov (%p34_p0, %s33_s22), 0 }
   0xe   : > { %8125 = sst [smem:[#allocation9_spill]] %s8227_s22  ;;  %s8229_s23 = smov (!%p34_p0, %s36_s23), %s5675_s8 }
   0xf   : > { %s41_s25 = ssub.s32 %s5671_s18, %s8227_s22  ;;  %p5800_p3 = por %p53_p2, %p52_p1 }
  0x10   : > { %p38_p4 = scmp.ge.s32.totalorder %s8229_s23, 2  ;;  %s239_s27 = sadd.s32 1, %s5651_s13 }
  0x11   : > { %p249_p5 = scmp.ne.s32.totalorder %s5651_s13, %s5647_s12  ;;  %p250_p6 = scmp.eq.s32.totalorder %s4945_s20, 3 }
  0x12   : > { %s8231_s23 = smov (%p38_p4, %s8229_s23), 0  ;;  %p255_p8 = scmp.ne.s32.totalorder %s5647_s12, %s5643_s11 }
  0x13   : > { %8127 = sst [smem:[#allocation10_spill]] %s8231_s23  ;;  %p5809_p7 = por %p250_p6, %p249_p5 }
  0x14   : > { %s40_s29 = ssub.s32 %s5675_s8, %s8231_s23  ;;  %p256_p9 = scmp.eq.s32.totalorder %s4946_s21, 3 }
  0x15   : > { %s42_s30 = sor.u32 %s41_s25, %s40_s29  ;;  %p237_p10 = scmp.eq.s32.totalorder %s40_s29, 0 }
  0x16   : > { %p43_p11 = scmp.eq.s32.totalorder %s42_s30, 0  ;;  %p5817_p12 = por %p256_p9, %p255_p8 }
  0x17   : > { %s5822_s22 = scalar_select %p237_p10, %s5651_s13, %s239_s27  }
  0x18   : > { %s8129_s10 = scalar_select %p5817_p12, 1, 0 }
  0x19   : > { %s5825_s20 = scalar_select %p43_p11, %s5659_s15, %s45_s24  }
  0x1a   : > { %8130 = sst [smem:[#allocation11_spill]] %s8129_s10  ;;  %p4948_p13 = scmp.ge.s32.totalorder %s5679_s19, 4 }
  0x1c   : > { %296 = sbr.rel (%p4948_p13) target bundleno = 45 (0x2d), region = 48 }
  0x21   : > { %299 = sbr.rel (!%p5800_p3) target bundleno = 45 (0x2d), region = 52  ;;  %s301_s21 = sand.u32 (%p5800_p3), 1, %s5659_s15  }
  0x22   : > { %s4950_s25 = sshll.u32 (%p5800_p3), %s5675_s8, 2  ;;  %s4949_s29 = sshll.u32 (%p5800_p3), %s301_s21, 4 }
  0x23   : > { %s305_s30 = sadd.s32 (%p5800_p3), %s5671_s18, %s4950_s25  ;;  %s8131_s0 = sld [smem:[#allocation52_spill]] (%p5800_p3) }
  0x24   : > { %s4951_s23 = sshll.u32 (%p5800_p3), %s305_s30, 3  ;;  %s303_s24 = scalar_lea.vmem (%p5800_p3), [#allocation4], %s4949_s29 }
  0x29   : > { %s307_s27 = scalar_lea.vmem %s8131_s0, %s4951_s23 }
  0x2a   : > { %v338_v1 = vld [vmem:[%s307_s27] sm:$0xff]  ;;  %v340_v2 = vld [vmem:[%s307_s27 + $0x10] sm:$0xff] }
  0x2b   : > { %339 = vst [vmem:[%s303_s24] sm:$0xff] %v338_v1 }
  0x2c   : > { %341 = vst [vmem:[%s303_s24 + $0x8] sm:$0xff] %v340_v2 }
  0x2d PF: > { %p4952_p0 = scmp.ge.s32.totalorder %s5679_s19, 1  ;;  %p346_p1 = scmp.lt.s32.totalorder %s5679_s19, 5 }
  0x2f   : > { %p347_p2 = pnand %p4952_p0, %p346_p1 }
  0x31   : > { %350 = sbr.rel (%p347_p2) target bundleno = 1955 (0x7a3), region = 90 }
  0x36   : > { %s353_s26 = sand.u32 1, %s5655_s14   ;;  %s8122_s21 = sand.u32 1, %s5647_s12  }
  0x37   : > { %s5840_s11 = sshll.u32 %s353_s26, 4  ;;  %s5845_s10 = scalar_lea.vmem [#allocation5], %s8122_s21 }
  0x38   : > { %s355_s23 = scalar_lea.vmem [#allocation4], %s5840_s11  ;;  %p4954_p3 = scmp.ne.s32.totalorder %s5663_s16, 0 }
  0x3a   : > { %391 = sbr.rel (%p4954_p3) target bundleno = 224 (0xe0), region = 98 }
  0x3f   : > { %v5681_v3 = vmov 0.0  }
  0x40   : > { %392 = vst [vmem:[#allocation2 + $0x2b0] sm:$0xff] %v5681_v3 }
  0x41   : > { %393 = vst [vmem:[#allocation2 + $0x3b0] sm:$0xff] %v5681_v3 }
  0x42   : > { %394 = vst [vmem:[#allocation2 + $0x4d8] sm:$0xff] %v5681_v3 }
  0x43   : > { %395 = vst [vmem:[#allocation2 + $0x18] sm:$0xff] %v5681_v3 }
  0x44   : > { %396 = vst [vmem:[#allocation2 + $0x450] sm:$0xff] %v5681_v3 }
  0x45   : > { %397 = vst [vmem:[#allocation2 + $0x328] sm:$0xff] %v5681_v3 }
  0x46   : > { %398 = vst [vmem:[#allocation2 + $0x440] sm:$0xff] %v5681_v3 }
  0x47   : > { %399 = vst [vmem:[#allocation2 + $0x378] sm:$0xff] %v5681_v3 }
  0x48   : > { %400 = vst [vmem:[#allocation2 + $0x108] sm:$0xff] %v5681_v3 }
  0x49   : > { %401 = vst [vmem:[#allocation2 + $0x488] sm:$0xff] %v5681_v3 }
  0x4a   : > { %402 = vst [vmem:[#allocation2 + $0x310] sm:$0xff] %v5681_v3 }
  0x4b   : > { %403 = vst [vmem:[#allocation2 + $0x4f0] sm:$0xff] %v5681_v3 }
  0x4c   : > { %404 = vst [vmem:[#allocation2 + $0x308] sm:$0xff] %v5681_v3 }
  0x4d   : > { %405 = vst [vmem:[#allocation2 + $0x2a8] sm:$0xff] %v5681_v3 }
  0x4e   : > { %406 = vst [vmem:[#allocation2 + $0x398] sm:$0xff] %v5681_v3 }
  0x4f   : > { %407 = vst [vmem:[#allocation2 + $0x60] sm:$0xff] %v5681_v3 }
  0x50   : > { %408 = vst [vmem:[#allocation2 + $0xd8] sm:$0xff] %v5681_v3 }
  0x51   : > { %409 = vst [vmem:[#allocation2 + $0x388] sm:$0xff] %v5681_v3 }
  0x52   : > { %410 = vst [vmem:[#allocation2 + $0x160] sm:$0xff] %v5681_v3 }
  0x53   : > { %411 = vst [vmem:[#allocation2 + $0x220] sm:$0xff] %v5681_v3 }
  0x54   : > { %412 = vst [vmem:[#allocation2 + $0xa0] sm:$0xff] %v5681_v3 }
  0x55   : > { %413 = vst [vmem:[#allocation2 + $0x360] sm:$0xff] %v5681_v3 }
  0x56   : > { %414 = vst [vmem:[#allocation2 + $0x4f8] sm:$0xff] %v5681_v3 }
  0x57   : > { %415 = vst [vmem:[#allocation2 + $0x380] sm:$0xff] %v5681_v3 }
  0x58   : > { %416 = vst [vmem:[#allocation2 + $0x458] sm:$0xff] %v5681_v3 }
  0x59   : > { %417 = vst [vmem:[#allocation2 + $0x4a0] sm:$0xff] %v5681_v3 }
  0x5a   : > { %418 = vst [vmem:[#allocation2 + $0x390] sm:$0xff] %v5681_v3 }
  0x5b   : > { %419 = vst [vmem:[#allocation2 + $0xb8] sm:$0xff] %v5681_v3 }
  0x5c   : > { %420 = vst [vmem:[#allocation2 + $0x270] sm:$0xff] %v5681_v3 }
  0x5d   : > { %421 = vst [vmem:[#allocation2 + $0x480] sm:$0xff] %v5681_v3 }
  0x5e   : > { %422 = vst [vmem:[#allocation2 + $0x1a8] sm:$0xff] %v5681_v3 }
  0x5f   : > { %423 = vst [vmem:[#allocation2 + $0x2a0] sm:$0xff] %v5681_v3 }
  0x60   : > { %424 = vst [vmem:[#allocation2 + $0x38] sm:$0xff] %v5681_v3 }
  0x61   : > { %425 = vst [vmem:[#allocation2 + $0x3f8] sm:$0xff] %v5681_v3 }
  0x62   : > { %426 = vst [vmem:[#allocation2 + $0xb0] sm:$0xff] %v5681_v3 }
  0x63   : > { %427 = vst [vmem:[#allocation2 + $0x320] sm:$0xff] %v5681_v3 }
  0x64   : > { %428 = vst [vmem:[#allocation2 + $0x188] sm:$0xff] %v5681_v3 }
  0x65   : > { %429 = vst [vmem:[#allocation2 + $0x210] sm:$0xff] %v5681_v3 }
  0x66   : > { %430 = vst [vmem:[#allocation2 + $0x78] sm:$0xff] %v5681_v3 }
  0x67   : > { %431 = vst [vmem:[#allocation2 + $0x20] sm:$0xff] %v5681_v3 }
  0x68   : > { %432 = vst [vmem:[#allocation2 + $0x3c8] sm:$0xff] %v5681_v3 }
  0x69   : > { %433 = vst [vmem:[#allocation2 + $0x280] sm:$0xff] %v5681_v3 }
  0x6a   : > { %434 = vst [vmem:[#allocation2 + $0x3b8] sm:$0xff] %v5681_v3 }
  0x6b   : > { %435 = vst [vmem:[#allocation2 + $0x8] sm:$0xff] %v5681_v3 }
  0x6c   : > { %436 = vst [vmem:[#allocation2 + $0x48] sm:$0xff] %v5681_v3 }
  0x6d   : > { %437 = vst [vmem:[#allocation2 + $0x300] sm:$0xff] %v5681_v3 }
  0x6e   : > { %438 = vst [vmem:[#allocation2 + $0x4a8] sm:$0xff] %v5681_v3 }
  0x6f   : > { %439 = vst [vmem:[#allocation2 + $0x218] sm:$0xff] %v5681_v3 }
  0x70   : > { %440 = vst [vmem:[#allocation2 + $0x168] sm:$0xff] %v5681_v3 }
  0x71   : > { %441 = vst [vmem:[#allocation2 + $0x1f0] sm:$0xff] %v5681_v3 }
  0x72   : > { %442 = vst [vmem:[#allocation2 + $0x10] sm:$0xff] %v5681_v3 }
  0x73   : > { %443 = vst [vmem:[#allocation2 + $0x1f8] sm:$0xff] %v5681_v3 }
  0x74   : > { %444 = vst [vmem:[#allocation2 + $0x2e8] sm:$0xff] %v5681_v3 }
  0x75   : > { %445 = vst [vmem:[#allocation2 + $0x258] sm:$0xff] %v5681_v3 }
  0x76   : > { %446 = vst [vmem:[#allocation2 + $0x260] sm:$0xff] %v5681_v3 }
  0x77   : > { %447 = vst [vmem:[#allocation2 + $0x2c0] sm:$0xff] %v5681_v3 }
  0x78   : > { %448 = vst [vmem:[#allocation2 + $0x140] sm:$0xff] %v5681_v3 }
  0x79   : > { %449 = vst [vmem:[#allocation2 + $0xf8] sm:$0xff] %v5681_v3 }
  0x7a   : > { %450 = vst [vmem:[#allocation2 + $0x70] sm:$0xff] %v5681_v3 }
  0x7b   : > { %451 = vst [vmem:[#allocation2 + $0x4c0] sm:$0xff] %v5681_v3 }
  0x7c   : > { %452 = vst [vmem:[#allocation2 + $0x40] sm:$0xff] %v5681_v3 }
  0x7d   : > { %453 = vst [vmem:[#allocation2 + $0x350] sm:$0xff] %v5681_v3 }
  0x7e   : > { %454 = vst [vmem:[#allocation2 + $0x250] sm:$0xff] %v5681_v3 }
  0x7f   : > { %455 = vst [vmem:[#allocation2 + $0x1e0] sm:$0xff] %v5681_v3 }
  0x80   : > { %456 = vst [vmem:[#allocation2 + $0x318] sm:$0xff] %v5681_v3 }
  0x81   : > { %457 = vst [vmem:[#allocation2 + $0x3a0] sm:$0xff] %v5681_v3 }
  0x82   : > { %458 = vst [vmem:[#allocation2 + $0x80] sm:$0xff] %v5681_v3 }
  0x83   : > { %459 = vst [vmem:[#allocation2 + $0x400] sm:$0xff] %v5681_v3 }
  0x84   : > { %460 = vst [vmem:[#allocation2 + $0x228] sm:$0xff] %v5681_v3 }
  0x85   : > { %461 = vst [vmem:[#allocation2 + $0x348] sm:$0xff] %v5681_v3 }
  0x86   : > { %462 = vst [vmem:[#allocation2 + $0x288] sm:$0xff] %v5681_v3 }
  0x87   : > { %463 = vst [vmem:[#allocation2 + $0x460] sm:$0xff] %v5681_v3 }
  0x88   : > { %464 = vst [vmem:[#allocation2 + $0x4b0] sm:$0xff] %v5681_v3 }
  0x89   : > { %465 = vst [vmem:[#allocation2 + $0x1d8] sm:$0xff] %v5681_v3 }
  0x8a   : > { %466 = vst [vmem:[#allocation2 + $0x200] sm:$0xff] %v5681_v3 }
  0x8b   : > { %467 = vst [vmem:[#allocation2 + $0x50] sm:$0xff] %v5681_v3 }
  0x8c   : > { %468 = vst [vmem:[#allocation2 + $0x1b0] sm:$0xff] %v5681_v3 }
  0x8d   : > { %469 = vst [vmem:[#allocation2 + $0x150] sm:$0xff] %v5681_v3 }
  0x8e   : > { %470 = vst [vmem:[#allocation2 + $0x4e8] sm:$0xff] %v5681_v3 }
  0x8f   : > { %471 = vst [vmem:[#allocation2 + $0x190] sm:$0xff] %v5681_v3 }
  0x90   : > { %472 = vst [vmem:[#allocation2 + $0x418] sm:$0xff] %v5681_v3 }
  0x91   : > { %473 = vst [vmem:[#allocation2 + $0x338] sm:$0xff] %v5681_v3 }
  0x92   : > { %474 = vst [vmem:[#allocation2 + $0x358] sm:$0xff] %v5681_v3 }
  0x93   : > { %475 = vst [vmem:[#allocation2 + $0x158] sm:$0xff] %v5681_v3 }
  0x94   : > { %476 = vst [vmem:[#allocation2 + $0x88] sm:$0xff] %v5681_v3 }
  0x95   : > { %477 = vst [vmem:[#allocation2 + $0x448] sm:$0xff] %v5681_v3 }
  0x96   : > { %478 = vst [vmem:[#allocation2] sm:$0xff] %v5681_v3 }
  0x97   : > { %479 = vst [vmem:[#allocation2 + $0x2d0] sm:$0xff] %v5681_v3 }
  0x98   : > { %480 = vst [vmem:[#allocation2 + $0x278] sm:$0xff] %v5681_v3 }
  0x99   : > { %481 = vst [vmem:[#allocation2 + $0x478] sm:$0xff] %v5681_v3 }
  0x9a   : > { %482 = vst [vmem:[#allocation2 + $0x90] sm:$0xff] %v5681_v3 }
  0x9b   : > { %483 = vst [vmem:[#allocation2 + $0x138] sm:$0xff] %v5681_v3 }
  0x9c   : > { %484 = vst [vmem:[#allocation2 + $0x438] sm:$0xff] %v5681_v3 }
  0x9d   : > { %485 = vst [vmem:[#allocation2 + $0x2c8] sm:$0xff] %v5681_v3 }
  0x9e   : > { %486 = vst [vmem:[#allocation2 + $0x3e0] sm:$0xff] %v5681_v3 }
  0x9f   : > { %487 = vst [vmem:[#allocation2 + $0x130] sm:$0xff] %v5681_v3 }
  0xa0   : > { %488 = vst [vmem:[#allocation2 + $0x298] sm:$0xff] %v5681_v3 }
  0xa1   : > { %489 = vst [vmem:[#allocation2 + $0x2f8] sm:$0xff] %v5681_v3 }
  0xa2   : > { %490 = vst [vmem:[#allocation2 + $0x68] sm:$0xff] %v5681_v3 }
  0xa3   : > { %491 = vst [vmem:[#allocation2 + $0x3c0] sm:$0xff] %v5681_v3 }
  0xa4   : > { %492 = vst [vmem:[#allocation2 + $0x368] sm:$0xff] %v5681_v3 }
  0xa5   : > { %493 = vst [vmem:[#allocation2 + $0x2e0] sm:$0xff] %v5681_v3 }
  0xa6   : > { %494 = vst [vmem:[#allocation2 + $0x3a8] sm:$0xff] %v5681_v3 }
  0xa7   : > { %495 = vst [vmem:[#allocation2 + $0x1c8] sm:$0xff] %v5681_v3 }
  0xa8   : > { %496 = vst [vmem:[#allocation2 + $0x3d8] sm:$0xff] %v5681_v3 }
  0xa9   : > { %497 = vst [vmem:[#allocation2 + $0x408] sm:$0xff] %v5681_v3 }
  0xaa   : > { %498 = vst [vmem:[#allocation2 + $0xe8] sm:$0xff] %v5681_v3 }
  0xab   : > { %499 = vst [vmem:[#allocation2 + $0x98] sm:$0xff] %v5681_v3 }
  0xac   : > { %500 = vst [vmem:[#allocation2 + $0x410] sm:$0xff] %v5681_v3 }
  0xad   : > { %501 = vst [vmem:[#allocation2 + $0xc8] sm:$0xff] %v5681_v3 }
  0xae   : > { %502 = vst [vmem:[#allocation2 + $0x420] sm:$0xff] %v5681_v3 }
  0xaf   : > { %503 = vst [vmem:[#allocation2 + $0x28] sm:$0xff] %v5681_v3 }
  0xb0   : > { %504 = vst [vmem:[#allocation2 + $0x290] sm:$0xff] %v5681_v3 }
  0xb1   : > { %505 = vst [vmem:[#allocation2 + $0x330] sm:$0xff] %v5681_v3 }
  0xb2   : > { %506 = vst [vmem:[#allocation2 + $0x118] sm:$0xff] %v5681_v3 }
  0xb3   : > { %507 = vst [vmem:[#allocation2 + $0x490] sm:$0xff] %v5681_v3 }
  0xb4   : > { %508 = vst [vmem:[#allocation2 + $0x4c8] sm:$0xff] %v5681_v3 }
  0xb5   : > { %509 = vst [vmem:[#allocation2 + $0x120] sm:$0xff] %v5681_v3 }
  0xb6   : > { %510 = vst [vmem:[#allocation2 + $0x1d0] sm:$0xff] %v5681_v3 }
  0xb7   : > { %511 = vst [vmem:[#allocation2 + $0x208] sm:$0xff] %v5681_v3 }
  0xb8   : > { %512 = vst [vmem:[#allocation2 + $0xa8] sm:$0xff] %v5681_v3 }
  0xb9   : > { %513 = vst [vmem:[#allocation2 + $0x428] sm:$0xff] %v5681_v3 }
  0xba   : > { %514 = vst [vmem:[#allocation2 + $0x268] sm:$0xff] %v5681_v3 }
  0xbb   : > { %515 = vst [vmem:[#allocation2 + $0x180] sm:$0xff] %v5681_v3 }
  0xbc   : > { %516 = vst [vmem:[#allocation2 + $0x4b8] sm:$0xff] %v5681_v3 }
  0xbd   : > { %517 = vst [vmem:[#allocation2 + $0x178] sm:$0xff] %v5681_v3 }
  0xbe   : > { %518 = vst [vmem:[#allocation2 + $0x1e8] sm:$0xff] %v5681_v3 }
  0xbf   : > { %519 = vst [vmem:[#allocation2 + $0x2f0] sm:$0xff] %v5681_v3 }
  0xc0   : > { %520 = vst [vmem:[#allocation2 + $0x3f0] sm:$0xff] %v5681_v3 }
  0xc1   : > { %521 = vst [vmem:[#allocation2 + $0x170] sm:$0xff] %v5681_v3 }
  0xc2   : > { %522 = vst [vmem:[#allocation2 + $0x198] sm:$0xff] %v5681_v3 }
  0xc3   : > { %523 = vst [vmem:[#allocation2 + $0x1b8] sm:$0xff] %v5681_v3 }
  0xc4   : > { %524 = vst [vmem:[#allocation2 + $0xf0] sm:$0xff] %v5681_v3 }
  0xc5   : > { %525 = vst [vmem:[#allocation2 + $0x238] sm:$0xff] %v5681_v3 }
  0xc6   : > { %526 = vst [vmem:[#allocation2 + $0x248] sm:$0xff] %v5681_v3 }
  0xc7   : > { %527 = vst [vmem:[#allocation2 + $0x4d0] sm:$0xff] %v5681_v3 }
  0xc8   : > { %528 = vst [vmem:[#allocation2 + $0x498] sm:$0xff] %v5681_v3 }
  0xc9   : > { %529 = vst [vmem:[#allocation2 + $0x240] sm:$0xff] %v5681_v3 }
  0xca   : > { %530 = vst [vmem:[#allocation2 + $0x100] sm:$0xff] %v5681_v3 }
  0xcb   : > { %531 = vst [vmem:[#allocation2 + $0x2d8] sm:$0xff] %v5681_v3 }
  0xcc   : > { %532 = vst [vmem:[#allocation2 + $0x4e0] sm:$0xff] %v5681_v3 }
  0xcd   : > { %533 = vst [vmem:[#allocation2 + $0x30] sm:$0xff] %v5681_v3 }
  0xce   : > { %534 = vst [vmem:[#allocation2 + $0x2b8] sm:$0xff] %v5681_v3 }
  0xcf   : > { %535 = vst [vmem:[#allocation2 + $0x1c0] sm:$0xff] %v5681_v3 }
  0xd0   : > { %536 = vst [vmem:[#allocation2 + $0x468] sm:$0xff] %v5681_v3 }
  0xd1   : > { %537 = vst [vmem:[#allocation2 + $0xe0] sm:$0xff] %v5681_v3 }
  0xd2   : > { %538 = vst [vmem:[#allocation2 + $0x58] sm:$0xff] %v5681_v3 }
  0xd3   : > { %539 = vst [vmem:[#allocation2 + $0x3d0] sm:$0xff] %v5681_v3 }
  0xd4   : > { %540 = vst [vmem:[#allocation2 + $0x340] sm:$0xff] %v5681_v3 }
  0xd5   : > { %541 = vst [vmem:[#allocation2 + $0x3e8] sm:$0xff] %v5681_v3 }
  0xd6   : > { %542 = vst [vmem:[#allocation2 + $0x128] sm:$0xff] %v5681_v3 }
  0xd7   : > { %543 = vst [vmem:[#allocation2 + $0x470] sm:$0xff] %v5681_v3 }
  0xd8   : > { %544 = vst [vmem:[#allocation2 + $0x148] sm:$0xff] %v5681_v3 }
  0xd9   : > { %545 = vst [vmem:[#allocation2 + $0xd0] sm:$0xff] %v5681_v3 }
  0xda   : > { %546 = vst [vmem:[#allocation2 + $0x230] sm:$0xff] %v5681_v3 }
  0xdb   : > { %547 = vst [vmem:[#allocation2 + $0x430] sm:$0xff] %v5681_v3 }
  0xdc   : > { %548 = vst [vmem:[#allocation2 + $0x370] sm:$0xff] %v5681_v3 }
  0xdd   : > { %549 = vst [vmem:[#allocation2 + $0xc0] sm:$0xff] %v5681_v3 }
  0xde   : > { %550 = vst [vmem:[#allocation2 + $0x110] sm:$0xff] %v5681_v3 }
  0xdf   : > { %551 = vst [vmem:[#allocation2 + $0x1a0] sm:$0xff] %v5681_v3 }
  0xe0 PF: > { %v719_v4 = vld [vmem:[%s8110_s2 + $0x20] sm:$0xff]  ;;  %v717_v5 = vld [vmem:[%s8110_s2 + $0x10] sm:$0xff]  ;;  %v5682_v7 = vmov 0   ;;  %vm2075_vm0 = vcmask 130048   ;;  %v720_v14 = vld [vmem:[%s8110_s2 + $0x28] sm:$0xff]  ;;  %p5355_p4 = scmp.ne.s32.totalorder %s5663_s16, 1 }
  0xe1   : > { %v715_v6 = vld [vmem:[%s8110_s2] sm:$0xff]  ;;  %5565 = vset.pattern.permute.xlu2 %v5682_v7  ;;  %5564 = vset.pattern.permute.xlu1 %v5682_v7  ;;  %v718_v15 = vld [vmem:[%s8110_s2 + $0x18] sm:$0xff]  ;;  %v716_v16 = vld [vmem:[%s8110_s2 + $0x8] sm:$0xff] }
  0xe2   : > { %v552_v8 = vld [vmem:[%s355_s23] sm:$0xff]  ;;  %v553_v9 = vld [vmem:[%s355_s23 + $0x8] sm:$0xff]  ;;  %5563 = vset.pattern.permute.xlu0 %v5682_v7  ;;  %897 = vperm.xlu2 %5565, %v719_v4  }
  0xe3   : > { %v554_v10 = vpack.c.bf16 %v553_v9, %v552_v8  ;;  %887 = vperm.xlu1 %5564, %v717_v5   ;;  %877 = vperm.xlu0 %5563, %v715_v6   ;;  %v5358_v11 = vld [vmem:[%s8109_s1] sm:$0xff]  ;;  %v722_v18 = vld [vmem:[%s8110_s2 + $0x38] sm:$0xff]  ;;  %v721_v19 = vld [vmem:[%s8110_s2 + $0x30] sm:$0xff] }
  0xe4   : > { %v5378_v12 = vld [vmem:[%s8109_s1 + $0xa0] sm:$0xff]  ;;  %v5359_v20 = vld [vmem:[%s8109_s1 + $0x8] sm:$0xff]  ;;  %v726_v23 = vld [vmem:[%s8110_s2 + $0x58] sm:$0xff] }
  0xe5   : > { %2323 = vmatpush.bf16.msra.mxu0 %v554_v10  ;;  %5438 = vmatpush.bf16.msra.mxu1 %v554_v10  ;;  %v5398_v13 = vld [vmem:[%s8109_s1 + $0x140] sm:$0xff]  ;;  %v5379_v21 = vld [vmem:[%s8109_s1 + $0xa8] sm:$0xff]  ;;  %v725_v24 = vld [vmem:[%s8110_s2 + $0x50] sm:$0xff] }
  0xe6   : > { %5439 = vmatpush.bf16.msra.mxu2 %v554_v10  ;;  %5440 = vmatpush.bf16.msra.mxu3 %v554_v10  ;;  %v723_v17 = vld [vmem:[%s8110_s2 + $0x40] sm:$0xff]  ;;  %v5399_v22 = vld [vmem:[%s8109_s1 + $0x148] sm:$0xff]  ;;  %v729_v26 = vld [vmem:[%s8110_s2 + $0x70] sm:$0xff] }
  0xe7   : > { %v724_v25 = vld [vmem:[%s8110_s2 + $0x48] sm:$0xff]  ;;  %v727_v28 = vld [vmem:[%s8110_s2 + $0x60] sm:$0xff]  ;;  %v5360_v29 = vld [vmem:[%s8109_s1 + $0x10] sm:$0xff] }
  0xe8   : > { %5275 = vmatmul.msk.bf16.vlgmr.msra.gmra.mxu0 %vm2075_vm0, %v5358_v11  ;;  %5295 = vmatmul.msk.bf16.vlgmr.msra.gmra.mxu1 %vm2075_vm0, %v5378_v12  ;;  %v728_v27 = vld [vmem:[%s8110_s2 + $0x68] sm:$0xff]  ;;  %v5380_v30 = vld [vmem:[%s8109_s1 + $0xb0] sm:$0xff]  ;;  %v731_v33 = vld [vmem:[%s8110_s2 + $0x80] sm:$0xff] }
  0xe9   : > { %5315 = vmatmul.msk.bf16.vlgmr.msra.gmra.mxu2 %vm2075_vm0, %v5398_v13  ;;  %v5400_v31 = vld [vmem:[%s8109_s1 + $0x150] sm:$0xff]  ;;  %v732_v32 = vld [vmem:[%s8110_s2 + $0x88] sm:$0xff]  ;;  %v730_v34 = vld [vmem:[%s8110_s2 + $0x78] sm:$0xff] }
  0xea   : > { %902 = vperm.xlu2 %5565, %v720_v14   ;;  %v5418_v35 = vld [vmem:[%s8109_s1 + $0x1e0] sm:$0xff]  ;;  %v734_v37 = vld [vmem:[%s8110_s2 + $0x98] sm:$0xff]  ;;  %v733_v38 = vld [vmem:[%s8110_s2 + $0x90] sm:$0xff] }
  0xeb   : > { %892 = vperm.xlu1 %5564, %v718_v15   ;;  %882 = vperm.xlu0 %5563, %v716_v16   ;;  %v735_v36 = vld [vmem:[%s8110_s2 + $0xa0] sm:$0xff]  ;;  %v5361_v39 = vld [vmem:[%s8109_s1 + $0x18] sm:$0xff]  ;;  %v737_v43 = vld [vmem:[%s8110_s2 + $0xb0] sm:$0xff] }
  0xec   : > { %5335 = vmatmul.msk.bf16.vlgmr.msra.gmra.mxu3 %vm2075_vm0, %v5418_v35  ;;  %v5381_v40 = vld [vmem:[%s8109_s1 + $0xb8] sm:$0xff]  ;;  %v736_v44 = vld [vmem:[%s8110_s2 + $0xa8] sm:$0xff]  ;;  %v741_v46 = vld [vmem:[%s8110_s2 + $0xd0] sm:$0xff] }
  0xed   : > { %v5401_v41 = vld [vmem:[%s8109_s1 + $0x158] sm:$0xff]  ;;  %v5419_v45 = vld [vmem:[%s8109_s1 + $0x1e8] sm:$0xff]  ;;  %v739_v48 = vld [vmem:[%s8110_s2 + $0xc0] sm:$0xff] }
  0xee   : > { %v738_v42 = vld [vmem:[%s8110_s2 + $0xb8] sm:$0xff]  ;;  %v740_v47 = vld [vmem:[%s8110_s2 + $0xc8] sm:$0xff]  ;;  %v5362_v49 = vld [vmem:[%s8109_s1 + $0x20] sm:$0xff] }
  0xef   : > { %v5382_v50 = vld [vmem:[%s8109_s1 + $0xc0] sm:$0xff]  ;;  %v744_v52 = vld [vmem:[%s8110_s2 + $0xe8] sm:$0xff]  ;;  %v742_v54 = vld [vmem:[%s8110_s2 + $0xd8] sm:$0xff] }
  0xf0   : > { %v5402_v51 = vld [vmem:[%s8109_s1 + $0x160] sm:$0xff]  ;;  %v5420_v55 = vld [vmem:[%s8109_s1 + $0x1f0] sm:$0xff]  ;;  %v746_v57 = vld [vmem:[%s8110_s2 + $0xf8] sm:$0xff] }
  0xf1   : > { %v743_v53 = vld [vmem:[%s8110_s2 + $0xe0] sm:$0xff]  ;;  %v745_v58 = vld [vmem:[%s8110_s2 + $0xf0] sm:$0xff]  ;;  %v5363_v59 = vld [vmem:[%s8109_s1 + $0x28] sm:$0xff] }
  0xf2   : > { %917 = vperm.xlu2 %5565, %v723_v17   ;;  %v747_v56 = vld [vmem:[%s8110_s2 + $0x100] sm:$0xff]  ;;  %v5383_v60 = vld [vmem:[%s8109_s1 + $0xc8] sm:$0xff]  ;;  %v750_v62 = vld [vmem:[%s8110_s2 + $0x118] sm:$0xff] }
  0xf3   : > { %912 = vperm.xlu1 %5564, %v722_v18   ;;  %907 = vperm.xlu0 %5563, %v721_v19   ;;  %v5403_v61 = vld [vmem:[%s8109_s1 + $0x168] sm:$0xff]  ;;  %v749_v63 = vld [vmem:[%s8110_s2 + $0x110] sm:$0xff]  ;;  %v5421_v1 = vld [vmem:[%s8109_s1 + $0x1f8] sm:$0xff] }
  0xf4   : > { %v748_v0 = vld [vmem:[%s8110_s2 + $0x108] sm:$0xff]  ;;  %v753_v3 = vld [vmem:[%s8110_s2 + $0x130] sm:$0xff]  ;;  %v751_v5 = vld [vmem:[%s8110_s2 + $0x120] sm:$0xff] }
  0xf5   : > { %v752_v4 = vld [vmem:[%s8110_s2 + $0x128] sm:$0xff]  ;;  %v5364_v6 = vld [vmem:[%s8109_s1 + $0x30] sm:$0xff]  ;;  %v755_v11 = vld [vmem:[%s8110_s2 + $0x140] sm:$0xff] }
  0xf6   : > { %v5384_v7 = vld [vmem:[%s8109_s1 + $0xd0] sm:$0xff]  ;;  %v756_v10 = vld [vmem:[%s8110_s2 + $0x148] sm:$0xff]  ;;  %v754_v12 = vld [vmem:[%s8110_s2 + $0x138] sm:$0xff] }
  0xf7   : > { %v5404_v9 = vld [vmem:[%s8109_s1 + $0x170] sm:$0xff]  ;;  %v5422_v13 = vld [vmem:[%s8109_s1 + $0x200] sm:$0xff]  ;;  %v758_v16 = vld [vmem:[%s8110_s2 + $0x158] sm:$0xff] }
  0xf8   : > { %5276 = vmatmul.msk.bf16.gmra.mxu0 %vm2075_vm0, %v5359_v20  ;;  %5296 = vmatmul.msk.bf16.gmra.mxu1 %vm2075_vm0, %v5379_v21  ;;  %v759_v15 = vld [vmem:[%s8110_s2 + $0x160] sm:$0xff]  ;;  %v757_v17 = vld [vmem:[%s8110_s2 + $0x150] sm:$0xff]  ;;  %v5365_v18 = vld [vmem:[%s8109_s1 + $0x38] sm:$0xff] }
  0xf9   : > { %5316 = vmatmul.msk.bf16.gmra.mxu2 %vm2075_vm0, %v5399_v22  ;;  %v5385_v19 = vld [vmem:[%s8109_s1 + $0xd8] sm:$0xff]  ;;  %v5386_v35 = vld [vmem:[%s8109_s1 + $0xe0] sm:$0xff] }
  0xfa   : > { %932 = vperm.xlu2 %5565, %v726_v23   ;;  %v5405_v21 = vld [vmem:[%s8109_s1 + $0x178] sm:$0xff] }
  0xfb   : > { %927 = vperm.xlu1 %5564, %v725_v24   ;;  %922 = vperm.xlu0 %5563, %v724_v25   ;;  %v762_v24 = vld [vmem:[%s8110_s2 + $0x178] sm:$0xff]  ;;  %v761_v25 = vld [vmem:[%s8110_s2 + $0x170] sm:$0xff] }
  0xfc   : > { %5336 = vmatmul.msk.bf16.gmra.mxu3 %vm2075_vm0, %v5419_v45  ;;  %v768_v45 = vld [vmem:[%s8110_s2 + $0x1a8] sm:$0xff] }
 0x102   : > { %947 = vperm.xlu2 %5565, %v729_v26   ;;  %v760_v26 = vld [vmem:[%s8110_s2 + $0x168] sm:$0xff] }
 0x103   : > { %942 = vperm.xlu1 %5564, %v728_v27   ;;  %937 = vperm.xlu0 %5563, %v727_v28   ;;  %v5423_v27 = vld [vmem:[%s8109_s1 + $0x208] sm:$0xff] }
 0x108   : > { %5277 = vmatmul.msk.bf16.gmra.mxu0 %vm2075_vm0, %v5360_v29  ;;  %5297 = vmatmul.msk.bf16.gmra.mxu1 %vm2075_vm0, %v5380_v30 }
 0x109   : > { %5317 = vmatmul.msk.bf16.gmra.mxu2 %vm2075_vm0, %v5400_v31  ;;  %v765_v31 = vld [vmem:[%s8110_s2 + $0x190] sm:$0xff] }
 0x10a   : > { %962 = vperm.xlu2 %5565, %v732_v32   ;;  %v764_v32 = vld [vmem:[%s8110_s2 + $0x188] sm:$0xff] }
 0x10b   : > { %957 = vperm.xlu1 %5564, %v731_v33   ;;  %952 = vperm.xlu0 %5563, %v730_v34   ;;  %v763_v33 = vld [vmem:[%s8110_s2 + $0x180] sm:$0xff] }
 0x10c   : > { %5337 = vmatmul.msk.bf16.gmra.mxu3 %vm2075_vm0, %v5420_v55  ;;  %v5366_v34 = vld [vmem:[%s8109_s1 + $0x40] sm:$0xff] }
 0x112   : > { %977 = vperm.xlu2 %5565, %v735_v36  }
 0x113   : > { %972 = vperm.xlu1 %5564, %v734_v37   ;;  %967 = vperm.xlu0 %5563, %v733_v38   ;;  %v5406_v38 = vld [vmem:[%s8109_s1 + $0x180] sm:$0xff] }
 0x118   : > { %5278 = vmatmul.msk.bf16.gmra.mxu0 %vm2075_vm0, %v5361_v39  ;;  %5298 = vmatmul.msk.bf16.gmra.mxu1 %vm2075_vm0, %v5381_v40 }
 0x119   : > { %5318 = vmatmul.msk.bf16.gmra.mxu2 %vm2075_vm0, %v5401_v41 }
 0x11a   : > { %992 = vperm.xlu2 %5565, %v738_v42   ;;  %v2885_v42 = vld [vmem:[#allocation2 + $0x2b0] sm:$0xff] }
 0x11b   : > { %987 = vperm.xlu1 %5564, %v737_v43   ;;  %982 = vperm.xlu0 %5563, %v736_v44  }
 0x11c   : > { %5338 = vmatmul.msk.bf16.gmra.mxu3 %vm2075_vm0, %v5421_v1  ;;  %v5387_v1 = vld [vmem:[%s8109_s1 + $0xe8] sm:$0xff] }
 0x122   : > { %1007 = vperm.xlu2 %5565, %v741_v46   ;;  %v767_v46 = vld [vmem:[%s8110_s2 + $0x1a0] sm:$0xff] }
 0x123   : > { %1002 = vperm.xlu1 %5564, %v740_v47   ;;  %997 = vperm.xlu0 %5563, %v739_v48   ;;  %v766_v47 = vld [vmem:[%s8110_s2 + $0x198] sm:$0xff] }
 0x128   : > { %5279 = vmatmul.msk.bf16.gmra.mxu0 %vm2075_vm0, %v5362_v49  ;;  %5299 = vmatmul.msk.bf16.gmra.mxu1 %vm2075_vm0, %v5382_v50  ;;  %v5424_v49 = vld [vmem:[%s8109_s1 + $0x210] sm:$0xff] }
 0x129   : > { %5319 = vmatmul.msk.bf16.gmra.mxu2 %vm2075_vm0, %v5402_v51 }
 0x12a   : > { %1022 = vperm.xlu2 %5565, %v744_v52  }
 0x12b   : > { %1017 = vperm.xlu1 %5564, %v743_v53   ;;  %1012 = vperm.xlu0 %5563, %v742_v54  }
 0x12c   : > { %5339 = vmatmul.msk.bf16.gmra.mxu3 %vm2075_vm0, %v5422_v13  ;;  %v774_v13 = vld [vmem:[%s8110_s2 + $0x1d8] sm:$0xff] }
 0x132   : > { %1037 = vperm.xlu2 %5565, %v747_v56   ;;  %v2886_v56 = vld [vmem:[#allocation2 + $0x3b0] sm:$0xff] }
 0x133   : > { %1032 = vperm.xlu1 %5564, %v746_v57   ;;  %1027 = vperm.xlu0 %5563, %v745_v58  }
 0x138   : > { %5280 = vmatmul.msk.bf16.gmra.mxu0 %vm2075_vm0, %v5363_v59  ;;  %5300 = vmatmul.msk.bf16.gmra.mxu1 %vm2075_vm0, %v5383_v60  ;;  %v771_v59 = vld [vmem:[%s8110_s2 + $0x1c0] sm:$0xff]  ;;  %v770_v60 = vld [vmem:[%s8110_s2 + $0x1b8] sm:$0xff] }
 0x139   : > { %5320 = vmatmul.msk.bf16.gmra.mxu2 %vm2075_vm0, %v5403_v61  ;;  %v769_v61 = vld [vmem:[%s8110_s2 + $0x1b0] sm:$0xff] }
 0x13a   : > { %1052 = vperm.xlu2 %5565, %v750_v62  }
 0x13b   : > { %1047 = vperm.xlu1 %5564, %v749_v63   ;;  %1042 = vperm.xlu0 %5563, %v748_v0   ;;  %v5367_v0 = vld [vmem:[%s8109_s1 + $0x48] sm:$0xff] }
 0x13c   : > { %v6208_v2 = vpop.permute.xlu2 %897  ;;  %5340 = vmatmul.msk.bf16.gmra.mxu3 %vm2075_vm0, %v5423_v27 }
 0x142   : > { %1067 = vperm.xlu2 %5565, %v753_v3  }
 0x143   : > { %1062 = vperm.xlu1 %5564, %v752_v4   ;;  %1057 = vperm.xlu0 %5563, %v751_v5   ;;  %v5407_v5 = vld [vmem:[%s8109_s1 + $0x188] sm:$0xff] }
 0x144   : > { %v6225_v8 = vpop.permute.xlu2 %902 }
 0x148   : > { %5281 = vmatmul.msk.bf16.gmra.mxu0 %vm2075_vm0, %v5364_v6  ;;  %5301 = vmatmul.msk.bf16.gmra.mxu1 %vm2075_vm0, %v5384_v7 }
 0x149   : > { %5321 = vmatmul.msk.bf16.gmra.mxu2 %vm2075_vm0, %v5404_v9 }
 0x14a   : > { %1082 = vperm.xlu2 %5565, %v756_v10   ;;  %v2887_v10 = vld [vmem:[#allocation2 + $0x4d8] sm:$0xff] }
 0x14b   : > { %1077 = vperm.xlu1 %5564, %v755_v11   ;;  %1072 = vperm.xlu0 %5563, %v754_v12  }
 0x14c   : > { %v6245_v14 = vpop.permute.xlu2 %917  ;;  %5341 = vmatmul.msk.bf16.gmra.mxu3 %vm2075_vm0, %v5424_v49 }
 0x152   : > { %1097 = vperm.xlu2 %5565, %v759_v15   ;;  %v773_v15 = vld [vmem:[%s8110_s2 + $0x1d0] sm:$0xff] }
 0x153   : > { %1092 = vperm.xlu1 %5564, %v758_v16   ;;  %1087 = vperm.xlu0 %5563, %v757_v17   ;;  %v772_v16 = vld [vmem:[%s8110_s2 + $0x1c8] sm:$0xff] }
 0x154   : > { %v6263_v20 = vpop.permute.xlu2 %932 }
 0x155   : > { %v6268_v22 = vpop.permute.xlu1 %887  ;;  %v878_v23 = vpop.permute.xlu0 %877 }
 0x158   : > { %5282 = vmatmul.msk.bf16.gmra.mxu0 %vm2075_vm0, %v5365_v18  ;;  %5302 = vmatmul.msk.bf16.gmra.mxu1 %vm2075_vm0, %v5385_v19  ;;  %v5425_v18 = vld [vmem:[%s8109_s1 + $0x218] sm:$0xff] }
 0x159   : > { %5322 = vmatmul.msk.bf16.gmra.mxu2 %vm2075_vm0, %v5405_v21 }
 0x15a   : > { %1112 = vperm.xlu2 %5565, %v762_v24  }
 0x15b   : > { %1107 = vperm.xlu1 %5564, %v761_v25   ;;  %1102 = vperm.xlu0 %5563, %v760_v26   ;;  %v2888_v26 = vld [vmem:[#allocation2 + $0x18] sm:$0xff] }
 0x15c   : > { %v6285_v28 = vpop.permute.xlu2 %947  ;;  %5342 = vmatmul.msk.bf16.gmra.mxu3 %vm2075_vm0, %v5425_v18  ;;  %v5389_v18 = vld [vmem:[%s8109_s1 + $0xf8] sm:$0xff] }
 0x15d   : > { %v6288_v29 = vpop.permute.xlu1 %892  ;;  %v883_v30 = vpop.permute.xlu0 %882 }
 0x162   : > { %1127 = vperm.xlu2 %5565, %v765_v31   ;;  %v777_v31 = vld [vmem:[%s8110_s2 + $0x1f0] sm:$0xff] }
 0x163   : > { %1122 = vperm.xlu1 %5564, %v764_v32   ;;  %1117 = vperm.xlu0 %5563, %v763_v33   ;;  %v776_v32 = vld [vmem:[%s8110_s2 + $0x1e8] sm:$0xff] }
 0x164   : > { %v6310_v40 = vpop.permute.xlu2 %962 }
 0x165   : > { %v2325_v36 = vpop.f32.mrf.mxu0  ;;  %v6305_v37 = vpop.f32.mrf.mxu1 }
 0x166   : > { %v2326_v39 = vadd.f32 %v2325_v36, %v878_v23  ;;  %v6312_v41 = vpop.permute.xlu1 %912  ;;  %v6314_v43 = vpop.permute.xlu0 %907  ;;  %v5388_v36 = vld [vmem:[%s8109_s1 + $0xf0] sm:$0xff] }
 0x168   : > { %v2725_v44 = vmax.f32 %v2326_v39, 0.0  ;;  %5283 = vmatmul.msk.bf16.gmra.mxu0 %vm2075_vm0, %v5366_v34  ;;  %5303 = vmatmul.msk.bf16.gmra.mxu1 %vm2075_vm0, %v5386_v35  ;;  %v5368_v35 = vld [vmem:[%s8109_s1 + $0x50] sm:$0xff] }
 0x169   : > { %5323 = vmatmul.msk.bf16.gmra.mxu2 %vm2075_vm0, %v5406_v38 }
 0x16a   : > { %v3045_v48 = vadd.f32 %v2885_v42, %v2725_v44  ;;  %1142 = vperm.xlu2 %5565, %v768_v45   ;;  %v5408_v42 = vld [vmem:[%s8109_s1 + $0x190] sm:$0xff] }
 0x16b   : > { %1137 = vperm.xlu1 %5564, %v767_v46   ;;  %1132 = vperm.xlu0 %5563, %v766_v47   ;;  %v2889_v47 = vld [vmem:[#allocation2 + $0x450] sm:$0xff] }
 0x16c   : > { %3205 = vst [vmem:[#allocation2 + $0x2b0] sm:$0xff] %v3045_v48  ;;  %v6331_v50 = vpop.f32.mrf.mxu2  ;;  %v6336_v54 = vpop.permute.xlu2 %977 }
 0x16d   : > { %v2327_v51 = vpop.f32.mrf.mxu0  ;;  %v6333_v52 = vpop.f32.mrf.mxu1 }
 0x16e   : > { %v2328_v53 = vadd.f32 %v2327_v51, %v883_v30  ;;  %v6338_v55 = vpop.permute.xlu1 %927  ;;  %v6340_v57 = vpop.permute.xlu0 %922  ;;  %v780_v51 = vld [vmem:[%s8110_s2 + $0x208] sm:$0xff] }
 0x170   : > { %v2726_v58 = vmax.f32 %v2328_v53, 0.0  ;;  %v778_v53 = vld [vmem:[%s8110_s2 + $0x1f8] sm:$0xff] }
 0x172   : > { %v3046_v62 = vadd.f32 %v2886_v56, %v2726_v58  ;;  %1157 = vperm.xlu2 %5565, %v771_v59   ;;  %v5426_v58 = vld [vmem:[%s8109_s1 + $0x220] sm:$0xff] }
 0x173   : > { %1152 = vperm.xlu1 %5564, %v770_v60   ;;  %1147 = vperm.xlu0 %5563, %v769_v61  }
 0x174   : > { %3206 = vst [vmem:[#allocation2 + $0x3b0] sm:$0xff] %v3046_v62  ;;  %v6351_v63 = vpop.f32.mrf.mxu2  ;;  %v6365_v7 = vpop.permute.xlu2 %992  ;;  %5343 = vmatmul.msk.bf16.gmra.mxu3 %vm2075_vm0, %v5426_v58 }
 0x175   : > { %v2330_v3 = vpop.f32.mrf.mxu0  ;;  %v6359_v4 = vpop.f32.mrf.mxu1 }
 0x176   : > { %v2331_v6 = vadd.f32 %v2330_v3, %v6268_v22  ;;  %v6367_v9 = vpop.permute.xlu1 %942  ;;  %v6369_v11 = vpop.permute.xlu0 %937  ;;  %v2890_v3 = vld [vmem:[#allocation2 + $0x328] sm:$0xff] }
 0x178   : > { %v2727_v12 = vmax.f32 %v2331_v6, 0.0  ;;  %5284 = vmatmul.msk.bf16.gmra.mxu0 %vm2075_vm0, %v5367_v0  ;;  %5304 = vmatmul.msk.bf16.gmra.mxu1 %vm2075_vm0, %v5387_v1  ;;  %v6454_v6 = vpop.f32.mrf.mxu3 }
 0x179   : > { %5324 = vmatmul.msk.bf16.gmra.mxu2 %vm2075_vm0, %v5407_v5  ;;  %8132 = vst [vmem:[#allocation12_spill] sm:$0xff] %v6454_v6 }
 0x17a   : > { %v3047_v17 = vadd.f32 %v2887_v10, %v2727_v12  ;;  %1172 = vperm.xlu2 %5565, %v774_v13   ;;  %v783_v12 = vld [vmem:[%s8110_s2 + $0x220] sm:$0xff]  ;;  %v782_v13 = vld [vmem:[%s8110_s2 + $0x218] sm:$0xff] }
 0x17b   : > { %1167 = vperm.xlu1 %5564, %v773_v15   ;;  %1162 = vperm.xlu0 %5563, %v772_v16  }
 0x17c   : > { %3207 = vst [vmem:[#allocation2 + $0x4d8] sm:$0xff] %v3047_v17  ;;  %v6386_v19 = vpop.f32.mrf.mxu2  ;;  %v6392_v24 = vpop.permute.xlu2 %1007  ;;  %v5369_v17 = vld [vmem:[%s8109_s1 + $0x58] sm:$0xff] }
 0x17d   : > { %v2332_v21 = vpop.f32.mrf.mxu0  ;;  %v6388_v22 = vpop.f32.mrf.mxu1 }
 0x17e   : > { %v2333_v23 = vadd.f32 %v2332_v21, %v6288_v29  ;;  %v6394_v25 = vpop.permute.xlu1 %957  ;;  %v6396_v27 = vpop.permute.xlu0 %952  ;;  %v775_v29 = vld [vmem:[%s8110_s2 + $0x1e0] sm:$0xff] }
 0x180   : > { %v2728_v30 = vmax.f32 %v2333_v23, 0.0 }
 0x182   : > { %v3048_v33 = vadd.f32 %v2888_v26, %v2728_v30  ;;  %1187 = vperm.xlu2 %5565, %v777_v31   ;;  %v5409_v26 = vld [vmem:[%s8109_s1 + $0x198] sm:$0xff] }
 0x183   : > { %1182 = vperm.xlu1 %5564, %v776_v32   ;;  %1177 = vperm.xlu0 %5563, %v775_v29   ;;  %v2891_v29 = vld [vmem:[#allocation2 + $0x440] sm:$0xff] }
 0x184   : > { %3208 = vst [vmem:[#allocation2 + $0x18] sm:$0xff] %v3048_v33  ;;  %v6407_v34 = vpop.f32.mrf.mxu2  ;;  %v6421_v45 = vpop.permute.xlu2 %1022 }
 0x185   : > { %v2335_v38 = vpop.f32.mrf.mxu0  ;;  %v6415_v39 = vpop.f32.mrf.mxu1 }
 0x186   : > { %v2336_v44 = vadd.f32 %v2335_v38, %v6208_v2  ;;  %v6423_v46 = vpop.permute.xlu1 %972  ;;  %v6425_v48 = vpop.permute.xlu0 %967  ;;  %v779_v2 = vld [vmem:[%s8110_s2 + $0x200] sm:$0xff]  ;;  %v786_v38 = vld [vmem:[%s8110_s2 + $0x238] sm:$0xff] }
 0x188   : > { %v2729_v49 = vmax.f32 %v2336_v44, 0.0  ;;  %5285 = vmatmul.msk.bf16.gmra.mxu0 %vm2075_vm0, %v5368_v35  ;;  %5305 = vmatmul.msk.bf16.gmra.mxu1 %vm2075_vm0, %v5388_v36  ;;  %v6485_v35 = vpop.f32.mrf.mxu3 }
 0x189   : > { %5325 = vmatmul.msk.bf16.gmra.mxu2 %vm2075_vm0, %v5408_v42  ;;  %8133 = vst [vmem:[#allocation13_spill] sm:$0xff] %v6485_v35  ;;  %v784_v42 = vld [vmem:[%s8110_s2 + $0x228] sm:$0xff]  ;;  %v2935_v35 = vld [vmem:[#allocation2 + $0x10] sm:$0xff] }
 0x18a   : > { %v3049_v56 = vadd.f32 %v2889_v47, %v2729_v49  ;;  %1202 = vperm.xlu2 %5565, %v780_v51   ;;  %v5427_v47 = vld [vmem:[%s8109_s1 + $0x228] sm:$0xff] }
 0x18b   : > { %1197 = vperm.xlu1 %5564, %v779_v2   ;;  %1192 = vperm.xlu0 %5563, %v778_v53  }
 0x18c   : > { %3209 = vst [vmem:[#allocation2 + $0x450] sm:$0xff] %v3049_v56  ;;  %v6442_v59 = vpop.f32.mrf.mxu2  ;;  %v6448_v0 = vpop.permute.xlu2 %1037  ;;  %5344 = vmatmul.msk.bf16.gmra.mxu3 %vm2075_vm0, %v5427_v47 }
 0x18d   : > { %v2337_v60 = vpop.f32.mrf.mxu0  ;;  %v6444_v61 = vpop.f32.mrf.mxu1 }
 0x18e   : > { %v2338_v62 = vadd.f32 %v2337_v60, %v6225_v8  ;;  %v6450_v1 = vpop.permute.xlu1 %987  ;;  %v6452_v5 = vpop.permute.xlu0 %982  ;;  %v781_v8 = vld [vmem:[%s8110_s2 + $0x210] sm:$0xff]  ;;  %v2892_v60 = vld [vmem:[#allocation2 + $0x378] sm:$0xff] }
 0x190   : > { %v2730_v10 = vmax.f32 %v2338_v62, 0.0 }
 0x192   : > { %v3050_v15 = vadd.f32 %v2890_v3, %v2730_v10  ;;  %1217 = vperm.xlu2 %5565, %v783_v12   ;;  %v6514_v3 = vpop.f32.mrf.mxu3  ;;  %v789_v12 = vld [vmem:[%s8110_s2 + $0x250] sm:$0xff] }
 0x193   : > { %1212 = vperm.xlu1 %5564, %v782_v13   ;;  %1207 = vperm.xlu0 %5563, %v781_v8   ;;  %8135 = vst [vmem:[#allocation15_spill] sm:$0xff] %v6514_v3  ;;  %v788_v13 = vld [vmem:[%s8110_s2 + $0x248] sm:$0xff] }
 0x194   : > { %3210 = vst [vmem:[#allocation2 + $0x328] sm:$0xff] %v3050_v15  ;;  %v6465_v16 = vpop.f32.mrf.mxu2  ;;  %v6479_v31 = vpop.permute.xlu2 %1052 }
 0x195   : > { %v2340_v21 = vpop.f32.mrf.mxu0  ;;  %v6473_v23 = vpop.f32.mrf.mxu1 }
 0x196   : > { %v2341_v30 = vadd.f32 %v2340_v21, %v6314_v43  ;;  %v6481_v32 = vpop.permute.xlu1 %1002  ;;  %v6483_v33 = vpop.permute.xlu0 %997  ;;  %v785_v43 = vld [vmem:[%s8110_s2 + $0x230] sm:$0xff] }
 0x198   : > { %v2731_v36 = vmax.f32 %v2341_v30, 0.0  ;;  %5286 = vmatmul.msk.bf16.gmra.mxu0 %vm2075_vm0, %v5369_v17  ;;  %5306 = vmatmul.msk.bf16.gmra.mxu1 %vm2075_vm0, %v5389_v18  ;;  %v5370_v17 = vld [vmem:[%s8109_s1 + $0x60] sm:$0xff] }
 0x199   : > { %5326 = vmatmul.msk.bf16.gmra.mxu2 %vm2075_vm0, %v5409_v26  ;;  %v5390_v18 = vld [vmem:[%s8109_s1 + $0x100] sm:$0xff] }
 0x19a   : > { %v3051_v44 = vadd.f32 %v2891_v29, %v2731_v36  ;;  %1232 = vperm.xlu2 %5565, %v786_v38   ;;  %v5410_v30 = vld [vmem:[%s8109_s1 + $0x1a0] sm:$0xff]  ;;  %v6544_v47 = vpop.f32.mrf.mxu3 }
 0x19b   : > { %1227 = vperm.xlu1 %5564, %v785_v43   ;;  %1222 = vperm.xlu0 %5563, %v784_v42   ;;  %v2893_v43 = vld [vmem:[#allocation2 + $0x108] sm:$0xff]  ;;  %8136 = vst [vmem:[#allocation16_spill] sm:$0xff] %v6544_v47 }
 0x19c   : > { %3211 = vst [vmem:[#allocation2 + $0x440] sm:$0xff] %v3051_v44  ;;  %v6502_v49 = vpop.f32.mrf.mxu2  ;;  %v6508_v56 = vpop.permute.xlu2 %1067 }
 0x19d   : > { %v2342_v51 = vpop.f32.mrf.mxu0  ;;  %v6504_v2 = vpop.f32.mrf.mxu1  ;;  %8134 = vst [vmem:[#allocation14_spill] sm:$0xff] %v6508_v56 }
 0x19e   : > { %v2343_v53 = vadd.f32 %v2342_v51, %v6312_v41  ;;  %v6510_v58 = vpop.permute.xlu1 %1017  ;;  %v6512_v62 = vpop.permute.xlu0 %1012  ;;  %v787_v41 = vld [vmem:[%s8110_s2 + $0x240] sm:$0xff] }
 0x1a0   : > { %v2732_v10 = vmax.f32 %v2343_v53, 0.0  ;;  %v2926_v53 = vld [vmem:[#allocation2 + $0x280] sm:$0xff] }
 0x1a2   : > { %v3052_v8 = vadd.f32 %v2892_v60, %v2732_v10  ;;  %1247 = vperm.xlu2 %5565, %v789_v12   ;;  %v790_v10 = vld [vmem:[%s8110_s2 + $0x258] sm:$0xff] }
 0x1a3   : > { %1242 = vperm.xlu1 %5564, %v788_v13   ;;  %1237 = vperm.xlu0 %5563, %v787_v41   ;;  %v5428_v13 = vld [vmem:[%s8109_s1 + $0x230] sm:$0xff] }
 0x1a4   : > { %3212 = vst [vmem:[#allocation2 + $0x378] sm:$0xff] %v3052_v8  ;;  %v6525_v15 = vpop.f32.mrf.mxu2  ;;  %v1083_v36 = vpop.permute.xlu2 %1082  ;;  %5345 = vmatmul.msk.bf16.gmra.mxu3 %vm2075_vm0, %v5428_v13 }
 0x1a5   : > { %v2345_v21 = vpop.f32.mrf.mxu0  ;;  %v6533_v26 = vpop.f32.mrf.mxu1  ;;  %v2428_v42 = vadd.f32 %v6333_v52, %v1083_v36  ;;  %v791_v52 = vld [vmem:[%s8110_s2 + $0x260] sm:$0xff]  ;;  %v2894_v36 = vld [vmem:[#allocation2 + $0x488] sm:$0xff] }
 0x1a6   : > { %v2346_v29 = vadd.f32 %v2345_v21, %v6245_v14  ;;  %v6539_v38 = vpop.permute.xlu1 %1032  ;;  %v6542_v44 = vpop.permute.xlu0 %1027  ;;  %v792_v14 = vld [vmem:[%s8110_s2 + $0x268] sm:$0xff] }
 0x1a7   : > { %v2766_v60 = vmax.f32 %v2428_v42, 0.0 }
 0x1a8   : > { %v2733_v51 = vmax.f32 %v2346_v29, 0.0  ;;  %5287 = vmatmul.msk.bf16.gmra.mxu0 %vm2075_vm0, %v5370_v17  ;;  %5307 = vmatmul.msk.bf16.gmra.mxu1 %vm2075_vm0, %v5390_v18 }
 0x1a9   : > { %5327 = vmatmul.msk.bf16.gmra.mxu2 %vm2075_vm0, %v5410_v30  ;;  %v3086_v41 = vadd.f32 %v2926_v53, %v2766_v60  ;;  %v2929_v53 = vld [vmem:[#allocation2 + $0x48] sm:$0xff]  ;;  %v6575_v60 = vpop.f32.mrf.mxu3 }
 0x1aa   : > { %v3053_v12 = vadd.f32 %v2893_v43, %v2733_v51  ;;  %1262 = vperm.xlu2 %5565, %v792_v14   ;;  %v795_v14 = vld [vmem:[%s8110_s2 + $0x280] sm:$0xff]  ;;  %8137 = vst [vmem:[#allocation17_spill] sm:$0xff] %v6575_v60 }
 0x1ab   : > { %1257 = vperm.xlu1 %5564, %v791_v52   ;;  %1252 = vperm.xlu0 %5563, %v790_v10   ;;  %3246 = vst [vmem:[#allocation2 + $0x280] sm:$0xff] %v3086_v41  ;;  %v793_v10 = vld [vmem:[%s8110_s2 + $0x270] sm:$0xff]  ;;  %v5371_v41 = vld [vmem:[%s8109_s1 + $0x68] sm:$0xff] }
 0x1ac   : > { %3213 = vst [vmem:[#allocation2 + $0x108] sm:$0xff] %v3053_v12  ;;  %v6561_v8 = vpop.f32.mrf.mxu2  ;;  %v1098_v30 = vpop.permute.xlu2 %1097 }
 0x1ad   : > { %v2347_v17 = vpop.f32.mrf.mxu0  ;;  %v6563_v18 = vpop.f32.mrf.mxu1  ;;  %v2436_v43 = vadd.f32 %v6415_v39, %v1098_v30 }
 0x1ae   : > { %v2348_v21 = vadd.f32 %v2347_v17, %v6340_v57  ;;  %v6567_v29 = vpop.permute.xlu1 %1047  ;;  %v6570_v42 = vpop.permute.xlu0 %1042  ;;  %v794_v57 = vld [vmem:[%s8110_s2 + $0x278] sm:$0xff]  ;;  %v5391_v17 = vld [vmem:[%s8109_s1 + $0x108] sm:$0xff] }
 0x1af   : > { %v2769_v52 = vmax.f32 %v2436_v43, 0.0 }
 0x1b0   : > { %v2734_v51 = vmax.f32 %v2348_v21, 0.0 }
 0x1b1   : > { %v3089_v12 = vadd.f32 %v2929_v53, %v2769_v52  ;;  %v6605_v47 = vpop.f32.mrf.mxu3 }
 0x1b2   : > { %v3054_v39 = vadd.f32 %v2894_v36, %v2734_v51  ;;  %1277 = vperm.xlu2 %5565, %v795_v14   ;;  %v5411_v36 = vld [vmem:[%s8109_s1 + $0x1a8] sm:$0xff]  ;;  %v2895_v14 = vld [vmem:[#allocation2 + $0x310] sm:$0xff]  ;;  %8140 = vst [vmem:[#allocation20_spill] sm:$0xff] %v6605_v47 }
 0x1b3   : > { %1272 = vperm.xlu1 %5564, %v794_v57   ;;  %1267 = vperm.xlu0 %5563, %v793_v10   ;;  %3249 = vst [vmem:[#allocation2 + $0x48] sm:$0xff] %v3089_v12  ;;  %v798_v12 = vld [vmem:[%s8110_s2 + $0x298] sm:$0xff] }
 0x1b4   : > { %3214 = vst [vmem:[#allocation2 + $0x488] sm:$0xff] %v3054_v39  ;;  %v6583_v13 = vpop.f32.mrf.mxu2  ;;  %v1113_v51 = vpop.permute.xlu2 %1112  ;;  %v2932_v39 = vld [vmem:[#allocation2 + $0x218] sm:$0xff] }
 0x1b5   : > { %v2350_v21 = vpop.f32.mrf.mxu0  ;;  %v2450_v30 = vpop.f32.mrf.mxu1  ;;  %v2443_v52 = vadd.f32 %v6504_v2, %v1113_v51  ;;  %v797_v2 = vld [vmem:[%s8110_s2 + $0x290] sm:$0xff] }
 0x1b6   : > { %v2351_v43 = vadd.f32 %v2350_v21, %v6338_v55  ;;  %v6595_v53 = vpop.permute.xlu1 %1062  ;;  %v6598_v57 = vpop.permute.xlu0 %1057  ;;  %v796_v21 = vld [vmem:[%s8110_s2 + $0x288] sm:$0xff] }
 0x1b7   : > { %8138 = vst [vmem:[#allocation18_spill] sm:$0xff] %v6595_v53  ;;  %v2772_v55 = vmax.f32 %v2443_v52, 0.0 }
 0x1b8   : > { %8139 = vst [vmem:[#allocation19_spill] sm:$0xff] %v6598_v57  ;;  %v2735_v10 = vmax.f32 %v2351_v43, 0.0  ;;  %5288 = vmatmul.msk.bf16.gmra.mxu0 %vm2075_vm0, %v5371_v41  ;;  %5308 = vmatmul.msk.bf16.gmra.mxu1 %vm2075_vm0, %v5391_v17  ;;  %v5429_v17 = vld [vmem:[%s8109_s1 + $0x238] sm:$0xff] }
 0x1b9   : > { %5328 = vmatmul.msk.bf16.gmra.mxu2 %vm2075_vm0, %v5411_v36  ;;  %v3092_v43 = vadd.f32 %v2932_v39, %v2772_v55  ;;  %5346 = vmatmul.msk.bf16.gmra.mxu3 %vm2075_vm0, %v5429_v17  ;;  %v2896_v39 = vld [vmem:[#allocation2 + $0x4f0] sm:$0xff]  ;;  %v2968_v57 = vld [vmem:[#allocation2 + $0x158] sm:$0xff] }
 0x1ba   : > { %v3055_v41 = vadd.f32 %v2895_v14, %v2735_v10  ;;  %1292 = vperm.xlu2 %5565, %v798_v12  }
 0x1bb   : > { %1287 = vperm.xlu1 %5564, %v797_v2   ;;  %1282 = vperm.xlu0 %5563, %v796_v21   ;;  %3252 = vst [vmem:[#allocation2 + $0x218] sm:$0xff] %v3092_v43  ;;  %v2925_v2 = vld [vmem:[#allocation2 + $0x3c8] sm:$0xff]  ;;  %v801_v21 = vld [vmem:[%s8110_s2 + $0x2b0] sm:$0xff]  ;;  %v6629_v43 = vpop.f32.mrf.mxu3 }
 0x1bc   : > { %3215 = vst [vmem:[#allocation2 + $0x310] sm:$0xff] %v3055_v41  ;;  %v6617_v51 = vpop.f32.mrf.mxu2  ;;  %v1128_v14 = vpop.permute.xlu2 %1127 }
 0x1bd   : > { %v2352_v36 = vpop.f32.mrf.mxu0  ;;  %v6619_v52 = vpop.f32.mrf.mxu1  ;;  %v2451_v12 = vadd.f32 %v2450_v30, %v1128_v14  ;;  %8142 = vst [vmem:[#allocation22_spill] sm:$0xff] %v6629_v43 }
 0x1be   : > { %v2353_v60 = vadd.f32 %v2352_v36, %v6263_v20  ;;  %v1078_v10 = vpop.permute.xlu1 %1077  ;;  %v6624_v6 = vpop.permute.xlu0 %1072  ;;  %v800_v20 = vld [vmem:[%s8110_s2 + $0x2a8] sm:$0xff] }
 0x1bf   : > { %v2426_v55 = vadd.f32 %v6305_v37, %v1078_v10  ;;  %8141 = vst [vmem:[#allocation21_spill] sm:$0xff] %v6624_v6  ;;  %v2775_v17 = vmax.f32 %v2451_v12, 0.0  ;;  %v799_v37 = vld [vmem:[%s8110_s2 + $0x2a0] sm:$0xff]  ;;  %v5372_v10 = vld [vmem:[%s8109_s1 + $0x70] sm:$0xff]  ;;  %v5393_v6 = vld [vmem:[%s8109_s1 + $0x118] sm:$0xff] }
 0x1c0   : > { %v2736_v41 = vmax.f32 %v2353_v60, 0.0  ;;  %v5392_v12 = vld [vmem:[%s8109_s1 + $0x110] sm:$0xff] }
 0x1c1   : > { %v2765_v56 = vmax.f32 %v2426_v55, 0.0  ;;  %v3095_v60 = vadd.f32 %v2935_v35, %v2775_v17  ;;  %v5412_v35 = vld [vmem:[%s8109_s1 + $0x1b0] sm:$0xff] }
 0x1c2   : > { %v3056_v30 = vadd.f32 %v2896_v39, %v2736_v41  ;;  %1307 = vperm.xlu2 %5565, %v801_v21  }
 0x1c3   : > { %v3085_v36 = vadd.f32 %v2925_v2, %v2765_v56  ;;  %1302 = vperm.xlu1 %5564, %v800_v20   ;;  %1297 = vperm.xlu0 %5563, %v799_v37   ;;  %3255 = vst [vmem:[#allocation2 + $0x10] sm:$0xff] %v3095_v60  ;;  %v2897_v2 = vld [vmem:[#allocation2 + $0x308] sm:$0xff] }
 0x1c4   : > { %3216 = vst [vmem:[#allocation2 + $0x4f0] sm:$0xff] %v3056_v30  ;;  %v6637_v14 = vpop.f32.mrf.mxu2  ;;  %v1143_v39 = vpop.permute.xlu2 %1142  ;;  %v2928_v37 = vld [vmem:[#allocation2 + $0x8] sm:$0xff] }
 0x1c5   : > { %v2355_v55 = vpop.f32.mrf.mxu0  ;;  %v6645_v43 = vpop.f32.mrf.mxu1  ;;  %3245 = vst [vmem:[#allocation2 + $0x3c8] sm:$0xff] %v3085_v36  ;;  %v804_v60 = vld [vmem:[%s8110_s2 + $0x2c8] sm:$0xff] }
 0x1c6   : > { %v2356_v56 = vadd.f32 %v2355_v55, %v6369_v11  ;;  %v1093_v41 = vpop.permute.xlu1 %1092  ;;  %v1088_v17 = vpop.permute.xlu0 %1087  ;;  %v2927_v55 = vld [vmem:[#allocation2 + $0x3b8] sm:$0xff] }
 0x1c7   : > { %v2433_v21 = vadd.f32 %v6388_v22, %v1093_v41  ;;  %v2431_v30 = vadd.f32 %v6359_v4, %v1088_v17  ;;  %v6658_v36 = vpop.f32.mrf.mxu3  ;;  %v803_v22 = vld [vmem:[%s8110_s2 + $0x2c0] sm:$0xff]  ;;  %v802_v4 = vld [vmem:[%s8110_s2 + $0x2b8] sm:$0xff] }
 0x1c8   : > { %v2737_v20 = vmax.f32 %v2356_v56, 0.0  ;;  %5289 = vmatmul.msk.bf16.gmra.mxu0 %vm2075_vm0, %v5372_v10  ;;  %5309 = vmatmul.msk.bf16.gmra.mxu1 %vm2075_vm0, %v5392_v12  ;;  %8143 = vst [vmem:[#allocation23_spill] sm:$0xff] %v6658_v36  ;;  %v5430_v41 = vld [vmem:[%s8109_s1 + $0x240] sm:$0xff] }
 0x1c9   : > { %v2768_v11 = vmax.f32 %v2433_v21, 0.0  ;;  %5329 = vmatmul.msk.bf16.gmra.mxu2 %vm2075_vm0, %v5412_v35  ;;  %v2767_v12 = vmax.f32 %v2431_v30, 0.0  ;;  %5347 = vmatmul.msk.bf16.gmra.mxu3 %vm2075_vm0, %v5430_v41  ;;  %v807_v41 = vld [vmem:[%s8110_s2 + $0x2e0] sm:$0xff] }
 0x1ca   : > { %v3057_v10 = vadd.f32 %v2897_v2, %v2737_v20  ;;  %1322 = vperm.xlu2 %5565, %v804_v60   ;;  %v2898_v60 = vld [vmem:[#allocation2 + $0x2a8] sm:$0xff] }
 0x1cb   : > { %v3088_v56 = vadd.f32 %v2928_v37, %v2768_v11  ;;  %v3087_v21 = vadd.f32 %v2927_v55, %v2767_v12  ;;  %1317 = vperm.xlu1 %5564, %v803_v22   ;;  %1312 = vperm.xlu0 %5563, %v802_v4   ;;  %v2938_v11 = vld [vmem:[#allocation2 + $0x258] sm:$0xff]  ;;  %v2931_v4 = vld [vmem:[#allocation2 + $0x4a8] sm:$0xff] }
 0x1cc   : > { %3217 = vst [vmem:[#allocation2 + $0x308] sm:$0xff] %v3057_v10  ;;  %v6670_v17 = vpop.f32.mrf.mxu2  ;;  %v6674_v37 = vpop.permute.xlu2 %1157 }
 0x1cd   : > { %3248 = vst [vmem:[#allocation2 + $0x8] sm:$0xff] %v3088_v56  ;;  %v2357_v35 = vpop.f32.mrf.mxu0  ;;  %v2457_v36 = vpop.f32.mrf.mxu1 }
 0x1ce   : > { %3247 = vst [vmem:[#allocation2 + $0x3b8] sm:$0xff] %v3087_v21  ;;  %v2358_v2 = vadd.f32 %v2357_v35, %v6367_v9  ;;  %v2458_v20 = vadd.f32 %v2457_v36, %v1143_v39  ;;  %v1108_v30 = vpop.permute.xlu1 %1107  ;;  %v1103_v10 = vpop.permute.xlu0 %1102  ;;  %v2930_v39 = vld [vmem:[#allocation2 + $0x300] sm:$0xff]  ;;  %v806_v36 = vld [vmem:[%s8110_s2 + $0x2d8] sm:$0xff] }
 0x1cf   : > { %v2441_v55 = vadd.f32 %v6473_v23, %v1108_v30  ;;  %v2438_v56 = vadd.f32 %v6444_v61, %v1103_v10  ;;  %v6681_v21 = vpop.f32.mrf.mxu3  ;;  %v805_v23 = vld [vmem:[%s8110_s2 + $0x2d0] sm:$0xff] }
 0x1d0   : > { %v2738_v12 = vmax.f32 %v2358_v2, 0.0  ;;  %v2778_v22 = vmax.f32 %v2458_v20, 0.0  ;;  %8144 = vst [vmem:[#allocation24_spill] sm:$0xff] %v6681_v21 }
 0x1d1   : > { %v2771_v9 = vmax.f32 %v2441_v55, 0.0  ;;  %v2770_v20 = vmax.f32 %v2438_v56, 0.0  ;;  %v5373_v55 = vld [vmem:[%s8109_s1 + $0x78] sm:$0xff] }
 0x1d2   : > { %v3058_v35 = vadd.f32 %v2898_v60, %v2738_v12  ;;  %v3098_v2 = vadd.f32 %v2938_v11, %v2778_v22  ;;  %1337 = vperm.xlu2 %5565, %v807_v41   ;;  %v5413_v12 = vld [vmem:[%s8109_s1 + $0x1b8] sm:$0xff] }
 0x1d3   : > { %v3091_v61 = vadd.f32 %v2931_v4, %v2771_v9  ;;  %v3090_v30 = vadd.f32 %v2930_v39, %v2770_v20  ;;  %1332 = vperm.xlu1 %5564, %v806_v36   ;;  %1327 = vperm.xlu0 %5563, %v805_v23   ;;  %v2899_v41 = vld [vmem:[#allocation2 + $0x398] sm:$0xff]  ;;  %v2934_v23 = vld [vmem:[#allocation2 + $0x1f0] sm:$0xff] }
 0x1d4   : > { %3218 = vst [vmem:[#allocation2 + $0x2a8] sm:$0xff] %v3058_v35  ;;  %v6689_v10 = vpop.f32.mrf.mxu2  ;;  %v6703_v4 = vpop.permute.xlu2 %1172 }
 0x1d5   : > { %3258 = vst [vmem:[#allocation2 + $0x258] sm:$0xff] %v3098_v2  ;;  %v2360_v60 = vpop.f32.mrf.mxu0  ;;  %v6697_v11 = vpop.f32.mrf.mxu1 }
 0x1d6   : > { %3251 = vst [vmem:[#allocation2 + $0x4a8] sm:$0xff] %v3091_v61  ;;  %v2361_v22 = vadd.f32 %v2360_v60, %v6285_v28  ;;  %v1123_v56 = vpop.permute.xlu1 %1122  ;;  %v1118_v39 = vpop.permute.xlu0 %1117  ;;  %v810_v28 = vld [vmem:[%s8110_s2 + $0x2f8] sm:$0xff]  ;;  %v2933_v61 = vld [vmem:[#allocation2 + $0x168] sm:$0xff] }
 0x1d7   : > { %3250 = vst [vmem:[#allocation2 + $0x300] sm:$0xff] %v3090_v30  ;;  %v2448_v9 = vadd.f32 %v6563_v18, %v1123_v56  ;;  %v2446_v35 = vadd.f32 %v6533_v26, %v1118_v39  ;;  %v6712_v2 = vpop.f32.mrf.mxu3  ;;  %v809_v18 = vld [vmem:[%s8110_s2 + $0x2f0] sm:$0xff]  ;;  %v808_v26 = vld [vmem:[%s8110_s2 + $0x2e8] sm:$0xff] }
 0x1d8   : > { %v2739_v36 = vmax.f32 %v2361_v22, 0.0  ;;  %5290 = vmatmul.msk.bf16.gmra.mxu0 %vm2075_vm0, %v5373_v55  ;;  %5310 = vmatmul.msk.bf16.gmra.mxu1 %vm2075_vm0, %v5393_v6  ;;  %8145 = vst [vmem:[#allocation25_spill] sm:$0xff] %v6712_v2  ;;  %v5431_v60 = vld [vmem:[%s8109_s1 + $0x248] sm:$0xff]  ;;  %v2940_v2 = vld [vmem:[#allocation2 + $0x2c0] sm:$0xff] }
 0x1d9   : > { %v2774_v20 = vmax.f32 %v2448_v9, 0.0  ;;  %5330 = vmatmul.msk.bf16.gmra.mxu2 %vm2075_vm0, %v5413_v12  ;;  %v2773_v6 = vmax.f32 %v2446_v35, 0.0  ;;  %5348 = vmatmul.msk.bf16.gmra.mxu3 %vm2075_vm0, %v5431_v60 }
 0x1da   : > { %v3059_v30 = vadd.f32 %v2899_v41, %v2739_v36  ;;  %1352 = vperm.xlu2 %5565, %v810_v28  }
 0x1db   : > { %v3094_v55 = vadd.f32 %v2934_v23, %v2774_v20  ;;  %v3093_v22 = vadd.f32 %v2933_v61, %v2773_v6  ;;  %1347 = vperm.xlu1 %5564, %v809_v18   ;;  %1342 = vperm.xlu0 %5563, %v808_v26   ;;  %v2900_v23 = vld [vmem:[#allocation2 + $0x60] sm:$0xff]  ;;  %v2937_v61 = vld [vmem:[#allocation2 + $0x2e8] sm:$0xff]  ;;  %v813_v26 = vld [vmem:[%s8110_s2 + $0x310] sm:$0xff] }
 0x1dc   : > { %3219 = vst [vmem:[#allocation2 + $0x398] sm:$0xff] %v3059_v30  ;;  %v6724_v56 = vpop.f32.mrf.mxu2  ;;  %v6728_v39 = vpop.permute.xlu2 %1187 }
 0x1dd   : > { %3254 = vst [vmem:[#allocation2 + $0x1f0] sm:$0xff] %v3094_v55  ;;  %v2362_v12 = vpop.f32.mrf.mxu0  ;;  %v2462_v9 = vpop.f32.mrf.mxu1  ;;  %v2936_v55 = vld [vmem:[#allocation2 + $0x1f8] sm:$0xff] }
 0x1de   : > { %3253 = vst [vmem:[#allocation2 + $0x168] sm:$0xff] %v3093_v22  ;;  %v2363_v41 = vadd.f32 %v2362_v12, %v6396_v27  ;;  %v1138_v36 = vpop.permute.xlu1 %1137  ;;  %v1133_v28 = vpop.permute.xlu0 %1132  ;;  %v812_v27 = vld [vmem:[%s8110_s2 + $0x308] sm:$0xff] }
 0x1df   : > { %v2456_v35 = vadd.f32 %v6645_v43, %v1138_v36  ;;  %v2453_v18 = vadd.f32 %v6619_v52, %v1133_v28  ;;  %v6735_v30 = vpop.f32.mrf.mxu3  ;;  %v811_v43 = vld [vmem:[%s8110_s2 + $0x300] sm:$0xff] }
 0x1e0   : > { %v2740_v20 = vmax.f32 %v2363_v41, 0.0  ;;  %8146 = vst [vmem:[#allocation26_spill] sm:$0xff] %v6735_v30  ;;  %v5374_v36 = vld [vmem:[%s8109_s1 + $0x80] sm:$0xff] }
 0x1e1   : > { %v2777_v6 = vmax.f32 %v2456_v35, 0.0  ;;  %v2776_v22 = vmax.f32 %v2453_v18, 0.0  ;;  %v5394_v35 = vld [vmem:[%s8109_s1 + $0x120] sm:$0xff] }
 0x1e2   : > { %v3060_v60 = vadd.f32 %v2900_v23, %v2740_v20  ;;  %1367 = vperm.xlu2 %5565, %v813_v26   ;;  %v5414_v20 = vld [vmem:[%s8109_s1 + $0x1c0] sm:$0xff] }
 0x1e3   : > { %v3097_v12 = vadd.f32 %v2937_v61, %v2777_v6  ;;  %v3096_v52 = vadd.f32 %v2936_v55, %v2776_v22  ;;  %1362 = vperm.xlu1 %5564, %v812_v27   ;;  %1357 = vperm.xlu0 %5563, %v811_v43   ;;  %v2901_v55 = vld [vmem:[#allocation2 + $0xd8] sm:$0xff]  ;;  %v2941_v27 = vld [vmem:[#allocation2 + $0x140] sm:$0xff] }
 0x1e4   : > { %3220 = vst [vmem:[#allocation2 + $0x60] sm:$0xff] %v3060_v60  ;;  %v6743_v41 = vpop.f32.mrf.mxu2  ;;  %v6756_v26 = vpop.permute.xlu2 %1202 }
 0x1e5   : > { %3257 = vst [vmem:[#allocation2 + $0x2e8] sm:$0xff] %v3097_v12  ;;  %v2365_v28 = vpop.f32.mrf.mxu0  ;;  %v2465_v23 = vpop.f32.mrf.mxu1 }
 0x1e6   : > { %3256 = vst [vmem:[#allocation2 + $0x1f8] sm:$0xff] %v3096_v52  ;;  %v2366_v61 = vadd.f32 %v2365_v28, %v6394_v25  ;;  %v2466_v18 = vadd.f32 %v2465_v23, %v6674_v37  ;;  %v1153_v6 = vpop.permute.xlu1 %1152  ;;  %v1148_v60 = vpop.permute.xlu0 %1147  ;;  %v816_v25 = vld [vmem:[%s8110_s2 + $0x328] sm:$0xff]  ;;  %v2939_v28 = vld [vmem:[#allocation2 + $0x260] sm:$0xff] }
 0x1e7   : > { %v2463_v43 = vadd.f32 %v2462_v9, %v1153_v6  ;;  %v2461_v30 = vadd.f32 %v6697_v11, %v1148_v60  ;;  %v6764_v37 = vpop.f32.mrf.mxu3  ;;  %v815_v9 = vld [vmem:[%s8110_s2 + $0x320] sm:$0xff]  ;;  %v814_v11 = vld [vmem:[%s8110_s2 + $0x318] sm:$0xff] }
 0x1e8   : > { %v2741_v22 = vmax.f32 %v2366_v61, 0.0  ;;  %v2781_v12 = vmax.f32 %v2466_v18, 0.0  ;;  %5291 = vmatmul.msk.bf16.gmra.mxu0 %vm2075_vm0, %v5374_v36  ;;  %5311 = vmatmul.msk.bf16.gmra.mxu1 %vm2075_vm0, %v5394_v35  ;;  %8147 = vst [vmem:[#allocation27_spill] sm:$0xff] %v6764_v37  ;;  %v5432_v18 = vld [vmem:[%s8109_s1 + $0x250] sm:$0xff] }
 0x1e9   : > { %v2780_v52 = vmax.f32 %v2463_v43, 0.0  ;;  %5331 = vmatmul.msk.bf16.gmra.mxu2 %vm2075_vm0, %v5414_v20  ;;  %v2779_v23 = vmax.f32 %v2461_v30, 0.0  ;;  %5349 = vmatmul.msk.bf16.gmra.mxu3 %vm2075_vm0, %v5432_v18  ;;  %v5375_v18 = vld [vmem:[%s8109_s1 + $0x88] sm:$0xff] }
 0x1ea   : > { %v3061_v36 = vadd.f32 %v2901_v55, %v2741_v22  ;;  %v3101_v35 = vadd.f32 %v2941_v27, %v2781_v12  ;;  %1382 = vperm.xlu2 %5565, %v816_v25   ;;  %v2902_v27 = vld [vmem:[#allocation2 + $0x388] sm:$0xff] }
 0x1eb   : > { %v3100_v61 = vadd.f32 %v2940_v2, %v2780_v52  ;;  %v3099_v6 = vadd.f32 %v2939_v28, %v2779_v23  ;;  %1377 = vperm.xlu1 %5564, %v815_v9   ;;  %1372 = vperm.xlu0 %5563, %v814_v11   ;;  %v819_v52 = vld [vmem:[%s8110_s2 + $0x340] sm:$0xff]  ;;  %v2942_v9 = vld [vmem:[#allocation2 + $0xf8] sm:$0xff] }
 0x1ec   : > { %3221 = vst [vmem:[#allocation2 + $0xd8] sm:$0xff] %v3061_v36  ;;  %v6776_v20 = vpop.f32.mrf.mxu2  ;;  %v6780_v2 = vpop.permute.xlu2 %1217  ;;  %v818_v11 = vld [vmem:[%s8110_s2 + $0x338] sm:$0xff] }
 0x1ed   : > { %3261 = vst [vmem:[#allocation2 + $0x140] sm:$0xff] %v3101_v35  ;;  %v2367_v43 = vpop.f32.mrf.mxu0  ;;  %v2467_v60 = vpop.f32.mrf.mxu1 }
 0x1ee   : > { %3260 = vst [vmem:[#allocation2 + $0x2c0] sm:$0xff] %v3100_v61  ;;  %v2368_v30 = vadd.f32 %v2367_v43, %v6310_v40  ;;  %v1168_v55 = vpop.permute.xlu1 %1167  ;;  %v1163_v22 = vpop.permute.xlu0 %1162  ;;  %v817_v40 = vld [vmem:[%s8110_s2 + $0x330] sm:$0xff] }
 0x1ef   : > { %3259 = vst [vmem:[#allocation2 + $0x260] sm:$0xff] %v3099_v6  ;;  %v2468_v25 = vadd.f32 %v2467_v60, %v1163_v22  ;;  %v6785_v28 = vpop.f32.mrf.mxu3  ;;  %v5395_v6 = vld [vmem:[%s8109_s1 + $0x128] sm:$0xff] }
 0x1f0   : > { %v2742_v12 = vmax.f32 %v2368_v30, 0.0  ;;  %8148 = vst [vmem:[#allocation28_spill] sm:$0xff] %v6785_v28  ;;  %v5415_v30 = vld [vmem:[%s8109_s1 + $0x1c8] sm:$0xff] }
 0x1f1   : > { %v2782_v35 = vmax.f32 %v2468_v25, 0.0 }
 0x1f2   : > { %v3062_v36 = vadd.f32 %v2902_v27, %v2742_v12  ;;  %1397 = vperm.xlu2 %5565, %v819_v52   ;;  %v2903_v52 = vld [vmem:[#allocation2 + $0x160] sm:$0xff] }
 0x1f3   : > { %v3102_v23 = vadd.f32 %v2942_v9, %v2782_v35  ;;  %1392 = vperm.xlu1 %5564, %v818_v11   ;;  %1387 = vperm.xlu0 %5563, %v817_v40   ;;  %v2943_v9 = vld [vmem:[#allocation2 + $0x70] sm:$0xff]  ;;  %v822_v35 = vld [vmem:[%s8110_s2 + $0x358] sm:$0xff] }
 0x1f4   : > { %3222 = vst [vmem:[#allocation2 + $0x388] sm:$0xff] %v3062_v36  ;;  %v6793_v61 = vpop.f32.mrf.mxu2  ;;  %v6805_v12 = vpop.permute.xlu2 %1232 }
 0x1f5   : > { %v2370_v43 = vpop.f32.mrf.mxu0  ;;  %v2470_v60 = vpop.f32.mrf.mxu1  ;;  %3262 = vst [vmem:[#allocation2 + $0xf8] sm:$0xff] %v3102_v23 }
 0x1f6   : > { %v2371_v27 = vadd.f32 %v2370_v43, %v6425_v48  ;;  %v2471_v22 = vadd.f32 %v2470_v60, %v1168_v55  ;;  %v6807_v25 = vpop.permute.xlu1 %1182  ;;  %v1178_v11 = vpop.permute.xlu0 %1177  ;;  %v821_v48 = vld [vmem:[%s8110_s2 + $0x350] sm:$0xff]  ;;  %v820_v55 = vld [vmem:[%s8110_s2 + $0x348] sm:$0xff] }
 0x1f7   : > { %v6814_v23 = vpop.f32.mrf.mxu3 }
 0x1f8   : > { %v2743_v40 = vmax.f32 %v2371_v27, 0.0  ;;  %v2783_v36 = vmax.f32 %v2471_v22, 0.0  ;;  %5292 = vmatmul.msk.bf16.gmra.mxu0 %vm2075_vm0, %v5375_v18  ;;  %5312 = vmatmul.msk.bf16.gmra.mxu1 %vm2075_vm0, %v5395_v6  ;;  %8149 = vst [vmem:[#allocation29_spill] sm:$0xff] %v6814_v23  ;;  %v5433_v6 = vld [vmem:[%s8109_s1 + $0x258] sm:$0xff] }
 0x1f9   : > { %5332 = vmatmul.msk.bf16.gmra.mxu2 %vm2075_vm0, %v5415_v30  ;;  %5350 = vmatmul.msk.bf16.gmra.mxu3 %vm2075_vm0, %v5433_v6 }
 0x1fa   : > { %v3063_v43 = vadd.f32 %v2903_v52, %v2743_v40  ;;  %v3103_v18 = vadd.f32 %v2943_v9, %v2783_v36  ;;  %1412 = vperm.xlu2 %5565, %v822_v35   ;;  %v2904_v36 = vld [vmem:[#allocation2 + $0x220] sm:$0xff] }
 0x1fb   : > { %1407 = vperm.xlu1 %5564, %v821_v48   ;;  %1402 = vperm.xlu0 %5563, %v820_v55   ;;  %v2944_v35 = vld [vmem:[#allocation2 + $0x4c0] sm:$0xff]  ;;  %v825_v55 = vld [vmem:[%s8110_s2 + $0x370] sm:$0xff] }
 0x1fc   : > { %3223 = vst [vmem:[#allocation2 + $0x160] sm:$0xff] %v3063_v43  ;;  %v6826_v60 = vpop.f32.mrf.mxu2  ;;  %v6831_v9 = vpop.permute.xlu2 %1247 }
 0x1fd   : > { %3263 = vst [vmem:[#allocation2 + $0x70] sm:$0xff] %v3103_v18  ;;  %v2372_v30 = vpop.f32.mrf.mxu0  ;;  %v2472_v27 = vpop.f32.mrf.mxu1 }
 0x1fe   : > { %v2373_v22 = vadd.f32 %v2372_v30, %v6423_v46  ;;  %v2473_v52 = vadd.f32 %v2472_v27, %v6703_v4  ;;  %v6833_v40 = vpop.permute.xlu1 %1197  ;;  %v6835_v43 = vpop.permute.xlu0 %1192  ;;  %v824_v46 = vld [vmem:[%s8110_s2 + $0x368] sm:$0xff]  ;;  %v823_v4 = vld [vmem:[%s8110_s2 + $0x360] sm:$0xff] }
 0x1ff   : > { %v6840_v18 = vpop.f32.mrf.mxu3 }
 0x200   : > { %v2744_v28 = vmax.f32 %v2373_v22, 0.0  ;;  %v2784_v48 = vmax.f32 %v2473_v52, 0.0  ;;  %8150 = vst [vmem:[#allocation30_spill] sm:$0xff] %v6840_v18  ;;  %v5376_v22 = vld [vmem:[%s8109_s1 + $0x90] sm:$0xff] }
 0x201   : > { %v5396_v52 = vld [vmem:[%s8109_s1 + $0x130] sm:$0xff] }
 0x202   : > { %v3064_v6 = vadd.f32 %v2904_v36, %v2744_v28  ;;  %v3104_v30 = vadd.f32 %v2944_v35, %v2784_v48  ;;  %1427 = vperm.xlu2 %5565, %v825_v55   ;;  %v5416_v28 = vld [vmem:[%s8109_s1 + $0x1d0] sm:$0xff] }
 0x203   : > { %1422 = vperm.xlu1 %5564, %v824_v46   ;;  %1417 = vperm.xlu0 %5563, %v823_v4   ;;  %v2905_v46 = vld [vmem:[#allocation2 + $0xa0] sm:$0xff] }
 0x204   : > { %3224 = vst [vmem:[#allocation2 + $0x220] sm:$0xff] %v3064_v6  ;;  %v6848_v27 = vpop.f32.mrf.mxu2  ;;  %v6860_v48 = vpop.permute.xlu2 %1262  ;;  %v2945_v4 = vld [vmem:[#allocation2 + $0x40] sm:$0xff] }
 0x205   : > { %3264 = vst [vmem:[#allocation2 + $0x4c0] sm:$0xff] %v3104_v30  ;;  %v2375_v23 = vpop.f32.mrf.mxu0  ;;  %v2475_v18 = vpop.f32.mrf.mxu1  ;;  %v828_v30 = vld [vmem:[%s8110_s2 + $0x388] sm:$0xff] }
 0x206   : > { %v2376_v36 = vadd.f32 %v2375_v23, %v6336_v54  ;;  %v2476_v35 = vadd.f32 %v2475_v18, %v1178_v11  ;;  %8151 = vst [vmem:[#allocation31_spill] sm:$0xff] %v6860_v48  ;;  %v6862_v55 = vpop.permute.xlu1 %1212  ;;  %v6864_v6 = vpop.permute.xlu0 %1207  ;;  %v827_v11 = vld [vmem:[%s8110_s2 + $0x380] sm:$0xff]  ;;  %v826_v23 = vld [vmem:[%s8110_s2 + $0x378] sm:$0xff] }
 0x207   : > { %v6871_v54 = vpop.f32.mrf.mxu3 }
 0x208   : > { %v2745_v37 = vmax.f32 %v2376_v36, 0.0  ;;  %v2785_v21 = vmax.f32 %v2476_v35, 0.0  ;;  %5293 = vmatmul.msk.bf16.gmra.mxu0 %vm2075_vm0, %v5376_v22  ;;  %5313 = vmatmul.msk.bf16.gmra.mxu1 %vm2075_vm0, %v5396_v52  ;;  %8152 = vst [vmem:[#allocation32_spill] sm:$0xff] %v6871_v54  ;;  %v5434_v52 = vld [vmem:[%s8109_s1 + $0x260] sm:$0xff] }
 0x209   : > { %5333 = vmatmul.msk.bf16.gmra.mxu2 %vm2075_vm0, %v5416_v28  ;;  %5351 = vmatmul.msk.bf16.gmra.mxu3 %vm2075_vm0, %v5434_v52  ;;  %v831_v52 = vld [vmem:[%s8110_s2 + $0x3a0] sm:$0xff] }
 0x20a   : > { %v3065_v18 = vadd.f32 %v2905_v46, %v2745_v37  ;;  %v3105_v22 = vadd.f32 %v2945_v4, %v2785_v21  ;;  %1442 = vperm.xlu2 %5565, %v828_v30   ;;  %v2906_v4 = vld [vmem:[#allocation2 + $0x360] sm:$0xff]  ;;  %v2946_v30 = vld [vmem:[#allocation2 + $0x350] sm:$0xff] }
 0x20b   : > { %1437 = vperm.xlu1 %5564, %v827_v11   ;;  %1432 = vperm.xlu0 %5563, %v826_v23  }
 0x20c   : > { %3225 = vst [vmem:[#allocation2 + $0xa0] sm:$0xff] %v3065_v18  ;;  %v6883_v36 = vpop.f32.mrf.mxu2  ;;  %v1278_v21 = vpop.permute.xlu2 %1277 }
 0x20d   : > { %3265 = vst [vmem:[#allocation2 + $0x40] sm:$0xff] %v3105_v22  ;;  %v2377_v28 = vpop.f32.mrf.mxu0  ;;  %v2477_v35 = vpop.f32.mrf.mxu1  ;;  %v2526_v18 = vadd.f32 %v6331_v50, %v1278_v21  ;;  %v2965_v22 = vld [vmem:[#allocation2 + $0x418] sm:$0xff] }
 0x20e   : > { %v2378_v54 = vadd.f32 %v2377_v28, %v6452_v5  ;;  %v2478_v37 = vadd.f32 %v2477_v35, %v6807_v25  ;;  %v6888_v46 = vpop.permute.xlu1 %1227  ;;  %v6891_v48 = vpop.permute.xlu0 %1222  ;;  %v830_v5 = vld [vmem:[%s8110_s2 + $0x398] sm:$0xff]  ;;  %v829_v25 = vld [vmem:[%s8110_s2 + $0x390] sm:$0xff] }
 0x20f   : > { %v2805_v53 = vmax.f32 %v2526_v18, 0.0  ;;  %v6902_v28 = vpop.f32.mrf.mxu3  ;;  %v5377_v21 = vld [vmem:[%s8109_s1 + $0x98] sm:$0xff] }
 0x210   : > { %v2746_v11 = vmax.f32 %v2378_v54, 0.0  ;;  %v2786_v23 = vmax.f32 %v2478_v37, 0.0  ;;  %8153 = vst [vmem:[#allocation33_spill] sm:$0xff] %v6902_v28  ;;  %v5397_v18 = vld [vmem:[%s8109_s1 + $0x138] sm:$0xff] }
 0x211   : > { %v3125_v54 = vadd.f32 %v2965_v22, %v2805_v53  ;;  %v5417_v53 = vld [vmem:[%s8109_s1 + $0x1d8] sm:$0xff] }
 0x212   : > { %v3066_v50 = vadd.f32 %v2906_v4, %v2746_v11  ;;  %v3106_v35 = vadd.f32 %v2946_v30, %v2786_v23  ;;  %1457 = vperm.xlu2 %5565, %v831_v52   ;;  %v2907_v22 = vld [vmem:[#allocation2 + $0x4f8] sm:$0xff]  ;;  %v2947_v52 = vld [vmem:[#allocation2 + $0x250] sm:$0xff] }
 0x213   : > { %1452 = vperm.xlu1 %5564, %v830_v5   ;;  %1447 = vperm.xlu0 %5563, %v829_v25   ;;  %3285 = vst [vmem:[#allocation2 + $0x418] sm:$0xff] %v3125_v54 }
 0x214   : > { %3226 = vst [vmem:[#allocation2 + $0x360] sm:$0xff] %v3066_v50  ;;  %v6904_v37 = vpop.f32.mrf.mxu2  ;;  %v1293_v11 = vpop.permute.xlu2 %1292 }
 0x215   : > { %3266 = vst [vmem:[#allocation2 + $0x350] sm:$0xff] %v3106_v35  ;;  %v2380_v47 = vpop.f32.mrf.mxu0  ;;  %v2480_v28 = vpop.f32.mrf.mxu1  ;;  %v2533_v5 = vadd.f32 %v6407_v34, %v1293_v11  ;;  %v833_v34 = vld [vmem:[%s8110_s2 + $0x3b0] sm:$0xff] }
 0x216   : > { %v2381_v4 = vadd.f32 %v2380_v47, %v6450_v1  ;;  %v2481_v30 = vadd.f32 %v2480_v28, %v6728_v39  ;;  %v6917_v23 = vpop.permute.xlu1 %1242  ;;  %v6920_v25 = vpop.permute.xlu0 %1237  ;;  %v834_v1 = vld [vmem:[%s8110_s2 + $0x3b8] sm:$0xff]  ;;  %v832_v39 = vld [vmem:[%s8110_s2 + $0x3a8] sm:$0xff] }
 0x217   : > { %v2808_v47 = vmax.f32 %v2533_v5, 0.0  ;;  %v6934_v28 = vpop.f32.mrf.mxu3 }
 0x218   : > { %v2747_v50 = vmax.f32 %v2381_v4, 0.0  ;;  %v2787_v35 = vmax.f32 %v2481_v30, 0.0  ;;  %5294 = vmatmul.msk.bf16.gmra.mxu0 %vm2075_vm0, %v5377_v21  ;;  %5314 = vmatmul.msk.bf16.gmra.mxu1 %vm2075_vm0, %v5397_v18  ;;  %8154 = vst [vmem:[#allocation34_spill] sm:$0xff] %v6934_v28 }
 0x219   : > { %5334 = vmatmul.msk.bf16.gmra.mxu2 %vm2075_vm0, %v5417_v53  ;;  %v3128_v18 = vadd.f32 %v2968_v57, %v2808_v47  ;;  %v5435_v53 = vld [vmem:[%s8109_s1 + $0x268] sm:$0xff] }
 0x21a   : > { %v3067_v54 = vadd.f32 %v2907_v22, %v2747_v50  ;;  %v3107_v21 = vadd.f32 %v2947_v52, %v2787_v35  ;;  %1472 = vperm.xlu2 %5565, %v834_v1   ;;  %5352 = vmatmul.msk.bf16.gmra.mxu3 %vm2075_vm0, %v5435_v53  ;;  %v2908_v50 = vld [vmem:[#allocation2 + $0x380] sm:$0xff] }
 0x21b   : > { %1467 = vperm.xlu1 %5564, %v833_v34   ;;  %1462 = vperm.xlu0 %5563, %v832_v39   ;;  %3288 = vst [vmem:[#allocation2 + $0x158] sm:$0xff] %v3128_v18  ;;  %v2948_v35 = vld [vmem:[#allocation2 + $0x1e0] sm:$0xff] }
 0x21c   : > { %3227 = vst [vmem:[#allocation2 + $0x4f8] sm:$0xff] %v3067_v54  ;;  %v6936_v4 = vpop.f32.mrf.mxu2  ;;  %v1308_v52 = vpop.permute.xlu2 %1307  ;;  %v2971_v54 = vld [vmem:[#allocation2] sm:$0xff] }
 0x21d   : > { %3267 = vst [vmem:[#allocation2 + $0x250] sm:$0xff] %v3107_v21  ;;  %v2382_v30 = vpop.f32.mrf.mxu0  ;;  %v2482_v11 = vpop.f32.mrf.mxu1  ;;  %v2541_v1 = vadd.f32 %v6502_v49, %v1308_v52  ;;  %v835_v18 = vld [vmem:[%s8110_s2 + $0x3c0] sm:$0xff] }
 0x21e   : > { %v2383_v5 = vadd.f32 %v2382_v30, %v6365_v7  ;;  %v2483_v22 = vadd.f32 %v2482_v11, %v6835_v43  ;;  %v6943_v57 = vpop.permute.xlu1 %1257  ;;  %v6947_v47 = vpop.permute.xlu0 %1252  ;;  %v837_v7 = vld [vmem:[%s8110_s2 + $0x3d0] sm:$0xff]  ;;  %v836_v43 = vld [vmem:[%s8110_s2 + $0x3c8] sm:$0xff] }
 0x21f   : > { %8155 = vst [vmem:[#allocation35_spill] sm:$0xff] %v6943_v57  ;;  %v2811_v21 = vmax.f32 %v2541_v1, 0.0  ;;  %v6958_v53 = vpop.f32.mrf.mxu3 }
 0x220   : > { %v2748_v34 = vmax.f32 %v2383_v5, 0.0  ;;  %v2788_v39 = vmax.f32 %v2483_v22, 0.0  ;;  %8156 = vst [vmem:[#allocation36_spill] sm:$0xff] %v6958_v53 }
 0x221   : > { %v3131_v11 = vadd.f32 %v2971_v54, %v2811_v21  ;;  %v2974_v21 = vld [vmem:[#allocation2 + $0x478] sm:$0xff] }
 0x222   : > { %v3068_v49 = vadd.f32 %v2908_v50, %v2748_v34  ;;  %v3108_v30 = vadd.f32 %v2948_v35, %v2788_v39  ;;  %1487 = vperm.xlu2 %5565, %v837_v7   ;;  %v2909_v50 = vld [vmem:[#allocation2 + $0x458] sm:$0xff] }
 0x223   : > { %1482 = vperm.xlu1 %5564, %v836_v43   ;;  %1477 = vperm.xlu0 %5563, %v835_v18   ;;  %3291 = vst [vmem:[#allocation2] sm:$0xff] %v3131_v11  ;;  %v2949_v35 = vld [vmem:[#allocation2 + $0x318] sm:$0xff]  ;;  %v840_v43 = vld [vmem:[%s8110_s2 + $0x3e8] sm:$0xff]  ;;  %v5436_v11 = vld [vmem:[%s8109_s1 + $0x270] sm:$0xff] }
 0x224   : > { %3228 = vst [vmem:[#allocation2 + $0x380] sm:$0xff] %v3068_v49  ;;  %v6960_v5 = vpop.f32.mrf.mxu2  ;;  %v1323_v57 = vpop.permute.xlu2 %1322 }
 0x225   : > { %3268 = vst [vmem:[#allocation2 + $0x1e0] sm:$0xff] %v3108_v30  ;;  %v2385_v22 = vpop.f32.mrf.mxu0  ;;  %v2485_v52 = vpop.f32.mrf.mxu1  ;;  %v2548_v34 = vadd.f32 %v6583_v13, %v1323_v57 }
 0x226   : > { %v2386_v1 = vadd.f32 %v2385_v22, %v6483_v33  ;;  %v2486_v28 = vadd.f32 %v2485_v52, %v6833_v40  ;;  %v6964_v3 = vpop.permute.xlu1 %1272  ;;  %v6967_v39 = vpop.permute.xlu0 %1267  ;;  %v839_v33 = vld [vmem:[%s8110_s2 + $0x3e0] sm:$0xff]  ;;  %v838_v40 = vld [vmem:[%s8110_s2 + $0x3d8] sm:$0xff] }
 0x227   : > { %v2814_v18 = vmax.f32 %v2548_v34, 0.0  ;;  %v6978_v49 = vpop.f32.mrf.mxu3 }
 0x228   : > { %v2749_v54 = vmax.f32 %v2386_v1, 0.0  ;;  %v2789_v7 = vmax.f32 %v2486_v28, 0.0  ;;  %8157 = vst [vmem:[#allocation37_spill] sm:$0xff] %v6978_v49 }
 0x229   : > { %v3134_v30 = vadd.f32 %v2974_v21, %v2814_v18 }
 0x22a   : > { %v3069_v13 = vadd.f32 %v2909_v50, %v2749_v54  ;;  %v3109_v57 = vadd.f32 %v2949_v35, %v2789_v7  ;;  %1502 = vperm.xlu2 %5565, %v840_v43   ;;  %5353 = vmatmul.msk.bf16.gmra.mxu3 %vm2075_vm0, %v5436_v11  ;;  %v2910_v54 = vld [vmem:[#allocation2 + $0x4a0] sm:$0xff]  ;;  %v2966_v11 = vld [vmem:[#allocation2 + $0x338] sm:$0xff] }
 0x22b   : > { %1497 = vperm.xlu1 %5564, %v839_v33   ;;  %1492 = vperm.xlu0 %5563, %v838_v40   ;;  %3294 = vst [vmem:[#allocation2 + $0x478] sm:$0xff] %v3134_v30  ;;  %v2950_v7 = vld [vmem:[#allocation2 + $0x3a0] sm:$0xff] }
 0x22c   : > { %3229 = vst [vmem:[#allocation2 + $0x458] sm:$0xff] %v3069_v13  ;;  %v6980_v28 = vpop.f32.mrf.mxu2  ;;  %v1338_v35 = vpop.permute.xlu2 %1337  ;;  %v2977_v13 = vld [vmem:[#allocation2 + $0x438] sm:$0xff] }
 0x22d   : > { %3269 = vst [vmem:[#allocation2 + $0x318] sm:$0xff] %v3109_v57  ;;  %v2387_v22 = vpop.f32.mrf.mxu0  ;;  %v2487_v52 = vpop.f32.mrf.mxu1  ;;  %v2556_v21 = vadd.f32 %v6670_v17, %v1338_v35  ;;  %v2967_v57 = vld [vmem:[#allocation2 + $0x358] sm:$0xff] }
 0x22e   : > { %v2388_v1 = vadd.f32 %v2387_v22, %v6481_v32  ;;  %v2488_v50 = vadd.f32 %v2487_v52, %v6756_v26  ;;  %v1288_v34 = vpop.permute.xlu1 %1287  ;;  %v1283_v18 = vpop.permute.xlu0 %1282  ;;  %v843_v32 = vld [vmem:[%s8110_s2 + $0x400] sm:$0xff]  ;;  %v842_v17 = vld [vmem:[%s8110_s2 + $0x3f8] sm:$0xff] }
 0x22f   : > { %v2531_v43 = vadd.f32 %v6386_v19, %v1288_v34  ;;  %v2528_v30 = vadd.f32 %v6351_v63, %v1283_v18  ;;  %v2817_v26 = vmax.f32 %v2556_v21, 0.0  ;;  %v841_v19 = vld [vmem:[%s8110_s2 + $0x3f0] sm:$0xff]  ;;  %v7000_v52 = vpop.f32.mrf.mxu3 }
 0x230   : > { %v2750_v33 = vmax.f32 %v2388_v1, 0.0  ;;  %v2790_v40 = vmax.f32 %v2488_v50, 0.0  ;;  %8158 = vst [vmem:[#allocation38_spill] sm:$0xff] %v7000_v52 }
 0x231   : > { %v2807_v22 = vmax.f32 %v2531_v43, 0.0  ;;  %v2806_v63 = vmax.f32 %v2528_v30, 0.0  ;;  %v3137_v35 = vadd.f32 %v2977_v13, %v2817_v26 }
 0x232   : > { %v3070_v1 = vadd.f32 %v2910_v54, %v2750_v33  ;;  %v3110_v50 = vadd.f32 %v2950_v7, %v2790_v40  ;;  %1517 = vperm.xlu2 %5565, %v843_v32   ;;  %v2911_v33 = vld [vmem:[#allocation2 + $0x390] sm:$0xff]  ;;  %v2951_v40 = vld [vmem:[#allocation2 + $0x80] sm:$0xff] }
 0x233   : > { %v3127_v34 = vadd.f32 %v2967_v57, %v2807_v22  ;;  %v3126_v21 = vadd.f32 %v2966_v11, %v2806_v63  ;;  %1512 = vperm.xlu1 %5564, %v842_v17   ;;  %1507 = vperm.xlu0 %5563, %v841_v19   ;;  %3297 = vst [vmem:[#allocation2 + $0x438] sm:$0xff] %v3137_v35  ;;  %v2980_v22 = vld [vmem:[#allocation2 + $0x130] sm:$0xff]  ;;  %v2970_v11 = vld [vmem:[#allocation2 + $0x448] sm:$0xff] }
 0x234   : > { %3230 = vst [vmem:[#allocation2 + $0x4a0] sm:$0xff] %v3070_v1  ;;  %v7002_v43 = vpop.f32.mrf.mxu2  ;;  %v1353_v54 = vpop.permute.xlu2 %1352  ;;  %v2969_v19 = vld [vmem:[#allocation2 + $0x88] sm:$0xff] }
 0x235   : > { %3270 = vst [vmem:[#allocation2 + $0x3a0] sm:$0xff] %v3110_v50  ;;  %v2390_v18 = vpop.f32.mrf.mxu0  ;;  %v2490_v53 = vpop.f32.mrf.mxu1  ;;  %v2563_v13 = vadd.f32 %v6743_v41, %v1353_v54  ;;  %v845_v41 = vld [vmem:[%s8110_s2 + $0x410] sm:$0xff] }
 0x236   : > { %v2391_v49 = vadd.f32 %v2390_v18, %v6392_v24  ;;  %v2491_v52 = vadd.f32 %v2490_v53, %v6864_v6  ;;  %v1303_v7 = vpop.permute.xlu1 %1302  ;;  %3287 = vst [vmem:[#allocation2 + $0x358] sm:$0xff] %v3127_v34  ;;  %v1298_v30 = vpop.permute.xlu0 %1297  ;;  %v846_v24 = vld [vmem:[%s8110_s2 + $0x418] sm:$0xff] }
 0x237   : > { %v2538_v57 = vadd.f32 %v6465_v16, %v1303_v7  ;;  %3286 = vst [vmem:[#allocation2 + $0x338] sm:$0xff] %v3126_v21  ;;  %v2536_v17 = vadd.f32 %v6442_v59, %v1298_v30  ;;  %v2820_v6 = vmax.f32 %v2563_v13, 0.0  ;;  %v844_v16 = vld [vmem:[%s8110_s2 + $0x408] sm:$0xff]  ;;  %v5437_v21 = vld [vmem:[%s8109_s1 + $0x278] sm:$0xff]  ;;  %v2952_v30 = vld [vmem:[#allocation2 + $0x400] sm:$0xff] }
 0x238   : > { %v2751_v32 = vmax.f32 %v2391_v49, 0.0  ;;  %v2791_v26 = vmax.f32 %v2491_v52, 0.0  ;;  %v7018_v49 = vpop.f32.mrf.mxu3 }
 0x239   : > { %v2810_v53 = vmax.f32 %v2538_v57, 0.0  ;;  %v2809_v59 = vmax.f32 %v2536_v17, 0.0  ;;  %v3140_v50 = vadd.f32 %v2980_v22, %v2820_v6  ;;  %v2912_v57 = vld [vmem:[#allocation2 + $0xb8] sm:$0xff] }
 0x23a   : > { %v3071_v52 = vadd.f32 %v2911_v33, %v2751_v32  ;;  %v3111_v1 = vadd.f32 %v2951_v40, %v2791_v26  ;;  %1532 = vperm.xlu2 %5565, %v846_v24   ;;  %5354 = vmatmul.msk.bf16.gmra.mxu3 %vm2075_vm0, %v5437_v21  ;;  %v2983_v24 = vld [vmem:[#allocation2 + $0x68] sm:$0xff]  ;;  %v2973_v6 = vld [vmem:[#allocation2 + $0x278] sm:$0xff] }
 0x23b   : > { %v3130_v63 = vadd.f32 %v2970_v11, %v2810_v53  ;;  %v3129_v35 = vadd.f32 %v2969_v19, %v2809_v59  ;;  %1527 = vperm.xlu1 %5564, %v845_v41   ;;  %1522 = vperm.xlu0 %5563, %v844_v16   ;;  %3300 = vst [vmem:[#allocation2 + $0x130] sm:$0xff] %v3140_v50  ;;  %v2972_v41 = vld [vmem:[#allocation2 + $0x2d0] sm:$0xff] }
 0x23c   : > { %3231 = vst [vmem:[#allocation2 + $0x390] sm:$0xff] %v3071_v52  ;;  %v7020_v34 = vpop.f32.mrf.mxu2  ;;  %v1368_v40 = vpop.permute.xlu2 %1367 }
 0x23d   : > { %3271 = vst [vmem:[#allocation2 + $0x80] sm:$0xff] %v3111_v1  ;;  %v2392_v18 = vpop.f32.mrf.mxu0  ;;  %v2492_v54 = vpop.f32.mrf.mxu1  ;;  %v2571_v32 = vadd.f32 %v6826_v60, %v1368_v40  ;;  %v848_v60 = vld [vmem:[%s8110_s2 + $0x428] sm:$0xff] }
 0x23e   : > { %v2393_v7 = vadd.f32 %v2392_v18, %v6512_v62  ;;  %v2493_v33 = vadd.f32 %v2492_v54, %v6862_v55  ;;  %v1318_v13 = vpop.permute.xlu1 %1317  ;;  %3290 = vst [vmem:[#allocation2 + $0x448] sm:$0xff] %v3130_v63  ;;  %v1313_v22 = vpop.permute.xlu0 %1312  ;;  %v849_v55 = vld [vmem:[%s8110_s2 + $0x430] sm:$0xff] }
 0x23f   : > { %v2546_v26 = vadd.f32 %v6561_v8, %v1318_v13  ;;  %3289 = vst [vmem:[#allocation2 + $0x88] sm:$0xff] %v3129_v35  ;;  %v2543_v62 = vadd.f32 %v6525_v15, %v1313_v22  ;;  %v2823_v53 = vmax.f32 %v2571_v32, 0.0  ;;  %v847_v8 = vld [vmem:[%s8110_s2 + $0x420] sm:$0xff]  ;;  %v2913_v13 = vld [vmem:[#allocation2 + $0x270] sm:$0xff] }
 0x240   : > { %v2752_v11 = vmax.f32 %v2393_v7, 0.0  ;;  %v2792_v17 = vmax.f32 %v2493_v33, 0.0  ;;  %v7040_v16 = vpop.f32.mrf.mxu3 }
 0x241   : > { %v2813_v19 = vmax.f32 %v2546_v26, 0.0  ;;  %v2812_v15 = vmax.f32 %v2543_v62, 0.0  ;;  %v3143_v59 = vadd.f32 %v2983_v24, %v2823_v53  ;;  %v2976_v24 = vld [vmem:[#allocation2 + $0x138] sm:$0xff] }
 0x242   : > { %v3072_v52 = vadd.f32 %v2912_v57, %v2752_v11  ;;  %v3112_v1 = vadd.f32 %v2952_v30, %v2792_v17  ;;  %1547 = vperm.xlu2 %5565, %v849_v55   ;;  %v2953_v57 = vld [vmem:[#allocation2 + $0x228] sm:$0xff]  ;;  %v2986_v17 = vld [vmem:[#allocation2 + $0x2e0] sm:$0xff]  ;;  %v2975_v55 = vld [vmem:[#allocation2 + $0x90] sm:$0xff] }
 0x243   : > { %v3133_v50 = vadd.f32 %v2973_v6, %v2813_v19  ;;  %v3132_v63 = vadd.f32 %v2972_v41, %v2812_v15  ;;  %1542 = vperm.xlu1 %5564, %v848_v60   ;;  %1537 = vperm.xlu0 %5563, %v847_v8   ;;  %3303 = vst [vmem:[#allocation2 + $0x68] sm:$0xff] %v3143_v59 }
 0x244   : > { %3232 = vst [vmem:[#allocation2 + $0xb8] sm:$0xff] %v3072_v52  ;;  %v7042_v35 = vpop.f32.mrf.mxu2  ;;  %v1383_v33 = vpop.permute.xlu2 %1382 }
 0x245   : > { %3272 = vst [vmem:[#allocation2 + $0x400] sm:$0xff] %v3112_v1  ;;  %v2395_v21 = vpop.f32.mrf.mxu0  ;;  %v2495_v18 = vpop.f32.mrf.mxu1  ;;  %v2578_v30 = vadd.f32 %v6904_v37, %v1383_v33  ;;  %v851_v37 = vld [vmem:[%s8110_s2 + $0x440] sm:$0xff] }
 0x246   : > { %v2396_v54 = vadd.f32 %v2395_v21, %v6510_v58  ;;  %v2496_v7 = vadd.f32 %v2495_v18, %v6780_v2  ;;  %v1333_v40 = vpop.permute.xlu1 %1332  ;;  %3293 = vst [vmem:[#allocation2 + $0x278] sm:$0xff] %v3133_v50  ;;  %v1328_v26 = vpop.permute.xlu0 %1327  ;;  %v852_v58 = vld [vmem:[%s8110_s2 + $0x448] sm:$0xff] }
 0x247   : > { %v2553_v32 = vadd.f32 %v6637_v14, %v1333_v40  ;;  %3292 = vst [vmem:[#allocation2 + $0x2d0] sm:$0xff] %v3132_v63  ;;  %v2551_v6 = vadd.f32 %v6617_v51, %v1328_v26  ;;  %v2826_v2 = vmax.f32 %v2578_v30, 0.0  ;;  %v850_v14 = vld [vmem:[%s8110_s2 + $0x438] sm:$0xff]  ;;  %v2979_v26 = vld [vmem:[#allocation2 + $0x3e0] sm:$0xff] }
 0x248   : > { %v2753_v22 = vmax.f32 %v2396_v54, 0.0  ;;  %v2793_v11 = vmax.f32 %v2496_v7, 0.0  ;;  %v7058_v53 = vpop.f32.mrf.mxu3  ;;  %v2914_v54 = vld [vmem:[#allocation2 + $0x480] sm:$0xff]  ;;  %v2954_v7 = vld [vmem:[#allocation2 + $0x348] sm:$0xff] }
 0x249   : > { %v2816_v62 = vmax.f32 %v2553_v32, 0.0  ;;  %v2815_v51 = vmax.f32 %v2551_v6, 0.0  ;;  %v3146_v60 = vadd.f32 %v2986_v17, %v2826_v2  ;;  %v2989_v32 = vld [vmem:[#allocation2 + $0x3d8] sm:$0xff]  ;;  %v2978_v17 = vld [vmem:[#allocation2 + $0x2c8] sm:$0xff] }
 0x24a   : > { %v3073_v19 = vadd.f32 %v2913_v13, %v2753_v22  ;;  %v3113_v41 = vadd.f32 %v2953_v57, %v2793_v11  ;;  %1562 = vperm.xlu2 %5565, %v852_v58  }
 0x24b   : > { %v3136_v8 = vadd.f32 %v2976_v24, %v2816_v62  ;;  %v3135_v52 = vadd.f32 %v2975_v55, %v2815_v51  ;;  %1557 = vperm.xlu1 %5564, %v851_v37   ;;  %1552 = vperm.xlu0 %5563, %v850_v14   ;;  %3306 = vst [vmem:[#allocation2 + $0x2e0] sm:$0xff] %v3146_v60 }
 0x24c   : > { %3233 = vst [vmem:[#allocation2 + $0x270] sm:$0xff] %v3073_v19  ;;  %v7060_v1 = vpop.f32.mrf.mxu2  ;;  %v1398_v21 = vpop.permute.xlu2 %1397 }
 0x24d   : > { %3273 = vst [vmem:[#allocation2 + $0x228] sm:$0xff] %v3113_v41  ;;  %v2397_v15 = vpop.f32.mrf.mxu0  ;;  %v2497_v59 = vpop.f32.mrf.mxu1  ;;  %v2586_v33 = vadd.f32 %v6980_v28, %v1398_v21  ;;  %v854_v28 = vld [vmem:[%s8110_s2 + $0x458] sm:$0xff] }
 0x24e   : > { %v2398_v50 = vadd.f32 %v2397_v15, %v6421_v45  ;;  %v2498_v63 = vadd.f32 %v2497_v59, %v6891_v48  ;;  %v1348_v18 = vpop.permute.xlu1 %1347  ;;  %3296 = vst [vmem:[#allocation2 + $0x138] sm:$0xff] %v3136_v8  ;;  %v1343_v13 = vpop.permute.xlu0 %1342  ;;  %v855_v45 = vld [vmem:[%s8110_s2 + $0x460] sm:$0xff]  ;;  %v2955_v15 = vld [vmem:[#allocation2 + $0x288] sm:$0xff] }
 0x24f   : > { %v2561_v40 = vadd.f32 %v6724_v56, %v1348_v18  ;;  %3295 = vst [vmem:[#allocation2 + $0x90] sm:$0xff] %v3135_v52  ;;  %v2558_v22 = vadd.f32 %v6689_v10, %v1343_v13  ;;  %v2829_v48 = vmax.f32 %v2586_v33, 0.0  ;;  %v853_v56 = vld [vmem:[%s8110_s2 + $0x450] sm:$0xff]  ;;  %v2915_v52 = vld [vmem:[#allocation2 + $0x1a8] sm:$0xff]  ;;  %v2981_v13 = vld [vmem:[#allocation2 + $0x298] sm:$0xff] }
 0x250   : > { %v2754_v57 = vmax.f32 %v2398_v50, 0.0  ;;  %v2794_v30 = vmax.f32 %v2498_v63, 0.0  ;;  %v7076_v24 = vpop.f32.mrf.mxu3 }
 0x251   : > { %v2819_v11 = vmax.f32 %v2561_v40, 0.0  ;;  %v2818_v10 = vmax.f32 %v2558_v22, 0.0  ;;  %v3149_v2 = vadd.f32 %v2989_v32, %v2829_v48 }
 0x252   : > { %v3074_v6 = vadd.f32 %v2914_v54, %v2754_v57  ;;  %v3114_v58 = vadd.f32 %v2954_v7, %v2794_v30  ;;  %1577 = vperm.xlu2 %5565, %v855_v45   ;;  %v2992_v54 = vld [vmem:[#allocation2 + $0x98] sm:$0xff] }
 0x253   : > { %v3139_v62 = vadd.f32 %v2979_v26, %v2819_v11  ;;  %v3138_v55 = vadd.f32 %v2978_v17, %v2818_v10  ;;  %1572 = vperm.xlu1 %5564, %v854_v28   ;;  %1567 = vperm.xlu0 %5563, %v853_v56   ;;  %3309 = vst [vmem:[#allocation2 + $0x3d8] sm:$0xff] %v3149_v2  ;;  %v2982_v7 = vld [vmem:[#allocation2 + $0x2f8] sm:$0xff]  ;;  %v2916_v10 = vld [vmem:[#allocation2 + $0x2a0] sm:$0xff] }
 0x254   : > { %3234 = vst [vmem:[#allocation2 + $0x480] sm:$0xff] %v3074_v6  ;;  %v7078_v37 = vpop.f32.mrf.mxu2  ;;  %v1413_v60 = vpop.permute.xlu2 %1412  ;;  %v2956_v2 = vld [vmem:[#allocation2 + $0x460] sm:$0xff] }
 0x255   : > { %3274 = vst [vmem:[#allocation2 + $0x348] sm:$0xff] %v3114_v58  ;;  %v2400_v14 = vpop.f32.mrf.mxu0  ;;  %v2500_v19 = vpop.f32.mrf.mxu1  ;;  %v2593_v59 = vadd.f32 %v7042_v35, %v1413_v60  ;;  %v857_v35 = vld [vmem:[%s8110_s2 + $0x470] sm:$0xff]  ;;  %v2985_v60 = vld [vmem:[#allocation2 + $0x368] sm:$0xff] }
 0x256   : > { %v2401_v41 = vadd.f32 %v2400_v14, %v6542_v44  ;;  %v2501_v51 = vadd.f32 %v2500_v19, %v6888_v46  ;;  %v1363_v8 = vpop.permute.xlu1 %1362  ;;  %3299 = vst [vmem:[#allocation2 + $0x3e0] sm:$0xff] %v3139_v62  ;;  %v1358_v63 = vpop.permute.xlu0 %1357  ;;  %v858_v44 = vld [vmem:[%s8110_s2 + $0x478] sm:$0xff] }
 0x257   : > { %v2568_v50 = vadd.f32 %v6793_v61, %v1363_v8  ;;  %3298 = vst [vmem:[#allocation2 + $0x2c8] sm:$0xff] %v3138_v55  ;;  %v2566_v33 = vadd.f32 %v6776_v20, %v1358_v63  ;;  %v2832_v46 = vmax.f32 %v2593_v59, 0.0  ;;  %v856_v61 = vld [vmem:[%s8110_s2 + $0x468] sm:$0xff] }
 0x258   : > { %v2755_v21 = vmax.f32 %v2401_v41, 0.0  ;;  %v2795_v18 = vmax.f32 %v2501_v51, 0.0  ;;  %v7094_v57 = vpop.f32.mrf.mxu3  ;;  %v2995_v51 = vld [vmem:[#allocation2 + $0x420] sm:$0xff]  ;;  %v860_v59 = vld [vmem:[%s8110_s2 + $0x488] sm:$0xff] }
 0x259   : > { %v2822_v40 = vmax.f32 %v2568_v50, 0.0  ;;  %v2821_v20 = vmax.f32 %v2566_v33, 0.0  ;;  %v3152_v26 = vadd.f32 %v2992_v54, %v2832_v46 }
 0x25a   : > { %v3075_v30 = vadd.f32 %v2915_v52, %v2755_v21  ;;  %v3115_v32 = vadd.f32 %v2955_v15, %v2795_v18  ;;  %1592 = vperm.xlu2 %5565, %v858_v44   ;;  %v2984_v15 = vld [vmem:[#allocation2 + $0x3c0] sm:$0xff] }
 0x25b   : > { %v3142_v22 = vadd.f32 %v2982_v7, %v2822_v40  ;;  %v3141_v45 = vadd.f32 %v2981_v13, %v2821_v20  ;;  %1587 = vperm.xlu1 %5564, %v857_v35   ;;  %1582 = vperm.xlu0 %5563, %v856_v61   ;;  %3312 = vst [vmem:[#allocation2 + $0x98] sm:$0xff] %v3152_v26 }
 0x25c   : > { %3235 = vst [vmem:[#allocation2 + $0x1a8] sm:$0xff] %v3075_v30  ;;  %v2600_v48 = vpop.f32.mrf.mxu2  ;;  %v1428_v6 = vpop.permute.xlu2 %1427  ;;  %v2917_v30 = vld [vmem:[#allocation2 + $0x38] sm:$0xff] }
 0x25d   : > { %3275 = vst [vmem:[#allocation2 + $0x288] sm:$0xff] %v3115_v32  ;;  %v2402_v11 = vpop.f32.mrf.mxu0  ;;  %v2502_v17 = vpop.f32.mrf.mxu1  ;;  %v2601_v62 = vadd.f32 %v2600_v48, %v1428_v6  ;;  %v2957_v32 = vld [vmem:[#allocation2 + $0x4b0] sm:$0xff]  ;;  %v2988_v48 = vld [vmem:[#allocation2 + $0x1c8] sm:$0xff] }
 0x25e   : > { %v2403_v28 = vadd.f32 %v2402_v11, %v6539_v38  ;;  %v2503_v56 = vadd.f32 %v2502_v17, %v6805_v12  ;;  %v1378_v58 = vpop.permute.xlu1 %1377  ;;  %3302 = vst [vmem:[#allocation2 + $0x2f8] sm:$0xff] %v3142_v22  ;;  %v1373_v14 = vpop.permute.xlu0 %1372  ;;  %v861_v38 = vld [vmem:[%s8110_s2 + $0x490] sm:$0xff] }
 0x25f   : > { %v2576_v55 = vadd.f32 %v6883_v36, %v1378_v58  ;;  %3301 = vst [vmem:[#allocation2 + $0x298] sm:$0xff] %v3141_v45  ;;  %v2573_v8 = vadd.f32 %v6848_v27, %v1373_v14  ;;  %v2835_v12 = vmax.f32 %v2601_v62, 0.0  ;;  %v859_v36 = vld [vmem:[%s8110_s2 + $0x480] sm:$0xff] }
 0x260   : > { %v2756_v19 = vmax.f32 %v2403_v28, 0.0  ;;  %v2796_v41 = vmax.f32 %v2503_v56, 0.0  ;;  %v7109_v50 = vpop.f32.mrf.mxu3  ;;  %v863_v28 = vld [vmem:[%s8110_s2 + $0x4a0] sm:$0xff] }
 0x261   : > { %v2825_v52 = vmax.f32 %v2576_v55, 0.0  ;;  %v2824_v27 = vmax.f32 %v2573_v8, 0.0  ;;  %v3155_v18 = vadd.f32 %v2995_v51, %v2835_v12  ;;  %v2918_v8 = vld [vmem:[#allocation2 + $0x3f8] sm:$0xff] }
 0x262   : > { %v3076_v63 = vadd.f32 %v2916_v10, %v2756_v19  ;;  %v3116_v21 = vadd.f32 %v2956_v2, %v2796_v41  ;;  %1607 = vperm.xlu2 %5565, %v861_v38   ;;  %v2958_v38 = vld [vmem:[#allocation2 + $0x1d8] sm:$0xff] }
 0x263   : > { %v3145_v54 = vadd.f32 %v2985_v60, %v2825_v52  ;;  %v3144_v7 = vadd.f32 %v2984_v15, %v2824_v27  ;;  %1602 = vperm.xlu1 %5564, %v860_v59   ;;  %1597 = vperm.xlu0 %5563, %v859_v36   ;;  %3315 = vst [vmem:[#allocation2 + $0x420] sm:$0xff] %v3155_v18  ;;  %v2991_v36 = vld [vmem:[#allocation2 + $0xe8] sm:$0xff]  ;;  %v866_v27 = vld [vmem:[%s8110_s2 + $0x4b8] sm:$0xff] }
 0x264   : > { %3236 = vst [vmem:[#allocation2 + $0x2a0] sm:$0xff] %v3076_v63  ;;  %v7111_v33 = vpop.f32.mrf.mxu2  ;;  %v1443_v35 = vpop.permute.xlu2 %1442 }
 0x265   : > { %3276 = vst [vmem:[#allocation2 + $0x460] sm:$0xff] %v3116_v21  ;;  %v2405_v44 = vpop.f32.mrf.mxu0  ;;  %v2505_v46 = vpop.f32.mrf.mxu1 }
 0x266   : > { %v2406_v40 = vadd.f32 %v2405_v44, %v6448_v0  ;;  %v2506_v13 = vadd.f32 %v2505_v46, %v6920_v25  ;;  %v1393_v61 = vpop.permute.xlu1 %1392  ;;  %3305 = vst [vmem:[#allocation2 + $0x368] sm:$0xff] %v3145_v54  ;;  %v1388_v26 = vpop.permute.xlu0 %1387  ;;  %v864_v0 = vld [vmem:[%s8110_s2 + $0x4a8] sm:$0xff] }
 0x267   : > { %v2583_v20 = vadd.f32 %v6960_v5, %v1393_v61  ;;  %3304 = vst [vmem:[#allocation2 + $0x3c0] sm:$0xff] %v3144_v7  ;;  %v2581_v11 = vadd.f32 %v6936_v4, %v1388_v26  ;;  %v2987_v25 = vld [vmem:[#allocation2 + $0x3a8] sm:$0xff]  ;;  %v862_v5 = vld [vmem:[%s8110_s2 + $0x498] sm:$0xff] }
 0x268   : > { %v2757_v22 = vmax.f32 %v2406_v40, 0.0  ;;  %v2797_v45 = vmax.f32 %v2506_v13, 0.0  ;;  %v7126_v10 = vpop.f32.mrf.mxu3 }
 0x269   : > { %v2828_v17 = vmax.f32 %v2583_v20, 0.0  ;;  %v2827_v58 = vmax.f32 %v2581_v11, 0.0  ;;  %v2919_v11 = vld [vmem:[#allocation2 + $0xb0] sm:$0xff] }
 0x26a   : > { %v3077_v56 = vadd.f32 %v2917_v30, %v2757_v22  ;;  %v3117_v6 = vadd.f32 %v2957_v32, %v2797_v45  ;;  %1622 = vperm.xlu2 %5565, %v864_v0   ;;  %v2998_v32 = vld [vmem:[#allocation2 + $0x330] sm:$0xff]  ;;  %v2959_v0 = vld [vmem:[#allocation2 + $0x200] sm:$0xff] }
 0x26b   : > { %v3148_v4 = vadd.f32 %v2988_v48, %v2828_v17  ;;  %v3147_v2 = vadd.f32 %v2987_v25, %v2827_v58  ;;  %1617 = vperm.xlu1 %5564, %v863_v28   ;;  %1612 = vperm.xlu0 %5563, %v862_v5   ;;  %v2994_v5 = vld [vmem:[#allocation2 + $0xc8] sm:$0xff]  ;;  %v2993_v58 = vld [vmem:[#allocation2 + $0x410] sm:$0xff] }
 0x26c   : > { %3237 = vst [vmem:[#allocation2 + $0x38] sm:$0xff] %v3077_v56  ;;  %v7128_v62 = vpop.f32.mrf.mxu2  ;;  %v7132_v51 = vpop.permute.xlu2 %1457 }
 0x26d   : > { %3277 = vst [vmem:[#allocation2 + $0x4b0] sm:$0xff] %v3117_v6  ;;  %v2407_v55 = vpop.f32.mrf.mxu0  ;;  %v2507_v14 = vpop.f32.mrf.mxu1 }
 0x26e   : > { %3308 = vst [vmem:[#allocation2 + $0x1c8] sm:$0xff] %v3148_v4  ;;  %v2408_v19 = vadd.f32 %v2407_v55, %v6570_v42  ;;  %v2508_v41 = vadd.f32 %v2507_v14, %v6917_v23  ;;  %v1408_v60 = vpop.permute.xlu1 %1407  ;;  %v1403_v52 = vpop.permute.xlu0 %1402  ;;  %v867_v42 = vld [vmem:[%s8110_s2 + $0x4c0] sm:$0xff]  ;;  %v2990_v23 = vld [vmem:[#allocation2 + $0x408] sm:$0xff]  ;;  %v869_v4 = vld [vmem:[%s8110_s2 + $0x4d0] sm:$0xff] }
 0x26f   : > { %3307 = vst [vmem:[#allocation2 + $0x3a8] sm:$0xff] %v3147_v2  ;;  %v2591_v12 = vadd.f32 %v7020_v34, %v1408_v60  ;;  %v2588_v63 = vadd.f32 %v7002_v43, %v1403_v52  ;;  %v865_v34 = vld [vmem:[%s8110_s2 + $0x4b0] sm:$0xff] }
 0x270   : > { %v2758_v15 = vmax.f32 %v2408_v19, 0.0  ;;  %v2798_v59 = vmax.f32 %v2508_v41, 0.0  ;;  %v7145_v40 = vpop.f32.mrf.mxu3 }
 0x271   : > { %v2831_v21 = vmax.f32 %v2591_v12, 0.0  ;;  %v2830_v7 = vmax.f32 %v2588_v63, 0.0  ;;  %v8159_v63 = vld [vmem:[#allocation15_spill] sm:$0xff] }
 0x272   : > { %v3078_v18 = vadd.f32 %v2918_v8, %v2758_v15  ;;  %v3118_v54 = vadd.f32 %v2958_v38, %v2798_v59  ;;  %1637 = vperm.xlu2 %5565, %v867_v42   ;;  %v2920_v59 = vld [vmem:[#allocation2 + $0x320] sm:$0xff] }
 0x273   : > { %v3151_v44 = vadd.f32 %v2991_v36, %v2831_v21  ;;  %v3150_v43 = vadd.f32 %v2990_v23, %v2830_v7  ;;  %1632 = vperm.xlu1 %5564, %v866_v27   ;;  %1627 = vperm.xlu0 %5563, %v865_v34   ;;  %v2960_v36 = vld [vmem:[#allocation2 + $0x50] sm:$0xff] }
 0x274   : > { %3238 = vst [vmem:[#allocation2 + $0x3f8] sm:$0xff] %v3078_v18  ;;  %v2607_v46 = vpop.f32.mrf.mxu2  ;;  %v7149_v22 = vpop.permute.xlu2 %1472  ;;  %v3007_v18 = vld [vmem:[#allocation2 + $0x268] sm:$0xff] }
 0x275   : > { %3278 = vst [vmem:[#allocation2 + $0x1d8] sm:$0xff] %v3118_v54  ;;  %v2608_v13 = vadd.f32 %v2607_v46, %v1443_v35  ;;  %v2410_v61 = vpop.f32.mrf.mxu0  ;;  %v2510_v30 = vpop.f32.mrf.mxu1  ;;  %v2997_v54 = vld [vmem:[#allocation2 + $0x290] sm:$0xff]  ;;  %v2996_v46 = vld [vmem:[#allocation2 + $0x28] sm:$0xff] }
 0x276   : > { %3311 = vst [vmem:[#allocation2 + $0xe8] sm:$0xff] %v3151_v44  ;;  %v2411_v20 = vadd.f32 %v2410_v61, %v6567_v29  ;;  %v2511_v26 = vadd.f32 %v2510_v30, %v6831_v9  ;;  %v1423_v45 = vpop.permute.xlu1 %1422  ;;  %v1418_v25 = vpop.permute.xlu0 %1417  ;;  %v870_v29 = vld [vmem:[%s8110_s2 + $0x4d8] sm:$0xff] }
 0x277   : > { %3310 = vst [vmem:[#allocation2 + $0x408] sm:$0xff] %v3150_v43  ;;  %v2838_v48 = vmax.f32 %v2608_v13, 0.0  ;;  %v2598_v17 = vadd.f32 %v7078_v37, %v1423_v45  ;;  %v2596_v56 = vadd.f32 %v7060_v1, %v1418_v25  ;;  %v868_v37 = vld [vmem:[%s8110_s2 + $0x4c8] sm:$0xff]  ;;  %v871_v13 = vld [vmem:[%s8110_s2 + $0x4e0] sm:$0xff] }
 0x278   : > { %v2759_v28 = vmax.f32 %v2411_v20, 0.0  ;;  %v2799_v35 = vmax.f32 %v2511_v26, 0.0  ;;  %v8161_v25 = vld [vmem:[#allocation35_spill] sm:$0xff] }
 0x279   : > { %v3158_v9 = vadd.f32 %v2998_v32, %v2838_v48  ;;  %v2834_v6 = vmax.f32 %v2598_v17, 0.0  ;;  %v2833_v14 = vmax.f32 %v2596_v56, 0.0  ;;  %v2921_v56 = vld [vmem:[#allocation2 + $0x188] sm:$0xff] }
 0x27a   : > { %v3079_v2 = vadd.f32 %v2919_v11, %v2759_v28  ;;  %v3119_v55 = vadd.f32 %v2959_v0, %v2799_v35  ;;  %1652 = vperm.xlu2 %5565, %v870_v29   ;;  %v8160_v0 = vld [vmem:[#allocation19_spill] sm:$0xff]  ;;  %v2961_v29 = vld [vmem:[#allocation2 + $0x1b0] sm:$0xff] }
 0x27b   : > { %3318 = vst [vmem:[#allocation2 + $0x330] sm:$0xff] %v3158_v9  ;;  %v3154_v1 = vadd.f32 %v2994_v5, %v2834_v6  ;;  %v3153_v19 = vadd.f32 %v2993_v58, %v2833_v14  ;;  %1647 = vperm.xlu1 %5564, %v869_v4   ;;  %1642 = vperm.xlu0 %5563, %v868_v37   ;;  %v8162_v9 = vld [vmem:[#allocation20_spill] sm:$0xff]  ;;  %v3000_v14 = vld [vmem:[#allocation2 + $0x490] sm:$0xff] }
 0x27c   : > { %3239 = vst [vmem:[#allocation2 + $0xb0] sm:$0xff] %v3079_v2  ;;  %v2610_v41 = vpop.f32.mrf.mxu2  ;;  %v1488_v52 = vpop.permute.xlu2 %1487 }
 0x27d   : > { %3279 = vst [vmem:[#allocation2 + $0x200] sm:$0xff] %v3119_v55  ;;  %v2412_v60 = vpop.f32.mrf.mxu0  ;;  %v2512_v8 = vpop.f32.mrf.mxu1  ;;  %v2631_v42 = vadd.f32 %v8159_v63, %v1488_v52  ;;  %v3010_v55 = vld [vmem:[#allocation2 + $0x178] sm:$0xff] }
 0x27e   : > { %3314 = vst [vmem:[#allocation2 + $0xc8] sm:$0xff] %v3154_v1  ;;  %v2413_v38 = vadd.f32 %v2412_v60, %v6479_v31  ;;  %v2513_v12 = vadd.f32 %v2512_v8, %v6947_v47  ;;  %v1438_v15 = vpop.permute.xlu1 %1437  ;;  %v1433_v23 = vpop.permute.xlu0 %1432  ;;  %v873_v31 = vld [vmem:[%s8110_s2 + $0x4f0] sm:$0xff]  ;;  %v2999_v8 = vld [vmem:[#allocation2 + $0x118] sm:$0xff] }
 0x27f   : > { %3313 = vst [vmem:[#allocation2 + $0x410] sm:$0xff] %v3153_v19  ;;  %v2606_v21 = vadd.f32 %v7128_v62, %v1438_v15  ;;  %v2603_v7 = vadd.f32 %v7111_v33, %v1433_v23  ;;  %v7170_v47 = vpop.f32.mrf.mxu3  ;;  %v2847_v44 = vmax.f32 %v2631_v42, 0.0  ;;  %v872_v62 = vld [vmem:[%s8110_s2 + $0x4e8] sm:$0xff] }
 0x280   : > { %v2760_v27 = vmax.f32 %v2413_v38, 0.0  ;;  %v2800_v34 = vmax.f32 %v2513_v12, 0.0  ;;  %v874_v38 = vld [vmem:[%s8110_s2 + $0x4f8] sm:$0xff] }
 0x281   : > { %v2837_v43 = vmax.f32 %v2606_v21, 0.0  ;;  %v2836_v33 = vmax.f32 %v2603_v7, 0.0  ;;  %v3167_v32 = vadd.f32 %v3007_v18, %v2847_v44  ;;  %v8163_v18 = vld [vmem:[#allocation18_spill] sm:$0xff]  ;;  %v8164_v7 = vld [vmem:[#allocation31_spill] sm:$0xff] }
 0x282   : > { %v3080_v61 = vadd.f32 %v2920_v59, %v2760_v27  ;;  %v3120_v30 = vadd.f32 %v2960_v36, %v2800_v34  ;;  %1667 = vperm.xlu2 %5565, %v873_v31   ;;  %v3001_v34 = vld [vmem:[#allocation2 + $0x4c8] sm:$0xff] }
 0x283   : > { %v3157_v20 = vadd.f32 %v2997_v54, %v2837_v43  ;;  %v3156_v26 = vadd.f32 %v2996_v46, %v2836_v33  ;;  %1662 = vperm.xlu1 %5564, %v872_v62   ;;  %1657 = vperm.xlu0 %5563, %v871_v13   ;;  %3327 = vst [vmem:[#allocation2 + $0x268] sm:$0xff] %v3167_v32  ;;  %v2922_v62 = vld [vmem:[#allocation2 + $0x210] sm:$0xff] }
 0x284   : > { %3240 = vst [vmem:[#allocation2 + $0x320] sm:$0xff] %v3080_v61  ;;  %v2612_v45 = vpop.f32.mrf.mxu2  ;;  %v1503_v35 = vpop.permute.xlu2 %1502  ;;  %v2962_v13 = vld [vmem:[#allocation2 + $0x150] sm:$0xff]  ;;  %v8165_v61 = vld [vmem:[#allocation24_spill] sm:$0xff] }
 0x285   : > { %3280 = vst [vmem:[#allocation2 + $0x50] sm:$0xff] %v3120_v30  ;;  %v2415_v48 = vpop.f32.mrf.mxu0  ;;  %v2515_v11 = vpop.f32.mrf.mxu1  ;;  %v2638_v6 = vadd.f32 %v8162_v9, %v1503_v35 }
 0x286   : > { %v2416_v17 = vadd.f32 %v2415_v48, %v8160_v0  ;;  %v2516_v28 = vadd.f32 %v2515_v11, %v8161_v25  ;;  %v1453_v5 = vpop.permute.xlu1 %1452  ;;  %3317 = vst [vmem:[#allocation2 + $0x290] sm:$0xff] %v3157_v20  ;;  %v1448_v4 = vpop.permute.xlu0 %1447  ;;  %v3013_v20 = vld [vmem:[#allocation2 + $0x3f0] sm:$0xff] }
 0x287   : > { %v2613_v58 = vadd.f32 %v2612_v45, %v1453_v5  ;;  %3316 = vst [vmem:[#allocation2 + $0x28] sm:$0xff] %v3156_v26  ;;  %v2611_v1 = vadd.f32 %v2610_v41, %v1448_v4  ;;  %v2850_v19 = vmax.f32 %v2638_v6, 0.0  ;;  %v7184_v59 = vpop.f32.mrf.mxu3 }
 0x288   : > { %v2761_v37 = vmax.f32 %v2416_v17, 0.0  ;;  %v2801_v2 = vmax.f32 %v2516_v28, 0.0 }
 0x289   : > { %v2840_v60 = vmax.f32 %v2613_v58, 0.0  ;;  %v2839_v15 = vmax.f32 %v2611_v1, 0.0  ;;  %v3170_v36 = vadd.f32 %v3010_v55, %v2850_v19  ;;  %v2963_v55 = vld [vmem:[#allocation2 + $0x4e8] sm:$0xff] }
 0x28a   : > { %v3081_v12 = vadd.f32 %v2921_v56, %v2761_v37  ;;  %v3121_v52 = vadd.f32 %v2961_v29, %v2801_v2  ;;  %v3002_v56 = vld [vmem:[#allocation2 + $0x120] sm:$0xff]  ;;  %v8166_v29 = vld [vmem:[#allocation14_spill] sm:$0xff]  ;;  %v8168_v19 = vld [vmem:[#allocation13_spill] sm:$0xff] }
 0x28b   : > { %v3160_v63 = vadd.f32 %v3000_v14, %v2840_v60  ;;  %v3159_v42 = vadd.f32 %v2999_v8, %v2839_v15  ;;  %1672 = vperm.xlu0 %5563, %v874_v38   ;;  %3330 = vst [vmem:[#allocation2 + $0x178] sm:$0xff] %v3170_v36  ;;  %v2923_v2 = vld [vmem:[#allocation2 + $0x78] sm:$0xff]  ;;  %v3006_v15 = vld [vmem:[#allocation2 + $0x428] sm:$0xff] }
 0x28c   : > { %3241 = vst [vmem:[#allocation2 + $0x188] sm:$0xff] %v3081_v12  ;;  %v2615_v21 = vpop.f32.mrf.mxu2  ;;  %v1518_v44 = vpop.permute.xlu2 %1517  ;;  %v8167_v14 = vld [vmem:[#allocation27_spill] sm:$0xff]  ;;  %v8169_v36 = vld [vmem:[#allocation12_spill] sm:$0xff] }
 0x28d   : > { %3281 = vst [vmem:[#allocation2 + $0x1b0] sm:$0xff] %v3121_v52  ;;  %v2616_v41 = vadd.f32 %v2615_v21, %v7132_v51  ;;  %v2417_v23 = vpop.f32.mrf.mxu0  ;;  %v2517_v27 = vpop.f32.mrf.mxu1  ;;  %v2646_v30 = vadd.f32 %v8165_v61, %v1518_v44  ;;  %v3016_v52 = vld [vmem:[#allocation2 + $0x1b8] sm:$0xff]  ;;  %v8170_v61 = vld [vmem:[#allocation21_spill] sm:$0xff] }
 0x28e   : > { %v2418_v54 = vadd.f32 %v2417_v23, %v8163_v18  ;;  %v2518_v31 = vadd.f32 %v2517_v27, %v8164_v7  ;;  %v1468_v43 = vpop.permute.xlu1 %1467  ;;  %3320 = vst [vmem:[#allocation2 + $0x490] sm:$0xff] %v3160_v63  ;;  %v1463_v33 = vpop.permute.xlu0 %1462 }
 0x28f   : > { %v2841_v46 = vmax.f32 %v2616_v41, 0.0  ;;  %3319 = vst [vmem:[#allocation2 + $0x118] sm:$0xff] %v3159_v42  ;;  %v2853_v45 = vmax.f32 %v2646_v30, 0.0  ;;  %v7190_v25 = vpop.f32.mrf.mxu3 }
 0x290   : > { %v2762_v32 = vmax.f32 %v2418_v54, 0.0  ;;  %v2802_v51 = vmax.f32 %v2518_v31, 0.0 }
 0x291   : > { %v3161_v26 = vadd.f32 %v3001_v34, %v2841_v46  ;;  %v3173_v0 = vadd.f32 %v3013_v20, %v2853_v45  ;;  %v2964_v45 = vld [vmem:[#allocation2 + $0x190] sm:$0xff] }
 0x292   : > { %v3082_v48 = vadd.f32 %v2922_v62, %v2762_v32  ;;  %v3122_v11 = vadd.f32 %v2962_v13, %v2802_v51  ;;  %v3003_v13 = vld [vmem:[#allocation2 + $0x1d0] sm:$0xff] }
 0x293   : > { %3321 = vst [vmem:[#allocation2 + $0x4c8] sm:$0xff] %v3161_v26  ;;  %v2924_v26 = vld [vmem:[#allocation2 + $0x20] sm:$0xff] }
 0x294   : > { %3242 = vst [vmem:[#allocation2 + $0x210] sm:$0xff] %v3082_v48  ;;  %v2617_v17 = vpop.f32.mrf.mxu2  ;;  %v1533_v58 = vpop.permute.xlu2 %1532  ;;  %v8171_v48 = vld [vmem:[#allocation30_spill] sm:$0xff] }
 0x295   : > { %3282 = vst [vmem:[#allocation2 + $0x150] sm:$0xff] %v3122_v11  ;;  %v2618_v28 = vadd.f32 %v2617_v17, %v1463_v33  ;;  %v2420_v35 = vpop.f32.mrf.mxu0  ;;  %v2520_v5 = vpop.f32.mrf.mxu1  ;;  %v2653_v1 = vadd.f32 %v8167_v14, %v1533_v58 }
 0x296   : > { %3333 = vst [vmem:[#allocation2 + $0x3f0] sm:$0xff] %v3173_v0  ;;  %v2421_v9 = vadd.f32 %v2420_v35, %v8166_v29  ;;  %v2521_v6 = vadd.f32 %v2520_v5, %v6967_v39  ;;  %v1483_v4 = vpop.permute.xlu1 %1482  ;;  %v1478_v8 = vpop.permute.xlu0 %1477  ;;  %v3005_v39 = vld [vmem:[#allocation2 + $0xa8] sm:$0xff]  ;;  %v3009_v29 = vld [vmem:[#allocation2 + $0x4b8] sm:$0xff] }
 0x297   : > { %v2842_v37 = vmax.f32 %v2618_v28, 0.0  ;;  %v2628_v60 = vadd.f32 %v8168_v19, %v1483_v4  ;;  %v2626_v63 = vadd.f32 %v8169_v36, %v1478_v8  ;;  %v2856_v21 = vmax.f32 %v2653_v1, 0.0  ;;  %v8172_v0 = vld [vmem:[#allocation17_spill] sm:$0xff] }
 0x298   : > { %v2763_v38 = vmax.f32 %v2421_v9, 0.0  ;;  %v2803_v12 = vmax.f32 %v2521_v6, 0.0  ;;  %v8173_v9 = vld [vmem:[#allocation16_spill] sm:$0xff] }
 0x299   : > { %v3162_v42 = vadd.f32 %v3002_v56, %v2842_v37  ;;  %v2846_v41 = vmax.f32 %v2628_v60, 0.0  ;;  %v2845_v34 = vmax.f32 %v2626_v63, 0.0  ;;  %v3176_v18 = vadd.f32 %v3016_v52, %v2856_v21  ;;  %v3019_v56 = vld [vmem:[#allocation2 + $0x248] sm:$0xff]  ;;  %v3008_v37 = vld [vmem:[#allocation2 + $0x180] sm:$0xff]  ;;  %v8174_v63 = vld [vmem:[#allocation34_spill] sm:$0xff] }
 0x29a   : > { %v3083_v23 = vadd.f32 %v2923_v2, %v2763_v38  ;;  %v3123_v27 = vadd.f32 %v2963_v55, %v2803_v12  ;;  %v3004_v12 = vld [vmem:[#allocation2 + $0x208] sm:$0xff]  ;;  %v8175_v21 = vld [vmem:[#allocation23_spill] sm:$0xff] }
 0x29b   : > { %3322 = vst [vmem:[#allocation2 + $0x120] sm:$0xff] %v3162_v42  ;;  %v3166_v54 = vadd.f32 %v3006_v15, %v2846_v41  ;;  %v3165_v7 = vadd.f32 %v3005_v39, %v2845_v34  ;;  %v8176_v34 = vld [vmem:[#allocation22_spill] sm:$0xff] }
 0x29c   : > { %3243 = vst [vmem:[#allocation2 + $0x78] sm:$0xff] %v3083_v23  ;;  %v2620_v31 = vpop.f32.mrf.mxu2  ;;  %v1548_v32 = vpop.permute.xlu2 %1547  ;;  %v3022_v23 = vld [vmem:[#allocation2 + $0x240] sm:$0xff] }
 0x29d   : > { %3283 = vst [vmem:[#allocation2 + $0x4e8] sm:$0xff] %v3123_v27  ;;  %v2621_v44 = vadd.f32 %v2620_v31, %v1468_v43  ;;  %v2422_v46 = vpop.f32.mrf.mxu0  ;;  %v2522_v62 = vpop.f32.mrf.mxu1  ;;  %v2661_v11 = vadd.f32 %v8171_v48, %v1548_v32  ;;  %v3012_v27 = vld [vmem:[#allocation2 + $0x2f0] sm:$0xff]  ;;  %v3025_v48 = vld [vmem:[#allocation2 + $0x4e0] sm:$0xff] }
 0x29e   : > { %3336 = vst [vmem:[#allocation2 + $0x1b8] sm:$0xff] %v3176_v18  ;;  %v2423_v30 = vadd.f32 %v2422_v46, %v8170_v61  ;;  %v2523_v33 = vadd.f32 %v2522_v62, %v6964_v3  ;;  %v1498_v51 = vpop.permute.xlu1 %1497  ;;  %v1493_v28 = vpop.permute.xlu0 %1492  ;;  %v8177_v32 = vld [vmem:[#allocation38_spill] sm:$0xff] }
 0x29f   : > { %3326 = vst [vmem:[#allocation2 + $0x428] sm:$0xff] %v3166_v54  ;;  %v2843_v20 = vmax.f32 %v2621_v44, 0.0  ;;  %v2636_v17 = vadd.f32 %v8172_v0, %v1498_v51  ;;  %v7201_v43 = vpop.f32.mrf.mxu3  ;;  %v2633_v3 = vadd.f32 %v8173_v9, %v1493_v28  ;;  %v2859_v58 = vmax.f32 %v2661_v11, 0.0  ;;  %v3015_v11 = vld [vmem:[#allocation2 + $0x198] sm:$0xff]  ;;  %v8179_v0 = vld [vmem:[#allocation25_spill] sm:$0xff] }
 0x2a0   : > { %3325 = vst [vmem:[#allocation2 + $0xa8] sm:$0xff] %v3165_v7  ;;  %v2764_v35 = vmax.f32 %v2423_v30, 0.0  ;;  %v2804_v5 = vmax.f32 %v2523_v33, 0.0 }
 0x2a1   : > { %v3163_v6 = vadd.f32 %v3003_v13, %v2843_v20  ;;  %v2849_v4 = vmax.f32 %v2636_v17, 0.0  ;;  %v2848_v14 = vmax.f32 %v2633_v3, 0.0  ;;  %v3179_v1 = vadd.f32 %v3019_v56, %v2859_v58  ;;  %v8178_v20 = vld [vmem:[#allocation26_spill] sm:$0xff] }
 0x2a2   : > { %v3084_v2 = vadd.f32 %v2924_v26, %v2764_v35  ;;  %v3124_v55 = vadd.f32 %v2964_v45, %v2804_v5  ;;  %v3014_v5 = vld [vmem:[#allocation2 + $0x170] sm:$0xff] }
 0x2a3   : > { %3323 = vst [vmem:[#allocation2 + $0x1d0] sm:$0xff] %v3163_v6  ;;  %v3169_v19 = vadd.f32 %v3009_v29, %v2849_v4  ;;  %v3168_v60 = vadd.f32 %v3008_v37, %v2848_v14 }
 0x2a4   : > { %3244 = vst [vmem:[#allocation2 + $0x20] sm:$0xff] %v3084_v2  ;;  %v2622_v8 = vpop.f32.mrf.mxu2  ;;  %v1563_v52 = vpop.permute.xlu2 %1562  ;;  %v8180_v2 = vld [vmem:[#allocation29_spill] sm:$0xff] }
 0x2a5   : > { %3284 = vst [vmem:[#allocation2 + $0x190] sm:$0xff] %v3124_v55  ;;  %v2623_v38 = vadd.f32 %v2622_v8, %v7149_v22  ;;  %v2668_v42 = vadd.f32 %v8174_v63, %v1563_v52  ;;  %v3011_v22 = vld [vmem:[#allocation2 + $0x1e8] sm:$0xff]  ;;  %v3017_v52 = vld [vmem:[#allocation2 + $0xf0] sm:$0xff] }
 0x2a6   : > { %3339 = vst [vmem:[#allocation2 + $0x248] sm:$0xff] %v3179_v1  ;;  %v1513_v15 = vpop.permute.xlu1 %1512  ;;  %v1508_v39 = vpop.permute.xlu0 %1507  ;;  %v3028_v1 = vld [vmem:[#allocation2 + $0x1c0] sm:$0xff] }
 0x2a7   : > { %3329 = vst [vmem:[#allocation2 + $0x4b8] sm:$0xff] %v3169_v19  ;;  %v2844_v36 = vmax.f32 %v2623_v38, 0.0  ;;  %v2643_v41 = vadd.f32 %v8175_v21, %v1513_v15  ;;  %v2641_v18 = vadd.f32 %v8176_v34, %v1508_v39  ;;  %v2862_v7 = vmax.f32 %v2668_v42, 0.0  ;;  %v7208_v44 = vpop.f32.mrf.mxu3  ;;  %v3018_v19 = vld [vmem:[#allocation2 + $0x238] sm:$0xff] }
 0x2a8   : > { %3328 = vst [vmem:[#allocation2 + $0x180] sm:$0xff] %v3168_v60  ;;  %v8181_v60 = vld [vmem:[#allocation28_spill] sm:$0xff] }
 0x2a9   : > { %v3164_v54 = vadd.f32 %v3004_v12, %v2844_v36  ;;  %v2852_v31 = vmax.f32 %v2643_v41, 0.0  ;;  %v2851_v46 = vmax.f32 %v2641_v18, 0.0  ;;  %v3182_v62 = vadd.f32 %v3022_v23, %v2862_v7  ;;  %v8182_v23 = vld [vmem:[#allocation33_spill] sm:$0xff]  ;;  %v3031_v18 = vld [vmem:[#allocation2 + $0x58] sm:$0xff]  ;;  %v8183_v7 = vld [vmem:[#allocation32_spill] sm:$0xff] }
 0x2ab   : > { %3324 = vst [vmem:[#allocation2 + $0x208] sm:$0xff] %v3164_v54  ;;  %v3172_v13 = vadd.f32 %v3012_v27, %v2852_v31  ;;  %v3171_v61 = vadd.f32 %v3011_v22, %v2851_v46  ;;  %v3021_v54 = vld [vmem:[#allocation2 + $0x498] sm:$0xff] }
 0x2ac   : > { %3342 = vst [vmem:[#allocation2 + $0x240] sm:$0xff] %v3182_v62  ;;  %v1578_v30 = vpop.permute.xlu2 %1577  ;;  %v3020_v62 = vld [vmem:[#allocation2 + $0x4d0] sm:$0xff] }
 0x2ad   : > { %3332 = vst [vmem:[#allocation2 + $0x2f0] sm:$0xff] %v3172_v13  ;;  %v2676_v51 = vadd.f32 %v8177_v32, %v1578_v30 }
 0x2ae   : > { %v1528_v33 = vpop.permute.xlu1 %1527  ;;  %3331 = vst [vmem:[#allocation2 + $0x1e8] sm:$0xff] %v3171_v61  ;;  %v1523_v45 = vpop.permute.xlu0 %1522 }
 0x2af   : > { %v2651_v26 = vadd.f32 %v8178_v20, %v1528_v33  ;;  %v2648_v17 = vadd.f32 %v8179_v0, %v1523_v45  ;;  %v2865_v28 = vmax.f32 %v2676_v51, 0.0  ;;  %v7213_v3 = vpop.f32.mrf.mxu3  ;;  %v8184_v20 = vld [vmem:[#allocation37_spill] sm:$0xff]  ;;  %v8185_v0 = vld [vmem:[#allocation36_spill] sm:$0xff] }
 0x2b1   : > { %v2855_v35 = vmax.f32 %v2651_v26, 0.0  ;;  %v2854_v56 = vmax.f32 %v2648_v17, 0.0  ;;  %v3185_v29 = vadd.f32 %v3025_v48, %v2865_v28  ;;  %v3034_v48 = vld [vmem:[#allocation2 + $0x3e8] sm:$0xff] }
 0x2b3   : > { %v3175_v9 = vadd.f32 %v3015_v11, %v2855_v35  ;;  %v3174_v6 = vadd.f32 %v3014_v5, %v2854_v56  ;;  %3345 = vst [vmem:[#allocation2 + $0x4e0] sm:$0xff] %v3185_v29  ;;  %v3024_v11 = vld [vmem:[#allocation2 + $0x2d8] sm:$0xff]  ;;  %v3023_v56 = vld [vmem:[#allocation2 + $0x100] sm:$0xff] }
 0x2b4   : > { %v1593_v58 = vpop.permute.xlu2 %1592 }
 0x2b5   : > { %3335 = vst [vmem:[#allocation2 + $0x198] sm:$0xff] %v3175_v9  ;;  %v2683_v37 = vadd.f32 %v7058_v53, %v1593_v58 }
 0x2b6   : > { %v1543_v4 = vpop.permute.xlu1 %1542  ;;  %3334 = vst [vmem:[#allocation2 + $0x170] sm:$0xff] %v3174_v6  ;;  %v1538_v14 = vpop.permute.xlu0 %1537 }
 0x2b7   : > { %v2658_v55 = vadd.f32 %v8180_v2, %v1543_v4  ;;  %v2656_v8 = vadd.f32 %v8181_v60, %v1538_v14  ;;  %v2868_v38 = vmax.f32 %v2683_v37, 0.0  ;;  %v2712_v21 = vpop.f32.mrf.mxu3  ;;  %v3037_v14 = vld [vmem:[#allocation2 + $0x148] sm:$0xff] }
 0x2b9   : > { %v2858_v12 = vmax.f32 %v2658_v55, 0.0  ;;  %v2857_v15 = vmax.f32 %v2656_v8, 0.0  ;;  %v3188_v36 = vadd.f32 %v3028_v1, %v2868_v38  ;;  %v3027_v1 = vld [vmem:[#allocation2 + $0x2b8] sm:$0xff]  ;;  %v3026_v38 = vld [vmem:[#allocation2 + $0x30] sm:$0xff] }
 0x2bb   : > { %v3178_v63 = vadd.f32 %v3018_v19, %v2858_v12  ;;  %v3177_v42 = vadd.f32 %v3017_v52, %v2857_v15  ;;  %3348 = vst [vmem:[#allocation2 + $0x1c0] sm:$0xff] %v3188_v36 }
 0x2bc   : > { %v1608_v41 = vpop.permute.xlu2 %1607 }
 0x2bd   : > { %3338 = vst [vmem:[#allocation2 + $0x238] sm:$0xff] %v3178_v63  ;;  %v2691_v53 = vadd.f32 %v7109_v50, %v1608_v41 }
 0x2be   : > { %v1558_v39 = vpop.permute.xlu1 %1557  ;;  %3337 = vst [vmem:[#allocation2 + $0xf0] sm:$0xff] %v3177_v42  ;;  %v1553_v34 = vpop.permute.xlu0 %1552 }
 0x2bf   : > { %v2666_v27 = vadd.f32 %v8182_v23, %v1558_v39  ;;  %v2663_v31 = vadd.f32 %v8183_v7, %v1553_v34  ;;  %v2871_v22 = vmax.f32 %v2691_v53, 0.0  ;;  %v7224_v28 = vpop.f32.mrf.mxu3  ;;  %v3040_v53 = vld [vmem:[#allocation2 + $0x430] sm:$0xff] }
 0x2c1   : > { %v2861_v46 = vmax.f32 %v2666_v27, 0.0  ;;  %v2860_v13 = vmax.f32 %v2663_v31, 0.0  ;;  %v3191_v61 = vadd.f32 %v3031_v18, %v2871_v22  ;;  %v3029_v18 = vld [vmem:[#allocation2 + $0x468] sm:$0xff] }
 0x2c3   : > { %v3181_v30 = vadd.f32 %v3021_v54, %v2861_v46  ;;  %v3180_v33 = vadd.f32 %v3020_v62, %v2860_v13  ;;  %3351 = vst [vmem:[#allocation2 + $0x58] sm:$0xff] %v3191_v61 }
 0x2c4   : > { %v1623_v32 = vpop.permute.xlu2 %1622 }
 0x2c5   : > { %3341 = vst [vmem:[#allocation2 + $0x498] sm:$0xff] %v3181_v30  ;;  %v2698_v50 = vadd.f32 %v7170_v47, %v1623_v32  ;;  %v3033_v30 = vld [vmem:[#allocation2 + $0x340] sm:$0xff] }
 0x2c6   : > { %v1573_v51 = vpop.permute.xlu1 %1572  ;;  %3340 = vst [vmem:[#allocation2 + $0x4d0] sm:$0xff] %v3180_v33  ;;  %v1568_v45 = vpop.permute.xlu0 %1567  ;;  %v3043_v33 = vld [vmem:[#allocation2 + $0x110] sm:$0xff] }
 0x2c7   : > { %v2673_v26 = vadd.f32 %v8184_v20, %v1573_v51  ;;  %v2671_v17 = vadd.f32 %v8185_v0, %v1568_v45  ;;  %v2874_v35 = vmax.f32 %v2698_v50, 0.0  ;;  %v7229_v52 = vpop.f32.mrf.mxu3  ;;  %v3032_v51 = vld [vmem:[#allocation2 + $0x3d0] sm:$0xff] }
 0x2c9   : > { %v2864_v5 = vmax.f32 %v2673_v26, 0.0  ;;  %v2863_v29 = vmax.f32 %v2671_v17, 0.0  ;;  %v3194_v9 = vadd.f32 %v3034_v48, %v2874_v35  ;;  %v3036_v17 = vld [vmem:[#allocation2 + $0x470] sm:$0xff] }
 0x2cb   : > { %v3184_v6 = vadd.f32 %v3024_v11, %v2864_v5  ;;  %v3183_v58 = vadd.f32 %v3023_v56, %v2863_v29  ;;  %3354 = vst [vmem:[#allocation2 + $0x3e8] sm:$0xff] %v3194_v9 }
 0x2cc   : > { %v1638_v4 = vpop.permute.xlu2 %1637 }
 0x2cd   : > { %3344 = vst [vmem:[#allocation2 + $0x2d8] sm:$0xff] %v3184_v6  ;;  %v2706_v37 = vadd.f32 %v7201_v43, %v1638_v4 }
 0x2ce   : > { %v1588_v47 = vpop.permute.xlu1 %1587  ;;  %3343 = vst [vmem:[#allocation2 + $0x100] sm:$0xff] %v3183_v58  ;;  %v1583_v55 = vpop.permute.xlu0 %1582 }
 0x2cf   : > { %v2681_v2 = vadd.f32 %v7040_v16, %v1588_v47  ;;  %v2678_v19 = vadd.f32 %v7018_v49, %v1583_v55  ;;  %v2877_v60 = vmax.f32 %v2706_v37, 0.0  ;;  %v3030_v49 = vld [vmem:[#allocation2 + $0xe0] sm:$0xff]  ;;  %v2720_v46 = vpop.f32.mrf.mxu3  ;;  %v3039_v47 = vld [vmem:[#allocation2 + $0x230] sm:$0xff] }
 0x2d1   : > { %v2867_v8 = vmax.f32 %v2681_v2, 0.0  ;;  %v2866_v12 = vmax.f32 %v2678_v19, 0.0  ;;  %v3197_v15 = vadd.f32 %v3037_v14, %v2877_v60 }
 0x2d3   : > { %v3187_v36 = vadd.f32 %v3027_v1, %v2867_v8  ;;  %v3186_v63 = vadd.f32 %v3026_v38, %v2866_v12  ;;  %3357 = vst [vmem:[#allocation2 + $0x148] sm:$0xff] %v3197_v15  ;;  %v3042_v8 = vld [vmem:[#allocation2 + $0xc0] sm:$0xff] }
 0x2d4   : > { %v1653_v42 = vpop.permute.xlu2 %1652 }
 0x2d5   : > { %3347 = vst [vmem:[#allocation2 + $0x2b8] sm:$0xff] %v3187_v36  ;;  %v2713_v16 = vadd.f32 %v2712_v21, %v1653_v42 }
 0x2d6   : > { %v1603_v43 = vpop.permute.xlu1 %1602  ;;  %3346 = vst [vmem:[#allocation2 + $0x30] sm:$0xff] %v3186_v63  ;;  %v1598_v39 = vpop.permute.xlu0 %1597 }
 0x2d7   : > { %v2688_v41 = vadd.f32 %v7094_v57, %v1603_v43  ;;  %v2686_v23 = vadd.f32 %v7076_v24, %v1598_v39  ;;  %v2880_v27 = vmax.f32 %v2713_v16, 0.0  ;;  %v3044_v16 = vld [vmem:[#allocation2 + $0x1a0] sm:$0xff] }
 0x2d9   : > { %v2870_v34 = vmax.f32 %v2688_v41, 0.0  ;;  %v2869_v54 = vmax.f32 %v2686_v23, 0.0  ;;  %v3200_v7 = vadd.f32 %v3040_v53, %v2880_v27 }
 0x2db   : > { %v3190_v31 = vadd.f32 %v3030_v49, %v2870_v34  ;;  %v3189_v22 = vadd.f32 %v3029_v18, %v2869_v54  ;;  %3360 = vst [vmem:[#allocation2 + $0x430] sm:$0xff] %v3200_v7 }
 0x2dc   : > { %v1668_v62 = vpop.permute.xlu2 %1667 }
 0x2dd   : > { %3350 = vst [vmem:[#allocation2 + $0xe0] sm:$0xff] %v3190_v31  ;;  %v2721_v61 = vadd.f32 %v2720_v46, %v1668_v62 }
 0x2de   : > { %v1618_v13 = vpop.permute.xlu1 %1617  ;;  %3349 = vst [vmem:[#allocation2 + $0x468] sm:$0xff] %v3189_v22  ;;  %v1613_v21 = vpop.permute.xlu0 %1612 }
 0x2df   : > { %v2696_v57 = vadd.f32 %v7145_v40, %v1618_v13  ;;  %v2693_v24 = vadd.f32 %v7126_v10, %v1613_v21  ;;  %v2883_v50 = vmax.f32 %v2721_v61, 0.0  ;;  %v3035_v10 = vld [vmem:[#allocation2 + $0x128] sm:$0xff] }
 0x2e1   : > { %v2873_v32 = vmax.f32 %v2696_v57, 0.0  ;;  %v2872_v20 = vmax.f32 %v2693_v24, 0.0  ;;  %v3203_v45 = vadd.f32 %v3043_v33, %v2883_v50 }
 0x2e3   : > { %v3193_v26 = vadd.f32 %v3033_v30, %v2873_v32  ;;  %v3192_v48 = vadd.f32 %v3032_v51, %v2872_v20  ;;  %3363 = vst [vmem:[#allocation2 + $0x110] sm:$0xff] %v3203_v45 }
 0x2e5   : > { %3353 = vst [vmem:[#allocation2 + $0x340] sm:$0xff] %v3193_v26 }
 0x2e6   : > { %3352 = vst [vmem:[#allocation2 + $0x3d0] sm:$0xff] %v3192_v48  ;;  %v1633_v11 = vpop.permute.xlu1 %1632  ;;  %v1628_v40 = vpop.permute.xlu0 %1627 }
 0x2e7   : > { %v2703_v0 = vadd.f32 %v7190_v25, %v1633_v11  ;;  %v2701_v35 = vadd.f32 %v7184_v59, %v1628_v40  ;;  %v3038_v25 = vld [vmem:[#allocation2 + $0xd0] sm:$0xff] }
 0x2e9   : > { %v2876_v5 = vmax.f32 %v2703_v0, 0.0  ;;  %v2875_v56 = vmax.f32 %v2701_v35, 0.0 }
 0x2eb   : > { %v3196_v29 = vadd.f32 %v3036_v17, %v2876_v5  ;;  %v3195_v9 = vadd.f32 %v3035_v10, %v2875_v56 }
 0x2ed   : > { %3356 = vst [vmem:[#allocation2 + $0x470] sm:$0xff] %v3196_v29 }
 0x2ee   : > { %3355 = vst [vmem:[#allocation2 + $0x128] sm:$0xff] %v3195_v9  ;;  %v1648_v6 = vpop.permute.xlu1 %1647  ;;  %v1643_v4 = vpop.permute.xlu0 %1642 }
 0x2ef   : > { %v2711_v58 = vadd.f32 %v7213_v3, %v1648_v6  ;;  %v2708_v37 = vadd.f32 %v7208_v44, %v1643_v4  ;;  %v3041_v3 = vld [vmem:[#allocation2 + $0x370] sm:$0xff]  ;;  %v2722_v44 = vpop.f32.mrf.mxu3 }
 0x2f1   : > { %v2879_v2 = vmax.f32 %v2711_v58, 0.0  ;;  %v2878_v55 = vmax.f32 %v2708_v37, 0.0 }
 0x2f3   : > { %v3199_v14 = vadd.f32 %v3039_v47, %v2879_v2  ;;  %v3198_v1 = vadd.f32 %v3038_v25, %v2878_v55 }
 0x2f5   : > { %3359 = vst [vmem:[#allocation2 + $0x230] sm:$0xff] %v3199_v14 }
 0x2f6   : > { %3358 = vst [vmem:[#allocation2 + $0xd0] sm:$0xff] %v3198_v1  ;;  %v1663_v59 = vpop.permute.xlu1 %1662  ;;  %v1658_v60 = vpop.permute.xlu0 %1657 }
 0x2f7   : > { %v2718_v19 = vadd.f32 %v7229_v52, %v1663_v59  ;;  %v2716_v38 = vadd.f32 %v7224_v28, %v1658_v60 }
 0x2f9   : > { %v2882_v12 = vmax.f32 %v2718_v19, 0.0  ;;  %v2881_v15 = vmax.f32 %v2716_v38, 0.0 }
 0x2fb   : > { %v3202_v36 = vadd.f32 %v3042_v8, %v2882_v12  ;;  %v3201_v63 = vadd.f32 %v3041_v3, %v2881_v15 }
 0x2fd   : > { %3362 = vst [vmem:[#allocation2 + $0xc0] sm:$0xff] %v3202_v36 }
 0x2fe   : > { %3361 = vst [vmem:[#allocation2 + $0x370] sm:$0xff] %v3201_v63  ;;  %v1673_v42 = vpop.permute.xlu0 %1672 }
 0x2ff   : > { %v2723_v43 = vadd.f32 %v2722_v44, %v1673_v42 }
 0x301   : > { %v2884_v41 = vmax.f32 %v2723_v43, 0.0  ;;  %3368 = sbr.rel (%p5355_p4) target bundleno = 1941 (0x795), region = 102 }
 0x303   : > { %v3204_v39 = vadd.f32 %v3044_v16, %v2884_v41 }
 0x305   : > { %3364 = vst [vmem:[#allocation2 + $0x1a0] sm:$0xff] %v3204_v39 }
 0x306   : > { %v3400_v52 = vld [vmem:[#allocation2 + $0x2a0] sm:$0xff]  ;;  %v3399_v53 = vld [vmem:[#allocation2 + $0x1a8] sm:$0xff]  ;;  %v3383_v27 = vld [vmem:[#allocation2 + $0x398] sm:$0xff]  ;;  %vm4803_vm1 = vcmask 64512   ;;  %vm4846_vm2 = vcmask 57344  }
 0x307   : > { %v3384_v28 = vld [vmem:[#allocation2 + $0x60] sm:$0xff]  ;;  %3591 = vadd.xlane.f32.xlu1 %v3400_v52  ;;  %3589 = vadd.xlane.f32.xlu2 %v3399_v53  ;;  %v3382_v49 = vld [vmem:[#allocation2 + $0x2a8] sm:$0xff]  ;;  %v3397_v34 = vld [vmem:[#allocation2 + $0x270] sm:$0xff] }
 0x308   : > { %3559 = vadd.xlane.f32.xlu0 %v3384_v28  ;;  %v3381_v23 = vld [vmem:[#allocation2 + $0x308] sm:$0xff]  ;;  %v3380_v18 = vld [vmem:[#allocation2 + $0x4f0] sm:$0xff]  ;;  %v3398_v54 = vld [vmem:[#allocation2 + $0x480] sm:$0xff] }
 0x309   : > { %v3396_v7 = vld [vmem:[#allocation2 + $0xb8] sm:$0xff]  ;;  %v3378_v31 = vld [vmem:[#allocation2 + $0x488] sm:$0xff]  ;;  %v3379_v22 = vld [vmem:[#allocation2 + $0x310] sm:$0xff] }
 0x30a   : > { %v3394_v46 = vld [vmem:[#allocation2 + $0x4a0] sm:$0xff]  ;;  %v3377_v62 = vld [vmem:[#allocation2 + $0x108] sm:$0xff]  ;;  %v3395_v13 = vld [vmem:[#allocation2 + $0x390] sm:$0xff] }
 0x30b   : > { %v3393_v57 = vld [vmem:[#allocation2 + $0x458] sm:$0xff]  ;;  %v3375_v21 = vld [vmem:[#allocation2 + $0x440] sm:$0xff]  ;;  %v3374_v24 = vld [vmem:[#allocation2 + $0x328] sm:$0xff] }
 0x30c   : > { %v3376_v61 = vld [vmem:[#allocation2 + $0x378] sm:$0xff]  ;;  %v3392_v33 = vld [vmem:[#allocation2 + $0x380] sm:$0xff]  ;;  %v3373_v50 = vld [vmem:[#allocation2 + $0x450] sm:$0xff] }
 0x30d   : > { %v3391_v30 = vld [vmem:[#allocation2 + $0x4f8] sm:$0xff]  ;;  %v3390_v32 = vld [vmem:[#allocation2 + $0x360] sm:$0xff]  ;;  %v3369_v11 = vld [vmem:[#allocation2 + $0x2b0] sm:$0xff] }
 0x30e   : > { %v3372_v51 = vld [vmem:[#allocation2 + $0x18] sm:$0xff]  ;;  %v3388_v20 = vld [vmem:[#allocation2 + $0x220] sm:$0xff]  ;;  %v3370_v0 = vld [vmem:[#allocation2 + $0x3b0] sm:$0xff] }
 0x30f   : > { %3555 = vadd.xlane.f32.xlu1 %v3382_v49  ;;  %3553 = vadd.xlane.f32.xlu2 %v3381_v23  ;;  %v3371_v26 = vld [vmem:[#allocation2 + $0x4d8] sm:$0xff]  ;;  %v3389_v45 = vld [vmem:[#allocation2 + $0xa0] sm:$0xff]  ;;  %v3386_v35 = vld [vmem:[#allocation2 + $0x388] sm:$0xff] }
 0x310   : > { %3557 = vadd.xlane.f32.xlu0 %v3383_v27  ;;  %v3387_v48 = vld [vmem:[#allocation2 + $0x160] sm:$0xff]  ;;  %v3385_v40 = vld [vmem:[#allocation2 + $0xd8] sm:$0xff]  ;;  %v3415_v56 = vld [vmem:[#allocation2 + $0x4a8] sm:$0xff] }
 0x311   : > { %v3416_v17 = vld [vmem:[#allocation2 + $0x218] sm:$0xff]  ;;  %v3432_v5 = vld [vmem:[#allocation2 + $0x1e0] sm:$0xff]  ;;  %v3413_v29 = vld [vmem:[#allocation2 + $0x48] sm:$0xff] }
 0x312   : > { %v3414_v10 = vld [vmem:[#allocation2 + $0x300] sm:$0xff]  ;;  %v3430_v9 = vld [vmem:[#allocation2 + $0x350] sm:$0xff]  ;;  %v3411_v4 = vld [vmem:[#allocation2 + $0x3b8] sm:$0xff] }
 0x313   : > { %v3431_v6 = vld [vmem:[#allocation2 + $0x250] sm:$0xff]  ;;  %v3429_v58 = vld [vmem:[#allocation2 + $0x40] sm:$0xff]  ;;  %v3412_v47 = vld [vmem:[#allocation2 + $0x8] sm:$0xff] }
 0x314   : > { %v3448_v37 = vld [vmem:[#allocation2 + $0x190] sm:$0xff]  ;;  %v3410_v2 = vld [vmem:[#allocation2 + $0x280] sm:$0xff]  ;;  %v3447_v59 = vld [vmem:[#allocation2 + $0x4e8] sm:$0xff] }
 0x315   : > { %v3428_v25 = vld [vmem:[#allocation2 + $0x4c0] sm:$0xff]  ;;  %v3464_v19 = vld [vmem:[#allocation2 + $0x130] sm:$0xff]  ;;  %v3426_v3 = vld [vmem:[#allocation2 + $0xf8] sm:$0xff] }
 0x316   : > { %v3427_v60 = vld [vmem:[#allocation2 + $0x70] sm:$0xff]  ;;  %v3409_v36 = vld [vmem:[#allocation2 + $0x3c8] sm:$0xff]  ;;  %v3408_v43 = vld [vmem:[#allocation2 + $0x20] sm:$0xff] }
 0x317   : > { %3585 = vadd.xlane.f32.xlu2 %v3397_v34  ;;  %3551 = vadd.xlane.f32.xlu1 %v3380_v18  ;;  %v3446_v15 = vld [vmem:[#allocation2 + $0x150] sm:$0xff]  ;;  %v3425_v16 = vld [vmem:[#allocation2 + $0x140] sm:$0xff]  ;;  %v3462_v28 = vld [vmem:[#allocation2 + $0x2c8] sm:$0xff] }
 0x318   : > { %3587 = vadd.xlane.f32.xlu0 %v3398_v54  ;;  %v3463_v41 = vld [vmem:[#allocation2 + $0x3e0] sm:$0xff]  ;;  %v3407_v49 = vld [vmem:[#allocation2 + $0x78] sm:$0xff]  ;;  %v3445_v23 = vld [vmem:[#allocation2 + $0x1b0] sm:$0xff] }
 0x319   : > { %v3444_v54 = vld [vmem:[#allocation2 + $0x50] sm:$0xff] }
 0x31f   : > { %3583 = vadd.xlane.f32.xlu1 %v3396_v7  ;;  %3547 = vadd.xlane.f32.xlu2 %v3378_v31  ;;  %v3461_v7 = vld [vmem:[#allocation2 + $0x438] sm:$0xff]  ;;  %v3424_v31 = vld [vmem:[#allocation2 + $0x2c0] sm:$0xff] }
 0x320   : > { %3549 = vadd.xlane.f32.xlu0 %v3379_v22 }
 0x327   : > { %3579 = vadd.xlane.f32.xlu2 %v3394_v46  ;;  %3545 = vadd.xlane.f32.xlu1 %v3377_v62 }
 0x328   : > { %3581 = vadd.xlane.f32.xlu0 %v3395_v13  ;;  %v3423_v13 = vld [vmem:[#allocation2 + $0x260] sm:$0xff] }
 0x32f   : > { %3577 = vadd.xlane.f32.xlu1 %v3393_v57  ;;  %3541 = vadd.xlane.f32.xlu2 %v3375_v21  ;;  %v3443_v57 = vld [vmem:[#allocation2 + $0x200] sm:$0xff]  ;;  %v3406_v21 = vld [vmem:[#allocation2 + $0x210] sm:$0xff] }
 0x330   : > { %3543 = vadd.xlane.f32.xlu0 %v3376_v61 }
 0x337   : > { %3573 = vadd.xlane.f32.xlu2 %v3391_v30  ;;  %3539 = vadd.xlane.f32.xlu1 %v3374_v24 }
 0x338   : > { %3575 = vadd.xlane.f32.xlu0 %v3392_v33  ;;  %v3405_v33 = vld [vmem:[#allocation2 + $0x188] sm:$0xff] }
 0x33f   : > { %3571 = vadd.xlane.f32.xlu1 %v3390_v32  ;;  %3535 = vadd.xlane.f32.xlu2 %v3372_v51  ;;  %v3422_v32 = vld [vmem:[#allocation2 + $0x258] sm:$0xff] }
 0x340   : > { %3537 = vadd.xlane.f32.xlu0 %v3373_v50  ;;  %v3460_v51 = vld [vmem:[#allocation2 + $0x138] sm:$0xff] }
 0x347   : > { %3567 = vadd.xlane.f32.xlu2 %v3388_v20  ;;  %3533 = vadd.xlane.f32.xlu1 %v3371_v26 }
 0x348   : > { %3569 = vadd.xlane.f32.xlu0 %v3389_v45  ;;  %v3459_v45 = vld [vmem:[#allocation2 + $0x90] sm:$0xff] }
 0x34f   : > { %3565 = vadd.xlane.f32.xlu1 %v3387_v48  ;;  %3529 = vadd.xlane.f32.xlu2 %v3369_v11  ;;  %v3404_v48 = vld [vmem:[#allocation2 + $0x320] sm:$0xff]  ;;  %v3442_v11 = vld [vmem:[#allocation2 + $0x1d8] sm:$0xff] }
 0x350   : > { %3531 = vadd.xlane.f32.xlu0 %v3370_v0 }
 0x357   : > { %3561 = vadd.xlane.f32.xlu1 %v3385_v40  ;;  %3623 = vadd.xlane.f32.xlu2 %v3416_v17 }
 0x358   : > { %3563 = vadd.xlane.f32.xlu0 %v3386_v35  ;;  %v3441_v35 = vld [vmem:[#allocation2 + $0x4b0] sm:$0xff] }
 0x35f   : > { %3655 = vadd.xlane.f32.xlu1 %v3432_v5  ;;  %3619 = vadd.xlane.f32.xlu2 %v3414_v10  ;;  %v3458_v5 = vld [vmem:[#allocation2 + $0x478] sm:$0xff]  ;;  %v3421_v10 = vld [vmem:[#allocation2 + $0x2e8] sm:$0xff] }
 0x360   : > { %3621 = vadd.xlane.f32.xlu0 %v3415_v56 }
 0x367   : > { %3617 = vadd.xlane.f32.xlu1 %v3413_v29  ;;  %3651 = vadd.xlane.f32.xlu2 %v3430_v9 }
 0x368   : > { %3653 = vadd.xlane.f32.xlu0 %v3431_v6  ;;  %v3420_v6 = vld [vmem:[#allocation2 + $0x1f8] sm:$0xff] }
 0x36f   : > { %3649 = vadd.xlane.f32.xlu1 %v3429_v58  ;;  %3613 = vadd.xlane.f32.xlu2 %v3411_v4  ;;  %v3440_v58 = vld [vmem:[#allocation2 + $0x460] sm:$0xff]  ;;  %v3403_v4 = vld [vmem:[#allocation2 + $0xb0] sm:$0xff] }
 0x370   : > { %3615 = vadd.xlane.f32.xlu0 %v3412_v47 }
 0x377   : > { %3687 = vadd.xlane.f32.xlu1 %v3448_v37  ;;  %3611 = vadd.xlane.f32.xlu2 %v3410_v2 }
 0x378   : > { %3647 = vadd.xlane.f32.xlu0 %v3428_v25  ;;  %v3402_v25 = vld [vmem:[#allocation2 + $0x3f8] sm:$0xff] }
 0x37a   : > { %v3592_v55 = vpop.xlane.xlu1 %3591  ;;  %v3590_v14 = vpop.xlane.xlu2 %3589 }
 0x37b   : > { %v3560_v1 = vpop.xlane.xlu0 %3559  ;;  %4090 = vmatpush.msra.mxu1 %v3592_v55  ;;  %5457 = vmatpush.msra.mxu3 %v3592_v55  ;;  %v3419_v55 = vld [vmem:[#allocation2 + $0x10] sm:$0xff] }
 0x37c   : > { %4025 = vmatpush.msra.mxu0 %v3560_v1  ;;  %5441 = vmatpush.msra.mxu2 %v3560_v1 }
 0x37d   : > { %4091 = vmatpush.msra.mxu1 %v3590_v14  ;;  %5458 = vmatpush.msra.mxu3 %v3590_v14  ;;  %v3457_v14 = vld [vmem:[#allocation2 + $0x278] sm:$0xff] }
 0x37f   : > { %3685 = vadd.xlane.f32.xlu1 %v3447_v59  ;;  %3719 = vadd.xlane.f32.xlu2 %v3464_v19 }
 0x380   : > { %3645 = vadd.xlane.f32.xlu0 %v3427_v60  ;;  %v3456_v60 = vld [vmem:[#allocation2 + $0x2d0] sm:$0xff] }
 0x382   : > { %v3556_v8 = vpop.xlane.xlu1 %3555  ;;  %v3554_v38 = vpop.xlane.xlu2 %3553 }
 0x383   : > { %v3558_v12 = vpop.xlane.xlu0 %3557 }
 0x384   : > { %4026 = vmatpush.msra.mxu0 %v3558_v12  ;;  %5442 = vmatpush.msra.mxu2 %v3558_v12 }
 0x386   : > { %4027 = vmatpush.msra.mxu0 %v3556_v8  ;;  %5443 = vmatpush.msra.mxu2 %v3556_v8  ;;  %v3401_v8 = vld [vmem:[#allocation2 + $0x38] sm:$0xff] }
 0x387   : > { %3643 = vadd.xlane.f32.xlu1 %v3426_v3  ;;  %3683 = vadd.xlane.f32.xlu2 %v3446_v15 }
 0x388   : > { %3609 = vadd.xlane.f32.xlu0 %v3409_v36  ;;  %4028 = vmatpush.msra.mxu0 %v3554_v38  ;;  %v3438_v36 = vld [vmem:[#allocation2 + $0x348] sm:$0xff] }
 0x389   : > { %5444 = vmatpush.msra.mxu2 %v3554_v38  ;;  %v3439_v38 = vld [vmem:[#allocation2 + $0x288] sm:$0xff] }
 0x38a   : > { %v3586_v63 = vpop.xlane.xlu2 %3585  ;;  %v3552_v44 = vpop.xlane.xlu1 %3551 }
 0x38b   : > { %v3588_v42 = vpop.xlane.xlu0 %3587  ;;  %4029 = vmatpush.msra.mxu0 %v3552_v44  ;;  %5445 = vmatpush.msra.mxu2 %v3552_v44  ;;  %v3418_v44 = vld [vmem:[#allocation2 + $0x1f0] sm:$0xff] }
 0x38c   : > { %4092 = vmatpush.msra.mxu1 %v3588_v42  ;;  %5459 = vmatpush.msra.mxu3 %v3588_v42 }
 0x38e   : > { %4093 = vmatpush.msra.mxu1 %v3586_v63  ;;  %5460 = vmatpush.msra.mxu3 %v3586_v63  ;;  %v3455_v63 = vld [vmem:[#allocation2] sm:$0xff] }
 0x38f   : > { %3607 = vadd.xlane.f32.xlu1 %v3408_v43  ;;  %3641 = vadd.xlane.f32.xlu2 %v3425_v16 }
 0x390   : > { %3717 = vadd.xlane.f32.xlu0 %v3463_v41  ;;  %v3437_v41 = vld [vmem:[#allocation2 + $0x228] sm:$0xff] }
 0x392   : > { %v3584_v39 = vpop.xlane.xlu1 %3583  ;;  %v3548_v52 = vpop.xlane.xlu2 %3547 }
 0x393   : > { %v3550_v53 = vpop.xlane.xlu0 %3549  ;;  %4094 = vmatpush.msra.mxu1 %v3584_v39  ;;  %5461 = vmatpush.msra.mxu3 %v3584_v39  ;;  %v3454_v39 = vld [vmem:[#allocation2 + $0x448] sm:$0xff] }
 0x394   : > { %4030 = vmatpush.msra.mxu0 %v3550_v53  ;;  %5446 = vmatpush.msra.mxu2 %v3550_v53 }
 0x396   : > { %4031 = vmatpush.msra.mxu0 %v3548_v52  ;;  %5447 = vmatpush.msra.mxu2 %v3548_v52  ;;  %v3417_v52 = vld [vmem:[#allocation2 + $0x168] sm:$0xff] }
 0x397   : > { %3715 = vadd.xlane.f32.xlu1 %v3462_v28  ;;  %3605 = vadd.xlane.f32.xlu2 %v3407_v49 }
 0x398   : > { %3681 = vadd.xlane.f32.xlu0 %v3445_v23  ;;  %v3453_v23 = vld [vmem:[#allocation2 + $0x88] sm:$0xff] }
 0x39a   : > { %v3580_v27 = vpop.xlane.xlu2 %3579  ;;  %v3546_v34 = vpop.xlane.xlu1 %3545 }
 0x39b   : > { %v3582_v18 = vpop.xlane.xlu0 %3581  ;;  %4032 = vmatpush.msra.mxu0 %v3546_v34  ;;  %5448 = vmatpush.msra.mxu2 %v3546_v34  ;;  %v3929_v34 = vld [vmem:[%s8111_s3 + $0x280] sm:$0xff] }
 0x39c   : > { %4095 = vmatpush.msra.mxu1 %v3582_v18  ;;  %5462 = vmatpush.msra.mxu3 %v3582_v18  ;;  %v3436_v18 = vld [vmem:[#allocation2 + $0x400] sm:$0xff] }
 0x39e   : > { %4096 = vmatpush.msra.mxu1 %v3580_v27  ;;  %5463 = vmatpush.msra.mxu3 %v3580_v27  ;;  %v3435_v27 = vld [vmem:[#allocation2 + $0x80] sm:$0xff] }
 0x39f   : > { %3679 = vadd.xlane.f32.xlu1 %v3444_v54  ;;  %3713 = vadd.xlane.f32.xlu2 %v3461_v7 }
 0x3a0   : > { %3639 = vadd.xlane.f32.xlu0 %v3424_v31 }
 0x3a2   : > { %v3578_v22 = vpop.xlane.xlu1 %3577  ;;  %v3542_v46 = vpop.xlane.xlu2 %3541 }
 0x3a3   : > { %v3544_v62 = vpop.xlane.xlu0 %3543  ;;  %4097 = vmatpush.msra.mxu1 %v3578_v22  ;;  %5464 = vmatpush.msra.mxu3 %v3578_v22  ;;  %v3434_v22 = vld [vmem:[#allocation2 + $0x3a0] sm:$0xff] }
 0x3a4   : > { %4033 = vmatpush.msra.mxu0 %v3544_v62  ;;  %5449 = vmatpush.msra.mxu2 %v3544_v62  ;;  %v3939_v62 = vld [vmem:[%s8111_s3 + $0x2d0] sm:$0xff] }
 0x3a6   : > { %4034 = vmatpush.msra.mxu0 %v3542_v46  ;;  %5450 = vmatpush.msra.mxu2 %v3542_v46  ;;  %v3451_v46 = vld [vmem:[#allocation2 + $0x358] sm:$0xff] }
 0x3a7   : > { %3637 = vadd.xlane.f32.xlu1 %v3423_v13  ;;  %3677 = vadd.xlane.f32.xlu2 %v3443_v57  ;;  %v3452_v13 = vld [vmem:[#allocation2 + $0x158] sm:$0xff] }
 0x3a8   : > { %3603 = vadd.xlane.f32.xlu0 %v3406_v21 }
 0x3aa   : > { %v3574_v61 = vpop.xlane.xlu2 %3573  ;;  %v3540_v30 = vpop.xlane.xlu1 %3539 }
 0x3ab   : > { %v3576_v24 = vpop.xlane.xlu0 %3575  ;;  %4035 = vmatpush.msra.mxu0 %v3540_v30  ;;  %5451 = vmatpush.msra.mxu2 %v3540_v30  ;;  %v3450_v30 = vld [vmem:[#allocation2 + $0x338] sm:$0xff] }
 0x3ac   : > { %4098 = vmatpush.msra.mxu1 %v3576_v24  ;;  %5465 = vmatpush.msra.mxu3 %v3576_v24  ;;  %v3449_v24 = vld [vmem:[#allocation2 + $0x418] sm:$0xff] }
 0x3ae   : > { %4099 = vmatpush.msra.mxu1 %v3574_v61  ;;  %5466 = vmatpush.msra.mxu3 %v3574_v61 }
 0x3af   : > { %3601 = vadd.xlane.f32.xlu1 %v3405_v33  ;;  %3635 = vadd.xlane.f32.xlu2 %v3422_v32  ;;  %v3949_v33 = vld [vmem:[%s8111_s3 + $0x320] sm:$0xff]  ;;  %v3930_v32 = vld [vmem:[%s8111_s3 + $0x288] sm:$0xff] }
 0x3b0   : > { %3711 = vadd.xlane.f32.xlu0 %v3460_v51  ;;  %v3433_v51 = vld [vmem:[#allocation2 + $0x318] sm:$0xff] }
 0x3b2   : > { %v3572_v50 = vpop.xlane.xlu1 %3571  ;;  %v3536_v20 = vpop.xlane.xlu2 %3535 }
 0x3b3   : > { %v3538_v26 = vpop.xlane.xlu0 %3537  ;;  %4100 = vmatpush.msra.mxu1 %v3572_v50  ;;  %5467 = vmatpush.msra.mxu3 %v3572_v50 }
 0x3b4   : > { %4036 = vmatpush.msra.mxu0 %v3538_v26  ;;  %5452 = vmatpush.msra.mxu2 %v3538_v26 }
 0x3b6   : > { %4037 = vmatpush.msra.mxu0 %v3536_v20  ;;  %5453 = vmatpush.msra.mxu2 %v3536_v20 }
 0x3b7   : > { %3709 = vadd.xlane.f32.xlu1 %v3459_v45  ;;  %3599 = vadd.xlane.f32.xlu2 %v3404_v48  ;;  %v3479_v45 = vld [vmem:[#allocation2 + $0x420] sm:$0xff]  ;;  %v3496_v48 = vld [vmem:[#allocation2 + $0x2f0] sm:$0xff] }
 0x3b8   : > { %3675 = vadd.xlane.f32.xlu0 %v3442_v11  ;;  %v3959_v11 = vld [vmem:[%s8111_s3 + $0x370] sm:$0xff] }
 0x3ba   : > { %v3568_v0 = vpop.xlane.xlu2 %3567  ;;  %v3534_v40 = vpop.xlane.xlu1 %3533 }
 0x3bb   : > { %v3570_v17 = vpop.xlane.xlu0 %3569  ;;  %4038 = vmatpush.msra.mxu0 %v3534_v40  ;;  %5454 = vmatpush.msra.mxu2 %v3534_v40  ;;  %v3480_v40 = vld [vmem:[#allocation2 + $0x28] sm:$0xff] }
 0x3bc   : > { %4101 = vmatpush.msra.mxu1 %v3570_v17  ;;  %5468 = vmatpush.msra.mxu3 %v3570_v17 }
 0x3be   : > { %4102 = vmatpush.msra.mxu1 %v3568_v0  ;;  %5469 = vmatpush.msra.mxu3 %v3568_v0  ;;  %v3940_v0 = vld [vmem:[%s8111_s3 + $0x2d8] sm:$0xff] }
 0x3bf   : > { %3673 = vadd.xlane.f32.xlu1 %v3441_v35  ;;  %3707 = vadd.xlane.f32.xlu2 %v3458_v5 }
 0x3c0   : > { %3633 = vadd.xlane.f32.xlu0 %v3421_v10  ;;  %v3495_v10 = vld [vmem:[#allocation2 + $0x1e8] sm:$0xff] }
 0x3c2   : > { %v3566_v56 = vpop.xlane.xlu1 %3565  ;;  %v3530_v29 = vpop.xlane.xlu2 %3529 }
 0x3c3   : > { %v3532_v9 = vpop.xlane.xlu0 %3531  ;;  %4103 = vmatpush.msra.mxu1 %v3566_v56  ;;  %5470 = vmatpush.msra.mxu3 %v3566_v56  ;;  %v3477_v56 = vld [vmem:[#allocation2 + $0x410] sm:$0xff] }
 0x3c4   : > { %4039 = vmatpush.msra.mxu0 %v3532_v9  ;;  %5455 = vmatpush.msra.mxu2 %v3532_v9  ;;  %v3950_v9 = vld [vmem:[%s8111_s3 + $0x328] sm:$0xff] }
 0x3c6   : > { %4040 = vmatpush.msra.mxu0 %v3530_v29  ;;  %5456 = vmatpush.msra.mxu2 %v3530_v29  ;;  %v3969_v29 = vld [vmem:[%s8111_s3 + $0x3c0] sm:$0xff] }
 0x3c7   : > { %3631 = vadd.xlane.f32.xlu1 %v3420_v6  ;;  %3671 = vadd.xlane.f32.xlu2 %v3440_v58  ;;  %v3478_v6 = vld [vmem:[#allocation2 + $0xc8] sm:$0xff] }
 0x3c8   : > { %3597 = vadd.xlane.f32.xlu0 %v3403_v4  ;;  %4065 = vmatmul.f32.vlgmr.msra.gmra.mxu2 %v3929_v34 }
 0x3ca   : > { %v3562_v47 = vpop.xlane.xlu1 %3561  ;;  %v3624_v37 = vpop.xlane.xlu2 %3623 }
 0x3cb   : > { %v3564_v2 = vpop.xlane.xlu0 %3563  ;;  %4155 = vmatpush.msrb.mxu2 %v3624_v37  ;;  %v3476_v37 = vld [vmem:[#allocation2 + $0x98] sm:$0xff] }
 0x3cc   : > { %4104 = vmatpush.msra.mxu1 %v3564_v2  ;;  %5471 = vmatpush.msra.mxu3 %v3564_v2  ;;  %v3493_v2 = vld [vmem:[#allocation2 + $0x4b8] sm:$0xff] }
 0x3ce   : > { %4105 = vmatpush.msra.mxu1 %v3562_v47  ;;  %5472 = vmatpush.msra.mxu3 %v3562_v47 }
 0x3cf   : > { %3595 = vadd.xlane.f32.xlu1 %v3402_v25  ;;  %3629 = vadd.xlane.f32.xlu2 %v3419_v55  ;;  %v3849_v25 = vld [vmem:[%s8111_s3] sm:$0xff]  ;;  %v3979_v55 = vld [vmem:[%s8111_s3 + $0x410] sm:$0xff] }
 0x3d0   : > { %3705 = vadd.xlane.f32.xlu0 %v3457_v14  ;;  %4068 = vmatmul.f32.gmra.mxu2 %v3939_v62  ;;  %v3960_v14 = vld [vmem:[%s8111_s3 + $0x378] sm:$0xff] }
 0x3d1   : > { %4130 = vmatmul.f32.vlgmr.msra.gmra.mxu3 %v3930_v32  ;;  %4041 = vmatmul.f32.vlgmr.msra.gmra.mxu0 %v3849_v25  ;;  %v3880_v62 = vld [vmem:[%s8111_s3 + $0xf8] sm:$0xff]  ;;  %v3510_v32 = vld [vmem:[#allocation2 + $0x30] sm:$0xff] }
 0x3d2   : > { %v3656_v1 = vpop.xlane.xlu1 %3655  ;;  %v3620_v59 = vpop.xlane.xlu2 %3619  ;;  %v3487_v25 = vld [vmem:[#allocation2 + $0x1d0] sm:$0xff] }
 0x3d3   : > { %v3622_v19 = vpop.xlane.xlu0 %3621  ;;  %4220 = vmatpush.msrb.mxu3 %v3656_v1  ;;  %v3494_v1 = vld [vmem:[#allocation2 + $0x178] sm:$0xff] }
 0x3d4   : > { %4156 = vmatpush.msrb.mxu2 %v3622_v19 }
 0x3d6   : > { %4157 = vmatpush.msrb.mxu2 %v3620_v59  ;;  %v3850_v59 = vld [vmem:[%s8111_s3 + $0x8] sm:$0xff] }
 0x3d7   : > { %3703 = vadd.xlane.f32.xlu1 %v3456_v60  ;;  %3593 = vadd.xlane.f32.xlu2 %v3401_v8 }
 0x3d8   : > { %3669 = vadd.xlane.f32.xlu0 %v3439_v38  ;;  %4071 = vmatmul.f32.gmra.mxu2 %v3949_v33  ;;  %v3492_v38 = vld [vmem:[#allocation2 + $0x180] sm:$0xff]  ;;  %v4000_v33 = vld [vmem:[%s8111_s3 + $0x4b8] sm:$0xff] }
 0x3d9   : > { %4133 = vmatmul.f32.gmra.mxu3 %v3940_v0  ;;  %4106 = vmatmul.f32.vlgmr.msra.gmra.mxu1 %v3850_v59  ;;  %v3489_v0 = vld [vmem:[#allocation2 + $0xa8] sm:$0xff]  ;;  %v3861_v59 = vld [vmem:[%s8111_s3 + $0x60] sm:$0xff] }
 0x3da   : > { %v3618_v12 = vpop.xlane.xlu1 %3617  ;;  %v3652_v3 = vpop.xlane.xlu2 %3651 }
 0x3db   : > { %v3654_v15 = vpop.xlane.xlu0 %3653  ;;  %4158 = vmatpush.msrb.mxu2 %v3618_v12  ;;  %v3512_v12 = vld [vmem:[#allocation2 + $0x1c0] sm:$0xff] }
 0x3dc   : > { %4221 = vmatpush.msrb.mxu3 %v3654_v15  ;;  %v3989_v15 = vld [vmem:[%s8111_s3 + $0x460] sm:$0xff] }
 0x3de   : > { %4222 = vmatpush.msrb.mxu3 %v3652_v3  ;;  %v3859_v3 = vld [vmem:[%s8111_s3 + $0x50] sm:$0xff] }
 0x3df   : > { %3667 = vadd.xlane.f32.xlu1 %v3438_v36  ;;  %3701 = vadd.xlane.f32.xlu2 %v3455_v63  ;;  %v3970_v36 = vld [vmem:[%s8111_s3 + $0x3c8] sm:$0xff] }
 0x3e0   : > { %3627 = vadd.xlane.f32.xlu0 %v3418_v44  ;;  %4074 = vmatmul.f32.gmra.mxu2 %v3959_v11  ;;  %v3475_v63 = vld [vmem:[#allocation2 + $0xe8] sm:$0xff]  ;;  %v3860_v44 = vld [vmem:[%s8111_s3 + $0x58] sm:$0xff]  ;;  %v3899_v11 = vld [vmem:[%s8111_s3 + $0x190] sm:$0xff] }
 0x3e1   : > { %4136 = vmatmul.f32.gmra.mxu3 %v3950_v9  ;;  %4044 = vmatmul.f32.gmra.mxu0 %v3859_v3  ;;  %v3471_v9 = vld [vmem:[#allocation2 + $0x3a8] sm:$0xff]  ;;  %v3507_v3 = vld [vmem:[#allocation2 + $0x100] sm:$0xff] }
 0x3e2   : > { %v3650_v42 = vpop.xlane.xlu1 %3649  ;;  %v3614_v43 = vpop.xlane.xlu2 %3613  ;;  %4109 = vmatmul.f32.gmra.mxu1 %v3860_v44 }
 0x3e3   : > { %v3616_v16 = vpop.xlane.xlu0 %3615  ;;  %4223 = vmatpush.msrb.mxu3 %v3650_v42 }
 0x3e4   : > { %4159 = vmatpush.msrb.mxu2 %v3616_v16 }
 0x3e6   : > { %4160 = vmatpush.msrb.mxu2 %v3614_v43 }
 0x3e7   : > { %3665 = vadd.xlane.f32.xlu1 %v3437_v41  ;;  %3699 = vadd.xlane.f32.xlu2 %v3454_v39  ;;  %v3491_v41 = vld [vmem:[#allocation2 + $0x268] sm:$0xff]  ;;  %v3511_v39 = vld [vmem:[#allocation2 + $0x2b8] sm:$0xff] }
 0x3e8   : > { %3625 = vadd.xlane.f32.xlu0 %v3417_v52  ;;  %4077 = vmatmul.f32.gmra.mxu2 %v3969_v29  ;;  %v3869_v52 = vld [vmem:[%s8111_s3 + $0xa0] sm:$0xff] }
 0x3e9   : > { %4139 = vmatmul.f32.gmra.mxu3 %v3960_v14  ;;  %4047 = vmatmul.f32.gmra.mxu0 %v3869_v52  ;;  %v3909_v29 = vld [vmem:[%s8111_s3 + $0x1e0] sm:$0xff]  ;;  %v3525_v14 = vld [vmem:[#allocation2 + $0x370] sm:$0xff] }
 0x3ea   : > { %v3688_v53 = vpop.xlane.xlu1 %3687  ;;  %v3612_v28 = vpop.xlane.xlu2 %3611 }
 0x3eb   : > { %v3648_v49 = vpop.xlane.xlu0 %3647  ;;  %4161 = vmatpush.msrb.mxu2 %v3612_v28  ;;  %4285 = vmatpush.msrb.mxu0 %v3688_v53  ;;  %v3999_v53 = vld [vmem:[%s8111_s3 + $0x4b0] sm:$0xff]  ;;  %v3980_v28 = vld [vmem:[%s8111_s3 + $0x418] sm:$0xff] }
 0x3ec   : > { %4224 = vmatpush.msrb.mxu3 %v3648_v49  ;;  %v3474_v49 = vld [vmem:[#allocation2 + $0x408] sm:$0xff] }
 0x3ef   : > { %3697 = vadd.xlane.f32.xlu1 %v3453_v23  ;;  %3661 = vadd.xlane.f32.xlu2 %v3435_v27  ;;  %v3870_v23 = vld [vmem:[%s8111_s3 + $0xa8] sm:$0xff] }
 0x3f0   : > { %3663 = vadd.xlane.f32.xlu0 %v3436_v18  ;;  %4080 = vmatmul.f32.gmra.mxu2 %v3979_v55  ;;  %v3919_v55 = vld [vmem:[%s8111_s3 + $0x230] sm:$0xff] }
 0x3f1   : > { %4142 = vmatmul.f32.gmra.mxu3 %v3970_v36  ;;  %4112 = vmatmul.f32.gmra.mxu1 %v3870_v23  ;;  %v3485_v23 = vld [vmem:[#allocation2 + $0x4c8] sm:$0xff] }
 0x3f2   : > { %v3686_v54 = vpop.xlane.xlu1 %3685  ;;  %v3720_v7 = vpop.xlane.xlu2 %3719 }
 0x3f3   : > { %v3646_v31 = vpop.xlane.xlu0 %3645  ;;  %4286 = vmatpush.msrb.mxu0 %v3686_v54  ;;  %4350 = vmatpush.msrb.mxu1 %v3720_v7  ;;  %v3473_v54 = vld [vmem:[#allocation2 + $0x3d8] sm:$0xff]  ;;  %v3490_v7 = vld [vmem:[#allocation2 + $0x428] sm:$0xff] }
 0x3f4   : > { %4225 = vmatpush.msrb.mxu3 %v3646_v31  ;;  %v3879_v31 = vld [vmem:[%s8111_s3 + $0xf0] sm:$0xff] }
 0x3f5   : > { %4050 = vmatmul.f32.gmra.mxu0 %v3879_v31 }
 0x3f7   : > { %3659 = vadd.xlane.f32.xlu1 %v3434_v22  ;;  %3693 = vadd.xlane.f32.xlu2 %v3451_v46  ;;  %v3990_v22 = vld [vmem:[%s8111_s3 + $0x468] sm:$0xff]  ;;  %v3528_v46 = vld [vmem:[#allocation2 + $0x1a0] sm:$0xff] }
 0x3f8   : > { %3695 = vadd.xlane.f32.xlu0 %v3452_v13  ;;  %4083 = vmatmul.f32.gmra.mxu2 %v3989_v15  ;;  %v3871_v15 = vld [vmem:[%s8111_s3 + $0xb0] sm:$0xff] }
 0x3f9   : > { %4145 = vmatmul.f32.gmra.mxu3 %v3980_v28  ;;  %4115 = vmatmul.f32.gmra.mxu1 %v3880_v62  ;;  %v3484_v62 = vld [vmem:[#allocation2 + $0x490] sm:$0xff] }
 0x3fa   : > { %v3644_v57 = vpop.xlane.xlu1 %3643  ;;  %v3684_v21 = vpop.xlane.xlu2 %3683 }
 0x3fb   : > { %v3610_v61 = vpop.xlane.xlu0 %3609  ;;  %4226 = vmatpush.msrb.mxu3 %v3644_v57  ;;  %4287 = vmatpush.msrb.mxu0 %v3684_v21 }
 0x3fc   : > { %4162 = vmatpush.msrb.mxu2 %v3610_v61  ;;  %v3527_v61 = vld [vmem:[#allocation2 + $0x110] sm:$0xff] }
 0x3ff   : > { %3691 = vadd.xlane.f32.xlu1 %v3450_v30  ;;  %3689 = vadd.xlane.f32.xlu2 %v3449_v24  ;;  %v3472_v30 = vld [vmem:[#allocation2 + $0x1c8] sm:$0xff]  ;;  %v3889_v24 = vld [vmem:[%s8111_s3 + $0x140] sm:$0xff] }
 0x400   : > { %3657 = vadd.xlane.f32.xlu0 %v3433_v51  ;;  %4086 = vmatmul.f32.gmra.mxu2 %v3999_v53  ;;  %v3890_v51 = vld [vmem:[%s8111_s3 + $0x148] sm:$0xff] }
 0x401   : > { %4148 = vmatmul.f32.gmra.mxu3 %v3990_v22  ;;  %4053 = vmatmul.f32.gmra.mxu0 %v3889_v24  ;;  %v3862_v53 = vld [vmem:[%s8111_s3 + $0x68] sm:$0xff] }
 0x402   : > { %v3608_v50 = vpop.xlane.xlu1 %3607  ;;  %v3642_v20 = vpop.xlane.xlu2 %3641  ;;  %4118 = vmatmul.f32.gmra.mxu1 %v3890_v51  ;;  %v3521_v51 = vld [vmem:[#allocation2 + $0x148] sm:$0xff] }
 0x403   : > { %v3718_v26 = vpop.xlane.xlu0 %3717  ;;  %4163 = vmatpush.msrb.mxu2 %v3608_v50  ;;  %4227 = vmatpush.msrb.mxu3 %v3642_v20 }
 0x404   : > { %4351 = vmatpush.msrb.mxu1 %v3718_v26 }
 0x407   : > { %3749 = vadd.xlane.f32.xlu1 %v3479_v45  ;;  %3783 = vadd.xlane.f32.xlu2 %v3496_v48  ;;  %v3509_v45 = vld [vmem:[#allocation2 + $0x4e0] sm:$0xff] }
 0x408   : > { %3751 = vadd.xlane.f32.xlu0 %v3480_v40  ;;  %v3526_v48 = vld [vmem:[#allocation2 + $0xc0] sm:$0xff]  ;;  %v3900_v40 = vld [vmem:[%s8111_s3 + $0x198] sm:$0xff] }
 0x409   : > { %4151 = vmatmul.f32.gmra.mxu3 %v4000_v33  ;;  %4056 = vmatmul.f32.gmra.mxu0 %v3899_v11 }
 0x40a   : > { %v3716_v17 = vpop.xlane.xlu1 %3715  ;;  %v3606_v35 = vpop.xlane.xlu2 %3605  ;;  %4121 = vmatmul.f32.gmra.mxu1 %v3900_v40  ;;  %v3863_v40 = vld [vmem:[%s8111_s3 + $0x70] sm:$0xff] }
 0x40b   : > { %v3682_v5 = vpop.xlane.xlu0 %3681  ;;  %4164 = vmatpush.msrb.mxu2 %v3606_v35  ;;  %4352 = vmatpush.msrb.mxu1 %v3716_v17 }
 0x40c   : > { %4288 = vmatpush.msrb.mxu0 %v3682_v5 }
 0x40f   : > { %3781 = vadd.xlane.f32.xlu1 %v3495_v10  ;;  %3745 = vadd.xlane.f32.xlu2 %v3477_v56  ;;  %v3488_v10 = vld [vmem:[#allocation2 + $0x208] sm:$0xff]  ;;  %v3508_v56 = vld [vmem:[#allocation2 + $0x2d8] sm:$0xff] }
 0x410   : > { %3747 = vadd.xlane.f32.xlu0 %v3478_v6  ;;  %v3910_v6 = vld [vmem:[%s8111_s3 + $0x1e8] sm:$0xff] }
 0x411   : > { %4059 = vmatmul.f32.gmra.mxu0 %v3909_v29 }
 0x412   : > { %v3680_v58 = vpop.xlane.xlu1 %3679  ;;  %v3714_v4 = vpop.xlane.xlu2 %3713  ;;  %4124 = vmatmul.f32.gmra.mxu1 %v3910_v6  ;;  %v3902_v6 = vld [vmem:[%s8111_s3 + $0x1a8] sm:$0xff] }
 0x413   : > { %v3640_v47 = vpop.xlane.xlu0 %3639  ;;  %4289 = vmatpush.msrb.mxu0 %v3680_v58  ;;  %4353 = vmatpush.msrb.mxu1 %v3714_v4  ;;  %v3851_v58 = vld [vmem:[%s8111_s3 + $0x10] sm:$0xff] }
 0x414   : > { %4228 = vmatpush.msrb.mxu3 %v3640_v47 }
 0x417   : > { %3743 = vadd.xlane.f32.xlu1 %v3476_v37  ;;  %3777 = vadd.xlane.f32.xlu2 %v3493_v2  ;;  %v3470_v2 = vld [vmem:[#allocation2 + $0x2e0] sm:$0xff] }
 0x418   : > { %3779 = vadd.xlane.f32.xlu0 %v3494_v1  ;;  %v3920_v1 = vld [vmem:[%s8111_s3 + $0x238] sm:$0xff] }
 0x419   : > { %4062 = vmatmul.f32.gmra.mxu0 %v3919_v55  ;;  %v3502_v55 = vld [vmem:[#allocation2 + $0x238] sm:$0xff] }
 0x41a   : > { %v3638_v19 = vpop.xlane.xlu1 %3637  ;;  %v3678_v60 = vpop.xlane.xlu2 %3677  ;;  %4127 = vmatmul.f32.gmra.mxu1 %v3920_v1 }
 0x41b   : > { %v3604_v8 = vpop.xlane.xlu0 %3603  ;;  %4229 = vmatpush.msrb.mxu3 %v3638_v19  ;;  %4290 = vmatpush.msrb.mxu0 %v3678_v60 }
 0x41c   : > { %4165 = vmatpush.msrb.mxu2 %v3604_v8 }
 0x41f   : > { %3775 = vadd.xlane.f32.xlu1 %v3492_v38  ;;  %3815 = vadd.xlane.f32.xlu2 %v3512_v12  ;;  %v3524_v38 = vld [vmem:[#allocation2 + $0x430] sm:$0xff]  ;;  %v3469_v12 = vld [vmem:[#allocation2 + $0x368] sm:$0xff] }
 0x420   : > { %3741 = vadd.xlane.f32.xlu0 %v3475_v63  ;;  %v3852_v63 = vld [vmem:[%s8111_s3 + $0x18] sm:$0xff] }
 0x422   : > { %v3602_v42 = vpop.xlane.xlu1 %3601  ;;  %v3636_v43 = vpop.xlane.xlu2 %3635 }
 0x423   : > { %v3712_v16 = vpop.xlane.xlu0 %3711  ;;  %4166 = vmatpush.msrb.mxu2 %v3602_v42  ;;  %4230 = vmatpush.msrb.mxu3 %v3636_v43  ;;  %v3506_v43 = vld [vmem:[#allocation2 + $0x240] sm:$0xff] }
 0x424   : > { %4354 = vmatpush.msrb.mxu1 %v3712_v16  ;;  %v3523_v16 = vld [vmem:[#allocation2 + $0x230] sm:$0xff] }
 0x427   : > { %3773 = vadd.xlane.f32.xlu1 %v3491_v41  ;;  %3813 = vadd.xlane.f32.xlu2 %v3511_v39  ;;  %v3486_v41 = vld [vmem:[#allocation2 + $0x120] sm:$0xff] }
 0x428   : > { %3739 = vadd.xlane.f32.xlu0 %v3474_v49  ;;  %v3881_v39 = vld [vmem:[%s8111_s3 + $0x100] sm:$0xff] }
 0x42a   : > { %v3710_v27 = vpop.xlane.xlu1 %3709  ;;  %v3600_v34 = vpop.xlane.xlu2 %3599 }
 0x42b   : > { %v3676_v18 = vpop.xlane.xlu0 %3675  ;;  %4167 = vmatpush.msrb.mxu2 %v3600_v34  ;;  %4355 = vmatpush.msrb.mxu1 %v3710_v27  ;;  %v3505_v27 = vld [vmem:[#allocation2 + $0x498] sm:$0xff]  ;;  %v3468_v34 = vld [vmem:[#allocation2 + $0x3c0] sm:$0xff] }
 0x42c   : > { %4291 = vmatpush.msrb.mxu0 %v3676_v18  ;;  %v3891_v18 = vld [vmem:[%s8111_s3 + $0x150] sm:$0xff] }
 0x42f   : > { %3737 = vadd.xlane.f32.xlu1 %v3473_v54  ;;  %3771 = vadd.xlane.f32.xlu2 %v3490_v7  ;;  %v3872_v7 = vld [vmem:[%s8111_s3 + $0xb8] sm:$0xff] }
 0x430   : > { %3847 = vadd.xlane.f32.xlu0 %v3528_v46  ;;  %v3467_v46 = vld [vmem:[#allocation2 + $0x68] sm:$0xff] }
 0x432   : > { %v3674_v13 = vpop.xlane.xlu1 %3673  ;;  %v3708_v57 = vpop.xlane.xlu2 %3707 }
 0x433   : > { %v3634_v21 = vpop.xlane.xlu0 %3633  ;;  %4292 = vmatpush.msrb.mxu0 %v3674_v13  ;;  %4356 = vmatpush.msrb.mxu1 %v3708_v57  ;;  %v3522_v13 = vld [vmem:[#allocation2 + $0xd0] sm:$0xff]  ;;  %v3901_v57 = vld [vmem:[%s8111_s3 + $0x1a0] sm:$0xff] }
 0x434   : > { %4231 = vmatpush.msrb.mxu3 %v3634_v21 }
 0x437   : > { %3845 = vadd.xlane.f32.xlu1 %v3527_v61  ;;  %3735 = vadd.xlane.f32.xlu2 %v3472_v30  ;;  %v3882_v61 = vld [vmem:[%s8111_s3 + $0x108] sm:$0xff]  ;;  %v3853_v30 = vld [vmem:[%s8111_s3 + $0x20] sm:$0xff] }
 0x438   : > { %3811 = vadd.xlane.f32.xlu0 %v3510_v32  ;;  %v3854_v32 = vld [vmem:[%s8111_s3 + $0x28] sm:$0xff] }
 0x43a   : > { %v3632_v50 = vpop.xlane.xlu1 %3631  ;;  %v3672_v20 = vpop.xlane.xlu2 %3671 }
 0x43b   : > { %v3598_v26 = vpop.xlane.xlu0 %3597  ;;  %4232 = vmatpush.msrb.mxu3 %v3632_v50  ;;  %4293 = vmatpush.msrb.mxu0 %v3672_v20  ;;  %v3504_v50 = vld [vmem:[#allocation2 + $0x4d0] sm:$0xff]  ;;  %v3466_v20 = vld [vmem:[#allocation2 + $0x2f8] sm:$0xff] }
 0x43c   : > { %4168 = vmatpush.msrb.mxu2 %v3598_v26 }
 0x43f   : > { %3809 = vadd.xlane.f32.xlu1 %v3509_v45  ;;  %3843 = vadd.xlane.f32.xlu2 %v3526_v48  ;;  %v3911_v45 = vld [vmem:[%s8111_s3 + $0x1f0] sm:$0xff]  ;;  %v3892_v48 = vld [vmem:[%s8111_s3 + $0x158] sm:$0xff] }
 0x440   : > { %3769 = vadd.xlane.f32.xlu0 %v3489_v0 }
 0x442   : > { %v3596_v17 = vpop.xlane.xlu1 %3595  ;;  %v3630_v35 = vpop.xlane.xlu2 %3629 }
 0x443   : > { %v3706_v5 = vpop.xlane.xlu0 %3705  ;;  %4169 = vmatpush.msrb.mxu2 %v3596_v17  ;;  %4233 = vmatpush.msrb.mxu3 %v3630_v35  ;;  %v3864_v17 = vld [vmem:[%s8111_s3 + $0x78] sm:$0xff]  ;;  %v3503_v35 = vld [vmem:[#allocation2 + $0x248] sm:$0xff] }
 0x444   : > { %4357 = vmatpush.msrb.mxu1 %v3706_v5  ;;  %v3483_v5 = vld [vmem:[#allocation2 + $0x118] sm:$0xff] }
 0x447   : > { %3767 = vadd.xlane.f32.xlu1 %v3488_v10  ;;  %3807 = vadd.xlane.f32.xlu2 %v3508_v56  ;;  %v3520_v10 = vld [vmem:[#allocation2 + $0x470] sm:$0xff] }
 0x448   : > { %3733 = vadd.xlane.f32.xlu0 %v3471_v9  ;;  %v3921_v9 = vld [vmem:[%s8111_s3 + $0x240] sm:$0xff] }
 0x44a   : > { %v3704_v4 = vpop.xlane.xlu1 %3703  ;;  %v3594_v47 = vpop.xlane.xlu2 %3593 }
 0x44b   : > { %v3670_v37 = vpop.xlane.xlu0 %3669  ;;  %4170 = vmatpush.msrb.mxu2 %v3594_v47  ;;  %4358 = vmatpush.msrb.mxu1 %v3704_v4  ;;  %v7386_v56 = vpop.f32.mrf.mxu2  ;;  %v3873_v47 = vld [vmem:[%s8111_s3 + $0xc0] sm:$0xff] }
 0x44c   : > { %4294 = vmatpush.msrb.mxu0 %v3670_v37  ;;  %4171 = vmatmul.f32.vlgmr.msrb.gmra.mxu2 %v3851_v58  ;;  %v3874_v37 = vld [vmem:[%s8111_s3 + $0xc8] sm:$0xff] }
 0x44f   : > { %3731 = vadd.xlane.f32.xlu1 %v3470_v2  ;;  %3765 = vadd.xlane.f32.xlu2 %v3487_v25  ;;  %v3482_v2 = vld [vmem:[#allocation2 + $0x330] sm:$0xff]  ;;  %v3465_v25 = vld [vmem:[#allocation2 + $0x298] sm:$0xff] }
 0x450   : > { %3841 = vadd.xlane.f32.xlu0 %v3525_v14 }
 0x452   : > { %v3668_v19 = vpop.xlane.xlu1 %3667  ;;  %v3702_v60 = vpop.xlane.xlu2 %3701 }
 0x453   : > { %v3628_v8 = vpop.xlane.xlu0 %3627  ;;  %4295 = vmatpush.msrb.mxu0 %v3668_v19  ;;  %4359 = vmatpush.msrb.mxu1 %v3702_v60  ;;  %v7400_v14 = vpop.f32.mrf.mxu2  ;;  %v3912_v19 = vld [vmem:[%s8111_s3 + $0x1f8] sm:$0xff] }
 0x454   : > { %4234 = vmatpush.msrb.mxu3 %v3628_v8  ;;  %4174 = vmatmul.f32.gmra.mxu2 %v3861_v59  ;;  %v3931_v59 = vld [vmem:[%s8111_s3 + $0x290] sm:$0xff] }
 0x457   : > { %3839 = vadd.xlane.f32.xlu1 %v3524_v38  ;;  %3729 = vadd.xlane.f32.xlu2 %v3469_v12  ;;  %v3883_v38 = vld [vmem:[%s8111_s3 + $0x110] sm:$0xff]  ;;  %v3884_v12 = vld [vmem:[%s8111_s3 + $0x118] sm:$0xff] }
 0x458   : > { %3805 = vadd.xlane.f32.xlu0 %v3507_v3  ;;  %v3481_v3 = vld [vmem:[#allocation2 + $0x290] sm:$0xff] }
 0x45a   : > { %v3666_v36 = vpop.xlane.xlu1 %3665  ;;  %v3700_v44 = vpop.xlane.xlu2 %3699 }
 0x45b   : > { %v3626_v42 = vpop.xlane.xlu0 %3625  ;;  %4296 = vmatpush.msrb.mxu0 %v3666_v36  ;;  %4360 = vmatpush.msrb.mxu1 %v3700_v44  ;;  %v3501_v36 = vld [vmem:[#allocation2 + $0xf0] sm:$0xff] }
 0x45c   : > { %4235 = vmatpush.msrb.mxu3 %v3626_v42  ;;  %4177 = vmatmul.f32.gmra.mxu2 %v3871_v15  ;;  %v3519_v15 = vld [vmem:[#allocation2 + $0x128] sm:$0xff]  ;;  %v3941_v42 = vld [vmem:[%s8111_s3 + $0x2e0] sm:$0xff] }
 0x45d   : > { %4236 = vmatmul.f32.vlgmr.msrb.gmra.mxu3 %v3852_v63  ;;  %v7414_v63 = vpop.f32.mrf.mxu3 }
 0x45f   : > { %3803 = vadd.xlane.f32.xlu1 %v3506_v43  ;;  %3837 = vadd.xlane.f32.xlu2 %v3523_v16  ;;  %v3922_v43 = vld [vmem:[%s8111_s3 + $0x248] sm:$0xff] }
 0x460   : > { %3763 = vadd.xlane.f32.xlu0 %v3486_v41 }
 0x462   : > { %v3698_v52 = vpop.xlane.xlu1 %3697  ;;  %v3662_v28 = vpop.xlane.xlu2 %3661 }
 0x463   : > { %v3664_v49 = vpop.xlane.xlu0 %3663  ;;  %4361 = vmatpush.msrb.mxu1 %v3698_v52  ;;  %v7425_v52 = vpop.f32.mrf.mxu2 }
 0x464   : > { %4297 = vmatpush.msrb.mxu0 %v3664_v49  ;;  %4180 = vmatmul.f32.gmra.mxu2 %v3881_v39  ;;  %v3893_v39 = vld [vmem:[%s8111_s3 + $0x160] sm:$0xff]  ;;  %v3518_v49 = vld [vmem:[#allocation2 + $0x3e8] sm:$0xff] }
 0x465   : > { %4239 = vmatmul.f32.gmra.mxu3 %v3862_v53  ;;  %v3894_v53 = vld [vmem:[%s8111_s3 + $0x168] sm:$0xff] }
 0x466   : > { %4298 = vmatpush.msrb.mxu0 %v3662_v28  ;;  %v3500_v28 = vld [vmem:[#allocation2 + $0x1b8] sm:$0xff] }
 0x467   : > { %3761 = vadd.xlane.f32.xlu1 %v3485_v23  ;;  %3801 = vadd.xlane.f32.xlu2 %v3505_v27  ;;  %v3517_v23 = vld [vmem:[#allocation2 + $0x340] sm:$0xff]  ;;  %v7430_v27 = vpop.f32.mrf.mxu3 }
 0x468   : > { %3727 = vadd.xlane.f32.xlu0 %v3468_v34 }
 0x46a   : > { %v3660_v54 = vpop.xlane.xlu1 %3659  ;;  %v3694_v31 = vpop.xlane.xlu2 %3693 }
 0x46b   : > { %v3696_v22 = vpop.xlane.xlu0 %3695  ;;  %4299 = vmatpush.msrb.mxu0 %v3660_v54  ;;  %v3932_v54 = vld [vmem:[%s8111_s3 + $0x298] sm:$0xff] }
 0x46c   : > { %4362 = vmatpush.msrb.mxu1 %v3696_v22  ;;  %4183 = vmatmul.f32.gmra.mxu2 %v3891_v18  ;;  %v3951_v18 = vld [vmem:[%s8111_s3 + $0x330] sm:$0xff] }
 0x46d   : > { %4242 = vmatmul.f32.gmra.mxu3 %v3872_v7  ;;  %v3903_v22 = vld [vmem:[%s8111_s3 + $0x1b0] sm:$0xff] }
 0x46e   : > { %4363 = vmatpush.msrb.mxu1 %v3694_v31 }
 0x46f   : > { %3725 = vadd.xlane.f32.xlu1 %v3467_v46  ;;  %3759 = vadd.xlane.f32.xlu2 %v3484_v62  ;;  %v3904_v46 = vld [vmem:[%s8111_s3 + $0x1b8] sm:$0xff]  ;;  %v3516_v62 = vld [vmem:[#allocation2 + $0x3d0] sm:$0xff] }
 0x470   : > { %3835 = vadd.xlane.f32.xlu0 %v3522_v13  ;;  %v3499_v13 = vld [vmem:[#allocation2 + $0x198] sm:$0xff] }
 0x472   : > { %v3692_v21 = vpop.xlane.xlu1 %3691  ;;  %v3690_v24 = vpop.xlane.xlu2 %3689 }
 0x473   : > { %v3658_v33 = vpop.xlane.xlu0 %3657  ;;  %4364 = vmatpush.msrb.mxu1 %v3692_v21  ;;  %v7444_v21 = vpop.f32.mrf.mxu2 }
 0x474   : > { %4300 = vmatpush.msrb.mxu0 %v3658_v33  ;;  %4186 = vmatmul.f32.gmra.mxu2 %v3901_v57  ;;  %v3498_v57 = vld [vmem:[#allocation2 + $0x170] sm:$0xff]  ;;  %v3961_v33 = vld [vmem:[%s8111_s3 + $0x380] sm:$0xff] }
 0x475   : > { %4245 = vmatmul.f32.gmra.mxu3 %v3882_v61  ;;  %4301 = vmatmul.f32.vlgmr.msrb.gmra.mxu0 %v3853_v30  ;;  %v7446_v61 = vpop.f32.mrf.mxu3  ;;  %v7448_v30 = vpop.f32.mrf.mxu0 }
 0x476   : > { %4365 = vmatpush.msrb.mxu1 %v3690_v24 }
 0x477   : > { %4366 = vmatmul.f32.vlgmr.msrb.gmra.mxu1 %v3854_v32  ;;  %3833 = vadd.xlane.f32.xlu1 %v3521_v51  ;;  %v3942_v32 = vld [vmem:[%s8111_s3 + $0x2e8] sm:$0xff] }
 0x478   : > { %3799 = vadd.xlane.f32.xlu0 %v3504_v50  ;;  %3723 = vadd.xlane.f32.xlu2 %v3466_v20  ;;  %v3913_v20 = vld [vmem:[%s8111_s3 + $0x200] sm:$0xff] }
 0x47a   : > { %v3750_v26 = vpop.xlane.xlu1 %3749  ;;  %v3784_v11 = vpop.xlane.xlu2 %3783 }
 0x47b   : > { %v3752_v0 = vpop.xlane.xlu0 %3751  ;;  %4480 = vmatpush.msra.mxu3 %v3784_v11  ;;  %v3515_v11 = vld [vmem:[#allocation2 + $0x58] sm:$0xff] }
 0x47c   : > { %4415 = vmatpush.msra.mxu2 %v3752_v0  ;;  %v3514_v0 = vld [vmem:[#allocation2 + $0xe0] sm:$0xff] }
 0x47d   : > { %4189 = vmatmul.f32.gmra.mxu2 %v3911_v45  ;;  %4248 = vmatmul.f32.gmra.mxu3 %v3892_v48  ;;  %v3914_v45 = vld [vmem:[%s8111_s3 + $0x208] sm:$0xff]  ;;  %v3497_v48 = vld [vmem:[#allocation2 + $0x3f0] sm:$0xff] }
 0x47e   : > { %4304 = vmatmul.f32.gmra.mxu0 %v3863_v40  ;;  %4416 = vmatpush.msra.mxu2 %v3750_v26  ;;  %v7459_v26 = vpop.f32.mrf.mxu1  ;;  %v7464_v40 = vpop.f32.mrf.mxu2 }
 0x47f   : > { %4369 = vmatmul.f32.gmra.mxu1 %v3864_v17  ;;  %3797 = vadd.xlane.f32.xlu1 %v3503_v35  ;;  %v3971_v35 = vld [vmem:[%s8111_s3 + $0x3d0] sm:$0xff] }
 0x480   : > { %3757 = vadd.xlane.f32.xlu0 %v3483_v5  ;;  %3831 = vadd.xlane.f32.xlu2 %v3520_v10  ;;  %v3952_v5 = vld [vmem:[%s8111_s3 + $0x338] sm:$0xff] }
 0x482   : > { %v3782_v29 = vpop.xlane.xlu1 %3781  ;;  %v3746_v58 = vpop.xlane.xlu2 %3745 }
 0x483   : > { %v3748_v4 = vpop.xlane.xlu0 %3747  ;;  %4481 = vmatpush.msra.mxu3 %v3782_v29 }
 0x484   : > { %4417 = vmatpush.msra.mxu2 %v3748_v4  ;;  %v3513_v4 = vld [vmem:[#allocation2 + $0x468] sm:$0xff] }
 0x485   : > { %4192 = vmatmul.f32.gmra.mxu2 %v3921_v9  ;;  %4251 = vmatmul.f32.gmra.mxu3 %v3902_v6  ;;  %v3923_v9 = vld [vmem:[%s8111_s3 + $0x250] sm:$0xff]  ;;  %v7475_v6 = vpop.f32.mrf.mxu0 }
 0x486   : > { %4307 = vmatmul.f32.gmra.mxu0 %v3873_v47  ;;  %4418 = vmatpush.msra.mxu2 %v3746_v58  ;;  %v3924_v58 = vld [vmem:[%s8111_s3 + $0x258] sm:$0xff]  ;;  %v7480_v47 = vpop.f32.mrf.mxu3 }
 0x487   : > { %4372 = vmatmul.f32.gmra.mxu1 %v3874_v37  ;;  %3755 = vadd.xlane.f32.xlu1 %v3482_v2  ;;  %v7482_v37 = vpop.f32.mrf.mxu1  ;;  %v7484_v2 = vpop.f32.mrf.mxu2 }
 0x488   : > { %3721 = vadd.xlane.f32.xlu0 %v3465_v25  ;;  %3795 = vadd.xlane.f32.xlu2 %v3502_v55  ;;  %v3981_v55 = vld [vmem:[%s8111_s3 + $0x420] sm:$0xff] }
 0x48a   : > { %v3744_v1 = vpop.xlane.xlu1 %3743  ;;  %v3778_v60 = vpop.xlane.xlu2 %3777 }
 0x48b   : > { %v3780_v8 = vpop.xlane.xlu0 %3779  ;;  %4419 = vmatpush.msra.mxu2 %v3744_v1  ;;  %v3962_v1 = vld [vmem:[%s8111_s3 + $0x388] sm:$0xff] }
 0x48c   : > { %4482 = vmatpush.msra.mxu3 %v3780_v8  ;;  %v3934_v8 = vld [vmem:[%s8111_s3 + $0x2a8] sm:$0xff] }
 0x48d   : > { %4195 = vmatmul.f32.gmra.mxu2 %v3931_v59  ;;  %4254 = vmatmul.f32.gmra.mxu3 %v3912_v19 }
 0x48e   : > { %4310 = vmatmul.f32.gmra.mxu0 %v3883_v38  ;;  %4483 = vmatpush.msra.mxu3 %v3778_v60  ;;  %v3933_v60 = vld [vmem:[%s8111_s3 + $0x2a0] sm:$0xff]  ;;  %v7498_v38 = vpop.f32.mrf.mxu0 }
 0x48f   : > { %4375 = vmatmul.f32.gmra.mxu1 %v3884_v12  ;;  %3753 = vadd.xlane.f32.xlu1 %v3481_v3  ;;  %v7500_v12 = vpop.f32.mrf.mxu3  ;;  %v7502_v3 = vpop.f32.mrf.mxu1 }
 0x490   : > { %3829 = vadd.xlane.f32.xlu0 %v3519_v15  ;;  %3793 = vadd.xlane.f32.xlu2 %v3501_v36  ;;  %v3991_v36 = vld [vmem:[%s8111_s3 + $0x470] sm:$0xff] }
 0x492   : > { %v3776_v44 = vpop.xlane.xlu1 %3775  ;;  %v3816_v16 = vpop.xlane.xlu2 %3815 }
 0x493   : > { %v3742_v41 = vpop.xlane.xlu0 %3741  ;;  %4484 = vmatpush.msra.mxu3 %v3776_v44  ;;  %4545 = vmatpush.msra.mxu0 %v3816_v16  ;;  %v3972_v44 = vld [vmem:[%s8111_s3 + $0x3d8] sm:$0xff]  ;;  %v3943_v16 = vld [vmem:[%s8111_s3 + $0x2f0] sm:$0xff] }
 0x494   : > { %4420 = vmatpush.msra.mxu2 %v3742_v41  ;;  %v7513_v41 = vpop.f32.mrf.mxu2 }
 0x495   : > { %4198 = vmatmul.f32.gmra.mxu2 %v3941_v42  ;;  %4257 = vmatmul.f32.gmra.mxu3 %v3922_v43 }
 0x496   : > { %4313 = vmatmul.f32.gmra.mxu0 %v3893_v39  ;;  %v3944_v39 = vld [vmem:[%s8111_s3 + $0x2f8] sm:$0xff] }
 0x497   : > { %4378 = vmatmul.f32.gmra.mxu1 %v3894_v53  ;;  %3791 = vadd.xlane.f32.xlu1 %v3500_v28  ;;  %v7518_v53 = vpop.f32.mrf.mxu0  ;;  %v7520_v28 = vpop.f32.mrf.mxu3 }
 0x498   : > { %3827 = vadd.xlane.f32.xlu0 %v3518_v49  ;;  %3825 = vadd.xlane.f32.xlu2 %v3517_v23  ;;  %v7522_v49 = vpop.f32.mrf.mxu1 }
 0x49a   : > { %v3774_v34 = vpop.xlane.xlu1 %3773  ;;  %v3814_v7 = vpop.xlane.xlu2 %3813 }
 0x49b   : > { %v3740_v31 = vpop.xlane.xlu0 %3739  ;;  %4485 = vmatpush.msra.mxu3 %v3774_v34  ;;  %4546 = vmatpush.msra.mxu0 %v3814_v7  ;;  %v4001_v34 = vld [vmem:[%s8111_s3 + $0x4c0] sm:$0xff] }
 0x49c   : > { %4421 = vmatpush.msra.mxu2 %v3740_v31  ;;  %v3953_v31 = vld [vmem:[%s8111_s3 + $0x340] sm:$0xff] }
 0x49d   : > { %4201 = vmatmul.f32.gmra.mxu2 %v3951_v18  ;;  %4260 = vmatmul.f32.gmra.mxu3 %v3932_v54  ;;  %v3982_v18 = vld [vmem:[%s8111_s3 + $0x428] sm:$0xff] }
 0x49e   : > { %4316 = vmatmul.f32.gmra.mxu0 %v3903_v22  ;;  %v3954_v22 = vld [vmem:[%s8111_s3 + $0x348] sm:$0xff] }
 0x49f   : > { %4381 = vmatmul.f32.gmra.mxu1 %v3904_v46  ;;  %3823 = vadd.xlane.f32.xlu1 %v3516_v62  ;;  %v7536_v46 = vpop.f32.mrf.mxu2  ;;  %v7538_v62 = vpop.f32.mrf.mxu0 }
 0x4a0   : > { %3789 = vadd.xlane.f32.xlu0 %v3499_v13  ;;  %3787 = vadd.xlane.f32.xlu2 %v3498_v57  ;;  %v3992_v57 = vld [vmem:[%s8111_s3 + $0x478] sm:$0xff] }
 0x4a2   : > { %v3738_v24 = vpop.xlane.xlu1 %3737  ;;  %v3772_v51 = vpop.xlane.xlu2 %3771 }
 0x4a3   : > { %v3848_v50 = vpop.xlane.xlu0 %3847  ;;  %4422 = vmatpush.msra.mxu2 %v3738_v24  ;;  %4486 = vmatpush.msra.mxu3 %v3772_v51  ;;  %v3964_v51 = vld [vmem:[%s8111_s3 + $0x398] sm:$0xff] }
 0x4a4   : > { %4610 = vmatpush.msra.mxu1 %v3848_v50  ;;  %v7549_v50 = vpop.f32.mrf.mxu3 }
 0x4a5   : > { %4204 = vmatmul.f32.gmra.mxu2 %v3961_v33  ;;  %4263 = vmatmul.f32.gmra.mxu3 %v3942_v32  ;;  %v3963_v32 = vld [vmem:[%s8111_s3 + $0x390] sm:$0xff] }
 0x4a6   : > { %4319 = vmatmul.f32.gmra.mxu0 %v3913_v20  ;;  %v7551_v20 = vpop.f32.mrf.mxu1 }
 0x4a7   : > { %4384 = vmatmul.f32.gmra.mxu1 %v3914_v45  ;;  %3785 = vadd.xlane.f32.xlu1 %v3497_v48 }
 0x4a8   : > { %3821 = vadd.xlane.f32.xlu0 %v3515_v11  ;;  %3819 = vadd.xlane.f32.xlu2 %v3514_v0  ;;  %v4002_v11 = vld [vmem:[%s8111_s3 + $0x4c8] sm:$0xff] }
 0x4aa   : > { %v3846_v17 = vpop.xlane.xlu1 %3845  ;;  %v3736_v10 = vpop.xlane.xlu2 %3735 }
 0x4ab   : > { %v3812_v29 = vpop.xlane.xlu0 %3811  ;;  %4423 = vmatpush.msra.mxu2 %v3736_v10  ;;  %4611 = vmatpush.msra.mxu1 %v3846_v17  ;;  %v7564_v10 = vpop.f32.mrf.mxu0 }
 0x4ac   : > { %4547 = vmatpush.msra.mxu0 %v3812_v29  ;;  %v7566_v29 = vpop.f32.mrf.mxu3 }
 0x4ad   : > { %4207 = vmatmul.f32.gmra.mxu2 %v3971_v35  ;;  %4266 = vmatmul.f32.gmra.mxu3 %v3952_v5  ;;  %v3973_v35 = vld [vmem:[%s8111_s3 + $0x3e0] sm:$0xff]  ;;  %v3974_v5 = vld [vmem:[%s8111_s3 + $0x3e8] sm:$0xff] }
 0x4ae   : > { %4322 = vmatmul.f32.gmra.mxu0 %v3923_v9  ;;  %v7568_v9 = vpop.f32.mrf.mxu1 }
 0x4af   : > { %4387 = vmatmul.f32.gmra.mxu1 %v3924_v58 }
 0x4b0   : > { %3817 = vadd.xlane.f32.xlu0 %v3513_v4 }
 0x4b2   : > { %v3810_v25 = vpop.xlane.xlu1 %3809  ;;  %v3844_v59 = vpop.xlane.xlu2 %3843 }
 0x4b3   : > { %v3770_v19 = vpop.xlane.xlu0 %3769  ;;  %4548 = vmatpush.msra.mxu0 %v3810_v25  ;;  %4612 = vmatpush.msra.mxu1 %v3844_v59  ;;  %v3984_v59 = vld [vmem:[%s8111_s3 + $0x438] sm:$0xff] }
 0x4b4   : > { %4487 = vmatpush.msra.mxu3 %v3770_v19  ;;  %v7578_v19 = vpop.f32.mrf.mxu0 }
 0x4b5   : > { %4210 = vmatmul.f32.gmra.mxu2 %v3981_v55  ;;  %4269 = vmatmul.f32.gmra.mxu3 %v3962_v1  ;;  %v3983_v1 = vld [vmem:[%s8111_s3 + $0x430] sm:$0xff] }
 0x4b6   : > { %4325 = vmatmul.f32.gmra.mxu0 %v3933_v60 }
 0x4b7   : > { %4390 = vmatmul.f32.gmra.mxu1 %v3934_v8 }
 0x4ba   : > { %v3768_v15 = vpop.xlane.xlu1 %3767  ;;  %v3808_v42 = vpop.xlane.xlu2 %3807 }
 0x4bb   : > { %v3734_v43 = vpop.xlane.xlu0 %3733  ;;  %4488 = vmatpush.msra.mxu3 %v3768_v15  ;;  %4549 = vmatpush.msra.mxu0 %v3808_v42  ;;  %v7584_v15 = vpop.f32.mrf.mxu1 }
 0x4bc   : > { %4424 = vmatpush.msra.mxu2 %v3734_v43  ;;  %8186 = vst [vmem:[#allocation39_spill] sm:$0xff] %v7584_v15  ;;  %v3993_v43 = vld [vmem:[%s8111_s3 + $0x480] sm:$0xff] }
 0x4bd   : > { %4213 = vmatmul.f32.gmra.mxu2 %v3991_v36  ;;  %4272 = vmatmul.f32.gmra.mxu3 %v3972_v44 }
 0x4be   : > { %4328 = vmatmul.f32.gmra.mxu0 %v3943_v16  ;;  %v3994_v16 = vld [vmem:[%s8111_s3 + $0x488] sm:$0xff] }
 0x4bf   : > { %4393 = vmatmul.f32.gmra.mxu1 %v3944_v39 }
 0x4c2   : > { %v3732_v23 = vpop.xlane.xlu1 %3731  ;;  %v3766_v54 = vpop.xlane.xlu2 %3765 }
 0x4c3   : > { %v3842_v7 = vpop.xlane.xlu0 %3841  ;;  %4425 = vmatpush.msra.mxu2 %v3732_v23  ;;  %4489 = vmatpush.msra.mxu3 %v3766_v54  ;;  %v7598_v54 = vpop.f32.mrf.mxu1 }
 0x4c4   : > { %4613 = vmatpush.msra.mxu1 %v3842_v7  ;;  %8188 = vst [vmem:[#allocation41_spill] sm:$0xff] %v7598_v54 }
 0x4c5   : > { %4216 = vmatmul.f32.gmra.mxu2 %v4001_v34  ;;  %4275 = vmatmul.f32.gmra.mxu3 %v3982_v18  ;;  %v7596_v34 = vpop.f32.mrf.mxu0 }
 0x4c6   : > { %4331 = vmatmul.f32.gmra.mxu0 %v3953_v31  ;;  %8187 = vst [vmem:[#allocation40_spill] sm:$0xff] %v7596_v34  ;;  %v4003_v31 = vld [vmem:[%s8111_s3 + $0x4d0] sm:$0xff]  ;;  %v4018_v34 = vld [vmem:[%s8112_s4 + $0x48] sm:$0xff] }
 0x4c7   : > { %4396 = vmatmul.f32.gmra.mxu1 %v3954_v22 }
 0x4ca   : > { %v3840_v13 = vpop.xlane.xlu1 %3839  ;;  %v3730_v24 = vpop.xlane.xlu2 %3729 }
 0x4cb   : > { %v3806_v33 = vpop.xlane.xlu0 %3805  ;;  %4426 = vmatpush.msra.mxu2 %v3730_v24  ;;  %4614 = vmatpush.msra.mxu1 %v3840_v13  ;;  %v4004_v13 = vld [vmem:[%s8111_s3 + $0x4d8] sm:$0xff] }
 0x4cc   : > { %4550 = vmatpush.msra.mxu0 %v3806_v33 }
 0x4cd   : > { %4278 = vmatmul.f32.gmra.mxu3 %v3992_v57 }
 0x4ce   : > { %4334 = vmatmul.f32.gmra.mxu0 %v3963_v32 }
 0x4cf   : > { %4399 = vmatmul.f32.gmra.mxu1 %v3964_v51  ;;  %v7553_v45 = vpop.f32.mrf.mxu2 }
 0x4d2   : > { %v3804_v48 = vpop.xlane.xlu1 %3803  ;;  %v3838_v0 = vpop.xlane.xlu2 %3837 }
 0x4d3   : > { %v3764_v17 = vpop.xlane.xlu0 %3763  ;;  %4551 = vmatpush.msra.mxu0 %v3804_v48  ;;  %4615 = vmatpush.msra.mxu1 %v3838_v0 }
 0x4d4   : > { %4490 = vmatpush.msra.mxu3 %v3764_v17 }
 0x4d5   : > { %4281 = vmatmul.f32.gmra.mxu3 %v4002_v11 }
 0x4d6   : > { %4337 = vmatmul.f32.gmra.mxu0 %v3973_v35 }
 0x4d7   : > { %4402 = vmatmul.f32.gmra.mxu1 %v3974_v5  ;;  %v7570_v58 = vpop.f32.mrf.mxu2  ;;  %v3855_v5 = vld [vmem:[%s8111_s3 + $0x30] sm:$0xff] }
 0x4da   : > { %v3762_v4 = vpop.xlane.xlu1 %3761  ;;  %v3802_v25 = vpop.xlane.xlu2 %3801 }
 0x4db   : > { %v3728_v55 = vpop.xlane.xlu0 %3727  ;;  %4491 = vmatpush.msra.mxu3 %v3762_v4  ;;  %4552 = vmatpush.msra.mxu0 %v3802_v25 }
 0x4dc   : > { %4427 = vmatpush.msra.mxu2 %v3728_v55 }
 0x4de   : > { %4340 = vmatmul.f32.gmra.mxu0 %v3983_v1 }
 0x4df   : > { %4405 = vmatmul.f32.gmra.mxu1 %v3984_v59  ;;  %v7580_v60 = vpop.f32.mrf.mxu2 }
 0x4e0   : > { %v7582_v8 = vpop.f32.mrf.mxu3 }
 0x4e2   : > { %v3726_v36 = vpop.xlane.xlu1 %3725  ;;  %v3760_v44 = vpop.xlane.xlu2 %3759 }
 0x4e3   : > { %v3836_v42 = vpop.xlane.xlu0 %3835  ;;  %4428 = vmatpush.msra.mxu2 %v3726_v36  ;;  %4492 = vmatpush.msra.mxu3 %v3760_v44  ;;  %v3856_v44 = vld [vmem:[%s8111_s3 + $0x38] sm:$0xff] }
 0x4e4   : > { %4616 = vmatpush.msra.mxu1 %v3836_v42 }
 0x4e6   : > { %4343 = vmatmul.f32.gmra.mxu0 %v3993_v43  ;;  %v3865_v43 = vld [vmem:[%s8111_s3 + $0x80] sm:$0xff] }
 0x4e7   : > { %4408 = vmatmul.f32.gmra.mxu1 %v3994_v16  ;;  %v7592_v39 = vpop.f32.mrf.mxu2 }
 0x4e8   : > { %v7594_v23 = vpop.f32.mrf.mxu3 }
 0x4ea   : > { %v3834_v18 = vpop.xlane.xlu1 %3833 }
 0x4eb   : > { %v3800_v7 = vpop.xlane.xlu0 %3799  ;;  %v3724_v22 = vpop.xlane.xlu2 %3723  ;;  %4617 = vmatpush.msra.mxu1 %v3834_v18 }
 0x4ec   : > { %4553 = vmatpush.msra.mxu0 %v3800_v7  ;;  %4429 = vmatpush.msra.mxu2 %v3724_v22 }
 0x4ee   : > { %4346 = vmatmul.f32.gmra.mxu0 %v4003_v31 }
 0x4ef   : > { %4411 = vmatmul.f32.gmra.mxu1 %v4004_v13  ;;  %v7606_v57 = vpop.f32.mrf.mxu2 }
 0x4f0   : > { %v7608_v24 = vpop.f32.mrf.mxu3 }
 0x4f2   : > { %v7610_v33 = vpop.f32.mrf.mxu0  ;;  %v3798_v32 = vpop.xlane.xlu1 %3797 }
 0x4f3   : > { %v3758_v51 = vpop.xlane.xlu0 %3757  ;;  %v3832_v48 = vpop.xlane.xlu2 %3831  ;;  %4554 = vmatpush.msra.mxu0 %v3798_v32  ;;  %v3866_v32 = vld [vmem:[%s8111_s3 + $0x88] sm:$0xff] }
 0x4f4   : > { %v7612_v11 = vpop.f32.mrf.mxu1  ;;  %4493 = vmatpush.msra.mxu3 %v3758_v51  ;;  %4618 = vmatpush.msra.mxu1 %v3832_v48  ;;  %v3875_v48 = vld [vmem:[%s8111_s3 + $0xd0] sm:$0xff] }
 0x4f7   : > { %v7614_v0 = vpop.f32.mrf.mxu2 }
 0x4f8   : > { %v7616_v17 = vpop.f32.mrf.mxu3 }
 0x4fa   : > { %v3756_v35 = vpop.xlane.xlu1 %3755 }
 0x4fb   : > { %v7621_v4 = vpop.f32.mrf.mxu0  ;;  %v3722_v25 = vpop.xlane.xlu0 %3721  ;;  %4494 = vmatpush.msra.mxu3 %v3756_v35 }
 0x4fc   : > { %v7623_v55 = vpop.f32.mrf.mxu1  ;;  %4430 = vmatpush.msra.mxu2 %v3722_v25  ;;  %v3796_v1 = vpop.xlane.xlu2 %3795 }
 0x4fd   : > { %4431 = vmatmul.f32.vlgmr.msra.gmra.mxu2 %v3855_v5  ;;  %4555 = vmatpush.msra.mxu0 %v3796_v1 }
 0x500   : > { %v7625_v59 = vpop.f32.mrf.mxu2  ;;  %v7627_v36 = vpop.f32.mrf.mxu3 }
 0x501   : > { %8189 = vst [vmem:[#allocation42_spill] sm:$0xff] %v7625_v59 }
 0x502   : > { %v3754_v42 = vpop.xlane.xlu1 %3753 }
 0x503   : > { %v7635_v16 = vpop.f32.mrf.mxu0  ;;  %v3830_v18 = vpop.xlane.xlu0 %3829  ;;  %4495 = vmatpush.msra.mxu3 %v3754_v42 }
 0x504   : > { %v7637_v7 = vpop.f32.mrf.mxu1  ;;  %4619 = vmatpush.msra.mxu1 %v3830_v18  ;;  %4496 = vmatmul.f32.vlgmr.msra.gmra.mxu3 %v3856_v44  ;;  %v3794_v31 = vpop.xlane.xlu2 %3793 }
 0x505   : > { %4434 = vmatmul.f32.gmra.mxu2 %v3865_v43  ;;  %4556 = vmatpush.msra.mxu0 %v3794_v31  ;;  %v3876_v43 = vld [vmem:[%s8111_s3 + $0xd8] sm:$0xff]  ;;  %v3885_v31 = vld [vmem:[%s8111_s3 + $0x120] sm:$0xff] }
 0x508   : > { %v7639_v22 = vpop.f32.mrf.mxu2  ;;  %v7641_v13 = vpop.f32.mrf.mxu3 }
 0x509   : > { %8190 = vst [vmem:[#allocation43_spill] sm:$0xff] %v7639_v22 }
 0x50a   : > { %8191 = vst [vmem:[#allocation44_spill] sm:$0xff] %v7641_v13  ;;  %v3792_v51 = vpop.xlane.xlu1 %3791 }
 0x50b   : > { %v7649_v35 = vpop.f32.mrf.mxu0  ;;  %v3828_v5 = vpop.xlane.xlu0 %3827  ;;  %4557 = vmatpush.msra.mxu0 %v3792_v51 }
 0x50c   : > { %v7651_v25 = vpop.f32.mrf.mxu1  ;;  %4620 = vmatpush.msra.mxu1 %v3828_v5  ;;  %4499 = vmatmul.f32.gmra.mxu3 %v3866_v32  ;;  %v3826_v1 = vpop.xlane.xlu2 %3825  ;;  %v4017_v5 = vld [vmem:[%s8112_s4 + $0x40] sm:$0xff] }
 0x50d   : > { %4437 = vmatmul.f32.gmra.mxu2 %v3875_v48  ;;  %v4067_v54 = vadd.f32 %v7386_v56, %v4017_v5 }
 0x50e   : > { %4621 = vmatpush.msra.mxu1 %v3826_v1 }
 0x50f   : > { %v4132_v5 = vadd.f32 %v7414_v63, %v4067_v54  ;;  %v3905_v63 = vld [vmem:[%s8111_s3 + $0x1c0] sm:$0xff]  ;;  %v3867_v54 = vld [vmem:[%s8111_s3 + $0x90] sm:$0xff] }
 0x510   : > { %v4196_v44 = vpop.f32.mrf.mxu2  ;;  %v7653_v42 = vpop.f32.mrf.mxu3 }
 0x511   : > { %8192 = vst [vmem:[#allocation45_spill] sm:$0xff] %v7653_v42  ;;  %v4197_v13 = vadd.f32 %v4196_v44, %v4132_v5 }
 0x512   : > { %v3824_v18 = vpop.xlane.xlu1 %3823 }
 0x513   : > { %v7661_v51 = vpop.f32.mrf.mxu0  ;;  %v3790_v22 = vpop.xlane.xlu0 %3789  ;;  %4622 = vmatpush.msra.mxu1 %v3824_v18  ;;  %v3886_v18 = vld [vmem:[%s8111_s3 + $0x128] sm:$0xff] }
 0x514   : > { %v7663_v32 = vpop.f32.mrf.mxu1  ;;  %4502 = vmatmul.f32.gmra.mxu3 %v3876_v43  ;;  %4558 = vmatpush.msra.mxu0 %v3790_v22  ;;  %v3788_v48 = vpop.xlane.xlu2 %3787  ;;  %v3857_v22 = vld [vmem:[%s8111_s3 + $0x40] sm:$0xff] }
 0x515   : > { %8193 = vst [vmem:[#allocation46_spill] sm:$0xff] %v7663_v32  ;;  %4440 = vmatmul.f32.gmra.mxu2 %v3885_v31  ;;  %v3895_v31 = vld [vmem:[%s8111_s3 + $0x170] sm:$0xff] }
 0x516   : > { %4559 = vmatpush.msra.mxu0 %v3788_v48 }
 0x518   : > { %v4199_v1 = vpop.f32.mrf.mxu2  ;;  %v7668_v42 = vpop.f32.mrf.mxu3 }
 0x519   : > { %8194 = vst [vmem:[#allocation47_spill] sm:$0xff] %v7668_v42 }
 0x51a   : > { %v3786_v43 = vpop.xlane.xlu1 %3785 }
 0x51b   : > { %v7680_v59 = vpop.f32.mrf.mxu0  ;;  %v3822_v48 = vpop.xlane.xlu0 %3821  ;;  %4560 = vmatpush.msra.mxu0 %v3786_v43 }
 0x51c   : > { %8195 = vst [vmem:[#allocation48_spill] sm:$0xff] %v7680_v59  ;;  %v7682_v42 = vpop.f32.mrf.mxu1  ;;  %4505 = vmatmul.f32.gmra.mxu3 %v3886_v18  ;;  %4561 = vmatmul.f32.vlgmr.msra.gmra.mxu0 %v3857_v22  ;;  %v3820_v56 = vpop.xlane.xlu2 %3819  ;;  %v4070_v59 = vadd.f32 %v7400_v14, %v4018_v34  ;;  %v3896_v18 = vld [vmem:[%s8111_s3 + $0x178] sm:$0xff]  ;;  %v3858_v14 = vld [vmem:[%s8111_s3 + $0x48] sm:$0xff] }
 0x51d   : > { %4443 = vmatmul.f32.gmra.mxu2 %v3895_v31  ;;  %4623 = vmatpush.msra.mxu1 %v3822_v48 }
 0x51e   : > { %v4135_v34 = vadd.f32 %v7430_v27, %v4070_v59  ;;  %v3915_v27 = vld [vmem:[%s8111_s3 + $0x210] sm:$0xff]  ;;  %v3877_v59 = vld [vmem:[%s8111_s3 + $0xe0] sm:$0xff] }
 0x51f   : > { %4624 = vmatpush.msra.mxu1 %v3820_v56 }
 0x520   : > { %v4261_v15 = vpop.f32.mrf.mxu3  ;;  %v4202_v22 = vpop.f32.mrf.mxu2  ;;  %v4200_v31 = vadd.f32 %v4199_v1, %v4135_v34  ;;  %v3868_v1 = vld [vmem:[%s8111_s3 + $0x98] sm:$0xff] }
 0x521   : > { %v4262_v32 = vadd.f32 %v4261_v15, %v4197_v13  ;;  %v4019_v13 = vld [vmem:[%s8112_s4 + $0x50] sm:$0xff] }
 0x522   : > { %v4073_v56 = vadd.f32 %v7425_v52, %v4019_v13 }
 0x523   : > { %v7698_v43 = vpop.f32.mrf.mxu0  ;;  %v3818_v44 = vpop.xlane.xlu0 %3817 }
 0x524   : > { %v7703_v15 = vpop.f32.mrf.mxu1  ;;  %4625 = vmatpush.msra.mxu1 %v3818_v44  ;;  %4508 = vmatmul.f32.gmra.mxu3 %v3896_v18  ;;  %v4020_v44 = vld [vmem:[%s8112_s4 + $0x58] sm:$0xff] }
 0x525   : > { %8196 = vst [vmem:[#allocation49_spill] sm:$0xff] %v7703_v15  ;;  %4446 = vmatmul.f32.gmra.mxu2 %v3905_v63  ;;  %4564 = vmatmul.f32.gmra.mxu0 %v3867_v54  ;;  %v3906_v15 = vld [vmem:[%s8111_s3 + $0x1c8] sm:$0xff]  ;;  %v4138_v54 = vadd.f32 %v7446_v61, %v4073_v56  ;;  %v4076_v13 = vadd.f32 %v7444_v21, %v4020_v44  ;;  %v3925_v61 = vld [vmem:[%s8111_s3 + $0x260] sm:$0xff] }
 0x526   : > { %4626 = vmatmul.f32.vlgmr.msra.gmra.mxu1 %v3858_v14 }
 0x527   : > { %v4203_v14 = vadd.f32 %v4202_v22, %v4138_v54  ;;  %v3878_v22 = vld [vmem:[%s8111_s3 + $0xe8] sm:$0xff] }
 0x528   : > { %v4264_v48 = vpop.f32.mrf.mxu3  ;;  %v4205_v52 = vpop.f32.mrf.mxu2 }
 0x529   : > { %v4265_v5 = vadd.f32 %v4264_v48, %v4200_v31  ;;  %v3916_v48 = vld [vmem:[%s8111_s3 + $0x218] sm:$0xff] }
 0x52b   : > { %v7719_v18 = vpop.f32.mrf.mxu0 }
 0x52c   : > { %8197 = vst [vmem:[#allocation50_spill] sm:$0xff] %v7719_v18  ;;  %v7724_v63 = vpop.f32.mrf.mxu1  ;;  %4511 = vmatmul.f32.gmra.mxu3 %v3906_v15  ;;  %v3887_v15 = vld [vmem:[%s8111_s3 + $0x130] sm:$0xff] }
 0x52d   : > { %8198 = vst [vmem:[#allocation51_spill] sm:$0xff] %v7724_v63  ;;  %4449 = vmatmul.f32.gmra.mxu2 %v3915_v27  ;;  %4567 = vmatmul.f32.gmra.mxu0 %v3877_v59  ;;  %v4141_v59 = vadd.f32 %v7480_v47, %v4076_v13  ;;  %v3935_v47 = vld [vmem:[%s8111_s3 + $0x2b0] sm:$0xff]  ;;  %v3897_v13 = vld [vmem:[%s8111_s3 + $0x180] sm:$0xff] }
 0x52e   : > { %4629 = vmatmul.f32.gmra.mxu1 %v3868_v1  ;;  %v4021_v1 = vld [vmem:[%s8112_s4 + $0x60] sm:$0xff] }
 0x52f   : > { %v4079_v63 = vadd.f32 %v7464_v40, %v4021_v1 }
 0x530   : > { %v4267_v34 = vpop.f32.mrf.mxu3  ;;  %v4208_v54 = vpop.f32.mrf.mxu2 }
 0x531   : > { %v4268_v31 = vadd.f32 %v4267_v34, %v4203_v14  ;;  %v4206_v14 = vadd.f32 %v4205_v52, %v4141_v59  ;;  %v3888_v52 = vld [vmem:[%s8111_s3 + $0x138] sm:$0xff] }
 0x533   : > { %v4326_v56 = vpop.f32.mrf.mxu0 }
 0x534   : > { %v4327_v27 = vadd.f32 %v4326_v56, %v4262_v32  ;;  %v4391_v21 = vpop.f32.mrf.mxu1  ;;  %4514 = vmatmul.f32.gmra.mxu3 %v3916_v48  ;;  %v3926_v32 = vld [vmem:[%s8111_s3 + $0x268] sm:$0xff] }
 0x535   : > { %4452 = vmatmul.f32.gmra.mxu2 %v3925_v61  ;;  %4570 = vmatmul.f32.gmra.mxu0 %v3887_v15  ;;  %v4144_v15 = vadd.f32 %v7500_v12, %v4079_v63  ;;  %v4022_v56 = vld [vmem:[%s8112_s4 + $0x68] sm:$0xff]  ;;  %v3945_v12 = vld [vmem:[%s8111_s3 + $0x300] sm:$0xff]  ;;  %v3907_v63 = vld [vmem:[%s8111_s3 + $0x1d0] sm:$0xff] }
 0x536   : > { %v7747_v44 = vadd.f32 %v4391_v21, %v4327_v27  ;;  %4632 = vmatmul.f32.gmra.mxu1 %v3878_v22  ;;  %v4082_v1 = vadd.f32 %v7484_v2, %v4022_v56 }
 0x537   : > { %v4209_v27 = vadd.f32 %v4208_v54, %v4144_v15  ;;  %v3898_v54 = vld [vmem:[%s8111_s3 + $0x188] sm:$0xff] }
 0x538   : > { %v4270_v34 = vpop.f32.mrf.mxu3  ;;  %v4211_v21 = vpop.f32.mrf.mxu2 }
 0x539   : > { %v4271_v18 = vadd.f32 %v4270_v34, %v4206_v14 }
 0x53b   : > { %v4329_v48 = vpop.f32.mrf.mxu0 }
 0x53c   : > { %v4330_v61 = vadd.f32 %v4329_v48, %v4265_v5  ;;  %v4394_v40 = vpop.f32.mrf.mxu1  ;;  %4517 = vmatmul.f32.gmra.mxu3 %v3926_v32  ;;  %v3936_v5 = vld [vmem:[%s8111_s3 + $0x2b8] sm:$0xff] }
 0x53d   : > { %4455 = vmatmul.f32.gmra.mxu2 %v3935_v47  ;;  %4573 = vmatmul.f32.gmra.mxu0 %v3897_v13  ;;  %v4147_v47 = vadd.f32 %v7520_v28, %v4082_v1  ;;  %v4023_v13 = vld [vmem:[%s8112_s4 + $0x70] sm:$0xff] }
 0x53e   : > { %v7766_v22 = vadd.f32 %v4394_v40, %v4330_v61  ;;  %4635 = vmatmul.f32.gmra.mxu1 %v3888_v52  ;;  %v4085_v40 = vadd.f32 %v7513_v41, %v4023_v13  ;;  %v3955_v28 = vld [vmem:[%s8111_s3 + $0x350] sm:$0xff] }
 0x53f   : > { %v4212_v52 = vadd.f32 %v4211_v21, %v4147_v47  ;;  %v3908_v21 = vld [vmem:[%s8111_s3 + $0x1d8] sm:$0xff]  ;;  %v3927_v47 = vld [vmem:[%s8111_s3 + $0x270] sm:$0xff] }
 0x540   : > { %v4273_v59 = vpop.f32.mrf.mxu3  ;;  %v4214_v56 = vpop.f32.mrf.mxu2 }
 0x541   : > { %v4274_v14 = vadd.f32 %v4273_v59, %v4209_v27  ;;  %v3917_v27 = vld [vmem:[%s8111_s3 + $0x220] sm:$0xff] }
 0x543   : > { %v4332_v34 = vpop.f32.mrf.mxu0 }
 0x544   : > { %v4333_v32 = vadd.f32 %v4332_v34, %v4268_v31  ;;  %v4397_v2 = vpop.f32.mrf.mxu1  ;;  %4520 = vmatmul.f32.gmra.mxu3 %v3936_v5  ;;  %v3946_v31 = vld [vmem:[%s8111_s3 + $0x308] sm:$0xff]  ;;  %v4150_v5 = vadd.f32 %v7549_v50, %v4085_v40  ;;  %v3965_v50 = vld [vmem:[%s8111_s3 + $0x3a0] sm:$0xff] }
 0x545   : > { %4458 = vmatmul.f32.gmra.mxu2 %v3945_v12  ;;  %4576 = vmatmul.f32.gmra.mxu0 %v3907_v63  ;;  %v4024_v12 = vld [vmem:[%s8112_s4 + $0x78] sm:$0xff] }
 0x546   : > { %v7785_v48 = vadd.f32 %v4397_v2, %v4333_v32  ;;  %4638 = vmatmul.f32.gmra.mxu1 %v3898_v54  ;;  %v4215_v34 = vadd.f32 %v4214_v56, %v4150_v5  ;;  %v4088_v32 = vadd.f32 %v7536_v46, %v4024_v12 }
 0x548   : > { %v4276_v61 = vpop.f32.mrf.mxu3 }
 0x549   : > { %v4277_v15 = vadd.f32 %v4276_v61, %v4212_v52  ;;  %v3918_v52 = vld [vmem:[%s8111_s3 + $0x228] sm:$0xff]  ;;  %v4217_v61 = vpop.f32.mrf.mxu2 }
 0x54b   : > { %v4335_v59 = vpop.f32.mrf.mxu0 }
 0x54c   : > { %v4336_v41 = vadd.f32 %v4335_v59, %v4271_v18  ;;  %v4400_v1 = vpop.f32.mrf.mxu1  ;;  %4523 = vmatmul.f32.gmra.mxu3 %v3946_v31  ;;  %v3956_v18 = vld [vmem:[%s8111_s3 + $0x358] sm:$0xff]  ;;  %v4153_v31 = vadd.f32 %v7566_v29, %v4088_v32  ;;  %v3937_v29 = vld [vmem:[%s8111_s3 + $0x2c0] sm:$0xff] }
 0x54d   : > { %4461 = vmatmul.f32.gmra.mxu2 %v3955_v28  ;;  %4579 = vmatmul.f32.gmra.mxu0 %v3917_v27  ;;  %v3985_v32 = vld [vmem:[%s8111_s3 + $0x440] sm:$0xff] }
 0x54e   : > { %v7804_v63 = vadd.f32 %v4400_v1, %v4336_v41  ;;  %4641 = vmatmul.f32.gmra.mxu1 %v3908_v21  ;;  %v4218_v28 = vadd.f32 %v4217_v61, %v4153_v31  ;;  %v3966_v21 = vld [vmem:[%s8111_s3 + $0x3a8] sm:$0xff]  ;;  %v3928_v1 = vld [vmem:[%s8111_s3 + $0x278] sm:$0xff] }
 0x54f   : > { %v3986_v61 = vld [vmem:[%s8111_s3 + $0x448] sm:$0xff]  ;;  %v3948_v31 = vld [vmem:[%s8111_s3 + $0x318] sm:$0xff] }
 0x550   : > { %v4279_v54 = vpop.f32.mrf.mxu3 }
 0x551   : > { %v4280_v2 = vadd.f32 %v4279_v54, %v4215_v34  ;;  %v3976_v54 = vld [vmem:[%s8111_s3 + $0x3f8] sm:$0xff] }
 0x553   : > { %v4338_v13 = vpop.f32.mrf.mxu0 }
 0x554   : > { %v4339_v46 = vadd.f32 %v4338_v13, %v4274_v14  ;;  %v4403_v40 = vpop.f32.mrf.mxu1  ;;  %4526 = vmatmul.f32.gmra.mxu3 %v3956_v18  ;;  %v3975_v14 = vld [vmem:[%s8111_s3 + $0x3f0] sm:$0xff] }
 0x555   : > { %4464 = vmatmul.f32.gmra.mxu2 %v3965_v50  ;;  %4582 = vmatmul.f32.gmra.mxu0 %v3927_v47  ;;  %v3947_v18 = vld [vmem:[%s8111_s3 + $0x310] sm:$0xff]  ;;  %v3938_v50 = vld [vmem:[%s8111_s3 + $0x2c8] sm:$0xff] }
 0x556   : > { %v7820_v56 = vadd.f32 %v4403_v40, %v4339_v46  ;;  %4644 = vmatmul.f32.gmra.mxu1 %v3918_v52  ;;  %v3995_v46 = vld [vmem:[%s8111_s3 + $0x490] sm:$0xff]  ;;  %v3957_v40 = vld [vmem:[%s8111_s3 + $0x360] sm:$0xff] }
 0x558   : > { %v4282_v27 = vpop.f32.mrf.mxu3 }
 0x559   : > { %v4283_v59 = vadd.f32 %v4282_v27, %v4218_v28 }
 0x55b   : > { %v4341_v41 = vpop.f32.mrf.mxu0 }
 0x55c   : > { %v4342_v5 = vadd.f32 %v4341_v41, %v4277_v15  ;;  %v4406_v12 = vpop.f32.mrf.mxu1  ;;  %4529 = vmatmul.f32.gmra.mxu3 %v3966_v21  ;;  %v3967_v41 = vld [vmem:[%s8111_s3 + $0x3b0] sm:$0xff] }
 0x55d   : > { %4467 = vmatmul.f32.gmra.mxu2 %v3975_v14  ;;  %4585 = vmatmul.f32.gmra.mxu0 %v3937_v29  ;;  %v3996_v14 = vld [vmem:[%s8111_s3 + $0x498] sm:$0xff]  ;;  %v4005_v29 = vld [vmem:[%s8111_s3 + $0x4e0] sm:$0xff] }
 0x55e   : > { %v7834_v34 = vadd.f32 %v4406_v12, %v4342_v5  ;;  %4647 = vmatmul.f32.gmra.mxu1 %v3928_v1  ;;  %v4006_v1 = vld [vmem:[%s8111_s3 + $0x4e8] sm:$0xff]  ;;  %v3977_v5 = vld [vmem:[%s8111_s3 + $0x400] sm:$0xff]  ;;  %v3968_v12 = vld [vmem:[%s8111_s3 + $0x3b8] sm:$0xff] }
 0x563   : > { %v4344_v15 = vpop.f32.mrf.mxu0 }
 0x564   : > { %v4345_v47 = vadd.f32 %v4344_v15, %v4280_v2  ;;  %v4409_v13 = vpop.f32.mrf.mxu1  ;;  %4532 = vmatmul.f32.gmra.mxu3 %v3976_v54  ;;  %v4009_v15 = vld [vmem:[%s8112_s4] sm:$0xff] }
 0x565   : > { %4470 = vmatmul.f32.gmra.mxu2 %v3985_v32  ;;  %4588 = vmatmul.f32.gmra.mxu0 %v3947_v18  ;;  %v3987_v32 = vld [vmem:[%s8111_s3 + $0x450] sm:$0xff]  ;;  %v3978_v18 = vld [vmem:[%s8111_s3 + $0x408] sm:$0xff] }
 0x566   : > { %v7848_v52 = vadd.f32 %v4409_v13, %v4345_v47  ;;  %4650 = vmatmul.f32.gmra.mxu1 %v3938_v50  ;;  %v5683_v47 = vmov 0  }
 0x567   : > { %5566 = vset.pattern.permute.xlu1 %v5683_v47  ;;  %5567 = vset.pattern.permute.xlu2 %v5683_v47 }
 0x568   : > { %5568 = vset.pattern.permute.xlu0 %v5683_v47 }
 0x56b   : > { %v4347_v2 = vpop.f32.mrf.mxu0 }
 0x56c   : > { %v4348_v28 = vadd.f32 %v4347_v2, %v4283_v59  ;;  %v4412_v27 = vpop.f32.mrf.mxu1  ;;  %4535 = vmatmul.f32.gmra.mxu3 %v3986_v61  ;;  %v3958_v59 = vld [vmem:[%s8111_s3 + $0x368] sm:$0xff]  ;;  %v4043_v61 = vadd.f32 %v7448_v30, %v4009_v15 }
 0x56d   : > { %4473 = vmatmul.f32.gmra.mxu2 %v3995_v46  ;;  %4591 = vmatmul.f32.gmra.mxu0 %v3957_v40  ;;  %v3997_v46 = vld [vmem:[%s8111_s3 + $0x4a0] sm:$0xff]  ;;  %v3988_v40 = vld [vmem:[%s8111_s3 + $0x458] sm:$0xff] }
 0x56e   : > { %v7862_v21 = vadd.f32 %v4412_v27, %v4348_v28  ;;  %4653 = vmatmul.f32.gmra.mxu1 %v3948_v31  ;;  %v4108_v2 = vadd.f32 %v7459_v26, %v4043_v61  ;;  %v4010_v31 = vld [vmem:[%s8112_s4 + $0x8] sm:$0xff] }
 0x56f   : > { %v4046_v30 = vadd.f32 %v7475_v6, %v4010_v31  ;;  %v4011_v6 = vld [vmem:[%s8112_s4 + $0x10] sm:$0xff] }
 0x571   : > { %v4111_v26 = vadd.f32 %v7482_v37, %v4046_v30  ;;  %v4008_v37 = vld [vmem:[%s8111_s3 + $0x4f8] sm:$0xff] }
 0x574   : > { %4538 = vmatmul.f32.gmra.mxu3 %v3996_v14  ;;  %v4173_v14 = vadd.f32 %v7553_v45, %v4108_v2 }
 0x575   : > { %4476 = vmatmul.f32.gmra.mxu2 %v4005_v29  ;;  %4594 = vmatmul.f32.gmra.mxu0 %v3967_v41  ;;  %v4007_v29 = vld [vmem:[%s8111_s3 + $0x4f0] sm:$0xff]  ;;  %v3998_v41 = vld [vmem:[%s8111_s3 + $0x4a8] sm:$0xff] }
 0x576   : > { %4656 = vmatmul.f32.gmra.mxu1 %v3958_v59  ;;  %v4238_v59 = vadd.f32 %v7582_v8, %v4173_v14 }
 0x578   : > { %v4303_v45 = vadd.f32 %v7610_v33, %v4238_v59  ;;  %v4012_v33 = vld [vmem:[%s8112_s4 + $0x18] sm:$0xff] }
 0x57a   : > { %v4368_v8 = vadd.f32 %v7612_v11, %v4303_v45 }
 0x57c   : > { %4541 = vmatmul.f32.gmra.mxu3 %v4006_v1 }
 0x57d   : > { %4597 = vmatmul.f32.gmra.mxu0 %v3977_v5 }
 0x57e   : > { %4659 = vmatmul.f32.gmra.mxu1 %v3968_v12  ;;  %v4049_v12 = vadd.f32 %v7498_v38, %v4011_v6 }
 0x580   : > { %v4432_v54 = vpop.f32.mrf.mxu2  ;;  %v4114_v15 = vadd.f32 %v7502_v3, %v4049_v12 }
 0x581   : > { %v4433_v61 = vadd.f32 %v4432_v54, %v4368_v8 }
 0x582   : > { %v4179_v2 = vadd.f32 %v7580_v60, %v4114_v15 }
 0x585   : > { %4600 = vmatmul.f32.gmra.mxu0 %v3987_v32  ;;  %v4176_v32 = vadd.f32 %v7570_v58, %v4111_v26 }
 0x586   : > { %4662 = vmatmul.f32.gmra.mxu1 %v3978_v18 }
 0x587   : > { %v4497_v50 = vpop.f32.mrf.mxu3  ;;  %v4241_v47 = vadd.f32 %v7594_v23, %v4176_v32 }
 0x588   : > { %v4435_v13 = vpop.f32.mrf.mxu2 }
 0x589   : > { %v4306_v58 = vadd.f32 %v7621_v4, %v4241_v47  ;;  %v4013_v4 = vld [vmem:[%s8112_s4 + $0x20] sm:$0xff] }
 0x58a   : > { %v4055_v59 = vadd.f32 %v7538_v62, %v4013_v4 }
 0x58b   : > { %v4371_v3 = vadd.f32 %v7623_v55, %v4306_v58 }
 0x58d   : > { %4603 = vmatmul.f32.gmra.mxu0 %v3997_v46  ;;  %v4498_v46 = vadd.f32 %v4497_v50, %v4433_v61 }
 0x58e   : > { %4665 = vmatmul.f32.gmra.mxu1 %v3988_v40  ;;  %v4052_v40 = vadd.f32 %v7518_v53, %v4012_v33 }
 0x58f   : > { %v4500_v28 = vpop.f32.mrf.mxu3 }
 0x590   : > { %v4438_v27 = vpop.f32.mrf.mxu2  ;;  %v4117_v14 = vadd.f32 %v7522_v49, %v4052_v40 }
 0x592   : > { %v4182_v55 = vadd.f32 %v7592_v39, %v4117_v14 }
 0x594   : > { %v4247_v12 = vadd.f32 %v7616_v17, %v4182_v55 }
 0x595   : > { %4606 = vmatmul.f32.gmra.mxu0 %v4007_v29  ;;  %v4244_v29 = vadd.f32 %v7608_v24, %v4179_v2 }
 0x596   : > { %4668 = vmatmul.f32.gmra.mxu1 %v3998_v41  ;;  %v4436_v41 = vadd.f32 %v4435_v13, %v4371_v3  ;;  %v4312_v62 = vadd.f32 %v7649_v35, %v4247_v12  ;;  %v4015_v35 = vld [vmem:[%s8112_s4 + $0x30] sm:$0xff] }
 0x597   : > { %v4503_v1 = vpop.f32.mrf.mxu3  ;;  %v4309_v60 = vadd.f32 %v7635_v16, %v4244_v29  ;;  %v4014_v16 = vld [vmem:[%s8112_s4 + $0x28] sm:$0xff]  ;;  %v4061_v2 = vadd.f32 %v7578_v19, %v4015_v35 }
 0x598   : > { %v4441_v18 = vpop.f32.mrf.mxu2  ;;  %v4501_v50 = vadd.f32 %v4500_v28, %v4436_v41  ;;  %v4058_v15 = vadd.f32 %v7564_v10, %v4014_v16  ;;  %v4377_v17 = vadd.f32 %v7651_v25, %v4312_v62  ;;  %v8201_v29 = vld [vmem:[#allocation44_spill] sm:$0xff]  ;;  %v8205_v12 = vld [vmem:[#allocation41_spill] sm:$0xff] }
 0x599   : > { %v4562_v5 = vpop.f32.mrf.mxu0  ;;  %v4374_v24 = vadd.f32 %v7637_v7, %v4309_v60  ;;  %v8202_v19 = vld [vmem:[#allocation48_spill] sm:$0xff] }
 0x59a   : > { %v4563_v31 = vadd.f32 %v4562_v5, %v4498_v46  ;;  %v4120_v5 = vadd.f32 %v7551_v20, %v4055_v59  ;;  %v4123_v33 = vadd.f32 %v7568_v9, %v4058_v15  ;;  %v4442_v46 = vadd.f32 %v4441_v18, %v4377_v17  ;;  %v8203_v60 = vld [vmem:[#allocation40_spill] sm:$0xff]  ;;  %v8204_v59 = vld [vmem:[#allocation42_spill] sm:$0xff] }
 0x59b   : > { %v4439_v32 = vadd.f32 %v4438_v27, %v4374_v24 }
 0x59c   : > { %v4185_v7 = vadd.f32 %v7606_v57, %v4120_v5  ;;  %v4188_v25 = vadd.f32 %v7614_v0, %v4123_v33 }
 0x59d   : > { %v4504_v39 = vadd.f32 %v4503_v1, %v4439_v32 }
 0x59e   : > { %4671 = vmatmul.f32.gmra.mxu1 %v4008_v37  ;;  %v4250_v58 = vadd.f32 %v7627_v36, %v4185_v7  ;;  %v8199_v36 = vld [vmem:[#allocation46_spill] sm:$0xff]  ;;  %v4253_v41 = vadd.f32 %v8201_v29, %v4188_v25  ;;  %v8207_v7 = vld [vmem:[#allocation43_spill] sm:$0xff] }
 0x59f   : > { %v4506_v38 = vpop.f32.mrf.mxu3 }
 0x5a0   : > { %v4444_v54 = vpop.f32.mrf.mxu2  ;;  %v4315_v10 = vadd.f32 %v7661_v51, %v4250_v58  ;;  %v4507_v1 = vadd.f32 %v4506_v38, %v4442_v46  ;;  %v4016_v38 = vld [vmem:[%s8112_s4 + $0x38] sm:$0xff]  ;;  %v4318_v4 = vadd.f32 %v8202_v19, %v4253_v41 }
 0x5a1   : > { %v8209_v46 = vld [vmem:[#allocation47_spill] sm:$0xff] }
 0x5a2   : > { %v4565_v11 = vpop.f32.mrf.mxu0  ;;  %v4380_v18 = vadd.f32 %v8199_v36, %v4315_v10 }
 0x5a3   : > { %v4627_v30 = vpop.f32.mrf.mxu1  ;;  %v4566_v6 = vadd.f32 %v4565_v11, %v4501_v50  ;;  %v4064_v50 = vadd.f32 %v8203_v60, %v4016_v38 }
 0x5a4   : > { %v4628_v23 = vadd.f32 %v4627_v30, %v4563_v31 }
 0x5a5   : > { %v4129_v32 = vadd.f32 %v8205_v12, %v4064_v50 }
 0x5a6   : > { %v4675_v26 = vmax.f32 %v4628_v23, 0.0  ;;  %v8200_v23 = vld [vmem:[#allocation39_spill] sm:$0xff] }
 0x5a7   : > { %v4509_v53 = vpop.f32.mrf.mxu3  ;;  %v4126_v14 = vadd.f32 %v8200_v23, %v4061_v2 }
 0x5a8   : > { %4709 = vperm.xlu1 %5566, %v4675_v26   ;;  %v4447_v28 = vpop.f32.mrf.mxu2  ;;  %v4445_v26 = vadd.f32 %v4444_v54, %v4380_v18 }
 0x5a9   : > { %v4191_v55 = vadd.f32 %v8204_v59, %v4126_v14 }
 0x5aa   : > { %v4568_v45 = vpop.f32.mrf.mxu0  ;;  %v4510_v0 = vadd.f32 %v4509_v53, %v4445_v26 }
 0x5ab   : > { %v4630_v49 = vpop.f32.mrf.mxu1  ;;  %v4569_v47 = vadd.f32 %v4568_v45, %v4504_v39 }
 0x5ac   : > { %v4631_v13 = vadd.f32 %v4630_v49, %v4566_v6 }
 0x5ae   : > { %v4676_v37 = vmax.f32 %v4631_v13, 0.0  ;;  %v4383_v13 = vadd.f32 %v7682_v42, %v4318_v4 }
 0x5af   : > { %v4512_v8 = vpop.f32.mrf.mxu3 }
 0x5b0   : > { %4714 = vperm.xlu2 %5567, %v4676_v37   ;;  %v4450_v57 = vpop.f32.mrf.mxu2  ;;  %v8206_v37 = vld [vmem:[#allocation45_spill] sm:$0xff]  ;;  %v4448_v62 = vadd.f32 %v4447_v28, %v4383_v13  ;;  %v8210_v28 = vld [vmem:[#allocation50_spill] sm:$0xff] }
 0x5b1   : > { %v4256_v16 = vadd.f32 %v8206_v37, %v4191_v55 }
 0x5b2   : > { %v4571_v20 = vpop.f32.mrf.mxu0  ;;  %v4513_v15 = vadd.f32 %v4512_v8, %v4448_v62 }
 0x5b3   : > { %v4633_v61 = vpop.f32.mrf.mxu1  ;;  %v4572_v31 = vadd.f32 %v4571_v20, %v4507_v1  ;;  %v4321_v53 = vadd.f32 %v7698_v43, %v4256_v16 }
 0x5b4   : > { %v4634_v27 = vadd.f32 %v4633_v61, %v4569_v47  ;;  %v4194_v47 = vadd.f32 %v8207_v7, %v4129_v32 }
 0x5b6   : > { %v4677_v40 = vmax.f32 %v4634_v27, 0.0  ;;  %v8208_v27 = vld [vmem:[#allocation49_spill] sm:$0xff] }
 0x5b7   : > { %v4515_v9 = vpop.f32.mrf.mxu3  ;;  %v4386_v33 = vadd.f32 %v8208_v27, %v4321_v53 }
 0x5b8   : > { %4719 = vperm.xlu0 %5568, %v4677_v40   ;;  %v4453_v49 = vpop.f32.mrf.mxu2  ;;  %v4259_v40 = vadd.f32 %v8209_v46, %v4194_v47 }
 0x5b9   : > { %v4451_v35 = vadd.f32 %v4450_v57, %v4386_v33 }
 0x5ba   : > { %v4574_v11 = vpop.f32.mrf.mxu0  ;;  %v4324_v2 = vadd.f32 %v8210_v28, %v4259_v40 }
 0x5bb   : > { %v4636_v30 = vpop.f32.mrf.mxu1  ;;  %v4575_v6 = vadd.f32 %v4574_v11, %v4510_v0  ;;  %v4516_v25 = vadd.f32 %v4515_v9, %v4451_v35  ;;  %v8211_v11 = vld [vmem:[#allocation51_spill] sm:$0xff] }
 0x5bc   : > { %v4637_v3 = vadd.f32 %v4636_v30, %v4572_v31  ;;  %v4389_v30 = vadd.f32 %v8211_v11, %v4324_v2 }
 0x5be   : > { %v4678_v51 = vmax.f32 %v4637_v3, 0.0  ;;  %v4454_v18 = vadd.f32 %v4453_v49, %v4389_v30 }
 0x5bf   : > { %v4518_v5 = vpop.f32.mrf.mxu3 }
 0x5c0   : > { %4724 = vperm.xlu2 %5567, %v4678_v51   ;;  %v4456_v58 = vpop.f32.mrf.mxu2  ;;  %v4519_v14 = vadd.f32 %v4518_v5, %v4454_v18 }
 0x5c1   : > { %v4457_v38 = vadd.f32 %v4456_v58, %v7747_v44 }
 0x5c2   : > { %v4577_v45 = vpop.f32.mrf.mxu0 }
 0x5c3   : > { %v4639_v24 = vpop.f32.mrf.mxu1  ;;  %v4578_v20 = vadd.f32 %v4577_v45, %v4513_v15 }
 0x5c4   : > { %v4640_v54 = vadd.f32 %v4639_v24, %v4575_v6 }
 0x5c6   : > { %v4679_v39 = vmax.f32 %v4640_v54, 0.0 }
 0x5c7   : > { %v4521_v1 = vpop.f32.mrf.mxu3 }
 0x5c8   : > { %4729 = vperm.xlu1 %5566, %v4679_v39   ;;  %v4459_v23 = vpop.f32.mrf.mxu2  ;;  %v4522_v19 = vadd.f32 %v4521_v1, %v4457_v38 }
 0x5c9   : > { %v4460_v6 = vadd.f32 %v4459_v23, %v7766_v22 }
 0x5ca   : > { %v4580_v61 = vpop.f32.mrf.mxu0 }
 0x5cb   : > { %v4642_v17 = vpop.f32.mrf.mxu1  ;;  %v4581_v43 = vadd.f32 %v4580_v61, %v4516_v25 }
 0x5cc   : > { %v4643_v42 = vadd.f32 %v4642_v17, %v4578_v20 }
 0x5ce   : > { %v4680_v10 = vmax.f32 %v4643_v42, 0.0 }
 0x5cf   : > { %v4524_v29 = vpop.f32.mrf.mxu3 }
 0x5d0   : > { %4734 = vperm.xlu2 %5567, %v4680_v10   ;;  %v4462_v4 = vpop.f32.mrf.mxu2  ;;  %v4525_v49 = vadd.f32 %v4524_v29, %v4460_v6 }
 0x5d1   : > { %v4463_v32 = vadd.f32 %v4462_v4, %v7785_v48 }
 0x5d2   : > { %v4583_v8 = vpop.f32.mrf.mxu0 }
 0x5d3   : > { %v4645_v31 = vpop.f32.mrf.mxu1  ;;  %v4584_v41 = vadd.f32 %v4583_v8, %v4519_v14 }
 0x5d4   : > { %v4646_v36 = vadd.f32 %v4645_v31, %v4581_v43 }
 0x5d6   : > { %v4681_v3 = vmax.f32 %v4646_v36, 0.0 }
 0x5d7   : > { %v4527_v50 = vpop.f32.mrf.mxu3 }
 0x5d8   : > { %4739 = vperm.xlu1 %5566, %v4681_v3   ;;  %v4465_v54 = vpop.f32.mrf.mxu2  ;;  %v4528_v16 = vadd.f32 %v4527_v50, %v4463_v32 }
 0x5d9   : > { %v4466_v22 = vadd.f32 %v4465_v54, %v7804_v63 }
 0x5da   : > { %v4586_v57 = vpop.f32.mrf.mxu0 }
 0x5db   : > { %v4648_v26 = vpop.f32.mrf.mxu1  ;;  %v4587_v0 = vadd.f32 %v4586_v57, %v4522_v19 }
 0x5dc   : > { %v4649_v51 = vadd.f32 %v4648_v26, %v4584_v41 }
 0x5de   : > { %v4682_v9 = vmax.f32 %v4649_v51, 0.0 }
 0x5df   : > { %v4530_v44 = vpop.f32.mrf.mxu3 }
 0x5e0   : > { %4744 = vperm.xlu2 %5567, %v4682_v9   ;;  %v4468_v7 = vpop.f32.mrf.mxu2  ;;  %v4531_v61 = vadd.f32 %v4530_v44, %v4466_v22  ;;  %v4695_v44 = vld [vmem:[%s8113_s5 + $0x20] sm:$0xff]  ;;  %v4696_v22 = vld [vmem:[%s8113_s5 + $0x28] sm:$0xff] }
 0x5e1   : > { %v4469_v48 = vadd.f32 %v4468_v7, %v7820_v56 }
 0x5e2   : > { %v4589_v60 = vpop.f32.mrf.mxu0 }
 0x5e3   : > { %v4651_v59 = vpop.f32.mrf.mxu1  ;;  %v4590_v24 = vadd.f32 %v4589_v60, %v4525_v49 }
 0x5e4   : > { %v4652_v55 = vadd.f32 %v4651_v59, %v4587_v0  ;;  %v4691_v59 = vld [vmem:[%s8113_s5] sm:$0xff] }
 0x5e6   : > { %v4683_v45 = vmax.f32 %v4652_v55, 0.0  ;;  %v4692_v55 = vld [vmem:[%s8113_s5 + $0x8] sm:$0xff] }
 0x5e7   : > { %v4533_v20 = vpop.f32.mrf.mxu3 }
 0x5e8   : > { %4749 = vperm.xlu1 %5566, %v4683_v45   ;;  %v4471_v46 = vpop.f32.mrf.mxu2  ;;  %v4534_v40 = vadd.f32 %v4533_v20, %v4469_v48  ;;  %v4698_v48 = vld [vmem:[%s8113_s5 + $0x38] sm:$0xff] }
 0x5e9   : > { %v4472_v63 = vadd.f32 %v4471_v46, %v7834_v34  ;;  %v4699_v46 = vld [vmem:[%s8113_s5 + $0x40] sm:$0xff] }
 0x5ea   : > { %v4592_v13 = vpop.f32.mrf.mxu0 }
 0x5eb   : > { %v4654_v5 = vpop.f32.mrf.mxu1  ;;  %v4593_v62 = vadd.f32 %v4592_v13, %v4528_v16 }
 0x5ec   : > { %v4655_v12 = vadd.f32 %v4654_v5, %v4590_v24 }
 0x5ee   : > { %v4684_v37 = vmax.f32 %v4655_v12, 0.0  ;;  %v4694_v12 = vld [vmem:[%s8113_s5 + $0x18] sm:$0xff] }
 0x5ef   : > { %v4536_v35 = vpop.f32.mrf.mxu3 }
 0x5f0   : > { %4754 = vperm.xlu0 %5568, %v4684_v37   ;;  %v4537_v43 = vadd.f32 %v4536_v35, %v4472_v63  ;;  %v4474_v8 = vpop.f32.mrf.mxu2 }
 0x5f1   : > { %v4475_v18 = vadd.f32 %v4474_v8, %v7848_v52 }
 0x5f2   : > { %v4595_v39 = vpop.f32.mrf.mxu0 }
 0x5f3   : > { %v4657_v53 = vpop.f32.mrf.mxu1  ;;  %v4596_v17 = vadd.f32 %v4595_v39, %v4531_v61 }
 0x5f4   : > { %v4658_v15 = vadd.f32 %v4657_v53, %v4593_v62 }
 0x5f6   : > { %v4685_v47 = vmax.f32 %v4658_v15, 0.0 }
 0x5f7   : > { %v4539_v11 = vpop.f32.mrf.mxu3 }
 0x5f8   : > { %4759 = vperm.xlu2 %5567, %v4685_v47   ;;  %v4540_v23 = vadd.f32 %v4539_v11, %v4475_v18  ;;  %v4477_v29 = vpop.f32.mrf.mxu2  ;;  %v4697_v47 = vld [vmem:[%s8113_s5 + $0x30] sm:$0xff]  ;;  %v4702_v18 = vld [vmem:[%s8113_s5 + $0x58] sm:$0xff] }
 0x5f9   : > { %v4478_v34 = vadd.f32 %v4477_v29, %v7862_v21  ;;  %v4693_v21 = vld [vmem:[%s8113_s5 + $0x10] sm:$0xff]  ;;  %v4703_v29 = vld [vmem:[%s8113_s5 + $0x60] sm:$0xff] }
 0x5fa   : > { %v4598_v27 = vpop.f32.mrf.mxu0 }
 0x5fb   : > { %v4660_v33 = vpop.f32.mrf.mxu1  ;;  %v4599_v10 = vadd.f32 %v4598_v27, %v4534_v40 }
 0x5fc   : > { %v4661_v42 = vadd.f32 %v4660_v33, %v4596_v17 }
 0x5fe   : > { %v4686_v58 = vmax.f32 %v4661_v42, 0.0 }
 0x5ff   : > { %v4542_v26 = vpop.f32.mrf.mxu3 }
 0x600   : > { %4764 = vperm.xlu1 %5566, %v4686_v58   ;;  %v4543_v9 = vadd.f32 %v4542_v26, %v4478_v34 }
 0x602   : > { %v4601_v1 = vpop.f32.mrf.mxu0 }
 0x603   : > { %v4663_v28 = vpop.f32.mrf.mxu1  ;;  %v4602_v31 = vadd.f32 %v4601_v1, %v4537_v43 }
 0x604   : > { %v4664_v2 = vadd.f32 %v4663_v28, %v4599_v10  ;;  %v4700_v28 = vld [vmem:[%s8113_s5 + $0x48] sm:$0xff] }
 0x606   : > { %v4687_v25 = vmax.f32 %v4664_v2, 0.0 }
 0x608   : > { %4769 = vperm.xlu0 %5568, %v4687_v25  }
 0x60a   : > { %v4604_v56 = vpop.f32.mrf.mxu0  ;;  %v4715_v52 = vpop.permute.xlu2 %4714 }
 0x60b   : > { %v4666_v30 = vpop.f32.mrf.mxu1  ;;  %v4605_v14 = vadd.f32 %v4604_v56, %v4540_v23  ;;  %v4788_v13 = vmul.f32 %v4715_v52, %v4692_v55 }
 0x60c   : > { %v4667_v36 = vadd.f32 %v4666_v30, %v4602_v31  ;;  %v4701_v30 = vld [vmem:[%s8113_s5 + $0x50] sm:$0xff] }
 0x60d   : > { %v4805_v32 = vsel %vm4803_vm1, %v4788_v13, 0.0 }
 0x60e   : > { %v4688_v3 = vmax.f32 %v4667_v36, 0.0 }
 0x610   : > { %4774 = vperm.xlu2 %5567, %v4688_v3  }
 0x612   : > { %v4607_v38 = vpop.f32.mrf.mxu0 }
 0x613   : > { %v4669_v41 = vpop.f32.mrf.mxu1  ;;  %v4608_v19 = vadd.f32 %v4607_v38, %v4543_v9 }
 0x614   : > { %v4670_v57 = vadd.f32 %v4669_v41, %v4605_v14 }
 0x616   : > { %v4689_v51 = vmax.f32 %v4670_v57, 0.0 }
 0x618   : > { %4779 = vperm.xlu1 %5566, %v4689_v51  }
 0x61a   : > { %v4710_v50 = vpop.permute.xlu1 %4709  ;;  %v4725_v49 = vpop.permute.xlu2 %4724 }
 0x61b   : > { %v4672_v4 = vpop.f32.mrf.mxu1  ;;  %v4787_v45 = vmul.f32 %v4710_v50, %v4691_v59  ;;  %v4790_v62 = vmul.f32 %v4725_v49, %v4694_v12 }
 0x61c   : > { %v4673_v0 = vadd.f32 %v4672_v4, %v4608_v19  ;;  %v4704_v19 = vld [vmem:[%s8113_s5 + $0x68] sm:$0xff] }
 0x61d   : > { %v4804_v5 = vsel %vm4803_vm1, %v4787_v45, 0.0  ;;  %v4809_v20 = vsel %vm4803_vm1, %v4790_v62, 0.0  ;;  %v4706_v45 = vld [vmem:[%s8113_s5 + $0x78] sm:$0xff] }
 0x61e   : > { %v4690_v60 = vmax.f32 %v4673_v0, 0.0  ;;  %v4806_v16 = vadd.f32 %v4805_v32, %v4804_v5 }
 0x620   : > { %4784 = vperm.xlu0 %5568, %v4690_v60   ;;  %v4705_v60 = vld [vmem:[%s8113_s5 + $0x70] sm:$0xff] }
 0x62a   : > { %v4720_v6 = vpop.permute.xlu0 %4719  ;;  %v4735_v15 = vpop.permute.xlu2 %4734 }
 0x62b   : > { %v4789_v54 = vmul.f32 %v4720_v6, %v4693_v21  ;;  %v4792_v27 = vmul.f32 %v4735_v15, %v4696_v22  ;;  %v4841_v15 = vld [vmem:[%s8114_s6] sm:$0x1] }
 0x62d   : > { %v4807_v37 = vsel %vm4803_vm1, %v4789_v54, 0.0  ;;  %v4813_v35 = vsel %vm4803_vm1, %v4792_v27, 0.0  ;;  %v4850_v27 = vld [vmem:[#allocation3] sm:$0x1] }
 0x62e   : > { %v4808_v53 = vadd.f32 %v4807_v37, %v4806_v16 }
 0x630   : > { %v4810_v17 = vadd.f32 %v4809_v20, %v4808_v53 }
 0x63a   : > { %v4730_v24 = vpop.permute.xlu1 %4729  ;;  %v4745_v58 = vpop.permute.xlu2 %4744 }
 0x63b   : > { %v4791_v39 = vmul.f32 %v4730_v24, %v4695_v44  ;;  %v4794_v63 = vmul.f32 %v4745_v58, %v4698_v48 }
 0x63d   : > { %v4811_v61 = vsel %vm4803_vm1, %v4791_v39, 0.0  ;;  %v4817_v31 = vsel %vm4803_vm1, %v4794_v63, 0.0 }
 0x63e   : > { %v4812_v42 = vadd.f32 %v4811_v61, %v4810_v17 }
 0x640   : > { %v4814_v1 = vadd.f32 %v4813_v35, %v4812_v42 }
 0x64a   : > { %v4740_v7 = vpop.permute.xlu1 %4739 }
 0x64b   : > { %v4793_v33 = vmul.f32 %v4740_v7, %v4697_v47  ;;  %v4844_v47 = vld [vmem:[%s8115_s7] sm:$0x1] }
 0x64d   : > { %v4815_v10 = vsel %vm4803_vm1, %v4793_v33, 0.0 }
 0x64e   : > { %v4816_v43 = vadd.f32 %v4815_v10, %v4814_v1 }
 0x650   : > { %v4818_v56 = vadd.f32 %v4817_v31, %v4816_v43 }
 0x652   : > { %v4760_v36 = vpop.permute.xlu2 %4759 }
 0x653   : > { %v4797_v57 = vmul.f32 %v4760_v36, %v4701_v30 }
 0x655   : > { %v4823_v38 = vsel %vm4803_vm1, %v4797_v57, 0.0 }
 0x65a   : > { %v4750_v40 = vpop.permute.xlu1 %4749 }
 0x65b   : > { %v4795_v25 = vmul.f32 %v4750_v40, %v4699_v46 }
 0x65d   : > { %v4819_v11 = vsel %vm4803_vm1, %v4795_v25, 0.0 }
 0x65e   : > { %v4820_v14 = vadd.f32 %v4819_v11, %v4818_v56 }
 0x662   : > { %v4755_v2 = vpop.permute.xlu0 %4754 }
 0x663   : > { %v4796_v8 = vmul.f32 %v4755_v2, %v4700_v28 }
 0x665   : > { %v4821_v23 = vsel %vm4803_vm1, %v4796_v8, 0.0 }
 0x666   : > { %v4822_v34 = vadd.f32 %v4821_v23, %v4820_v14 }
 0x668   : > { %v4824_v0 = vadd.f32 %v4823_v38, %v4822_v34 }
 0x66a   : > { %v4775_v4 = vpop.permute.xlu2 %4774 }
 0x66b   : > { %v4800_v55 = vmul.f32 %v4775_v4, %v4704_v19 }
 0x66d   : > { %v4829_v49 = vsel %vm4803_vm1, %v4800_v55, 0.0 }
 0x672   : > { %v4765_v3 = vpop.permute.xlu1 %4764 }
 0x673   : > { %v4798_v26 = vmul.f32 %v4765_v3, %v4702_v18 }
 0x675   : > { %v4825_v9 = vsel %vm4803_vm1, %v4798_v26, 0.0 }
 0x676   : > { %v4826_v59 = vadd.f32 %v4825_v9, %v4824_v0 }
 0x67a   : > { %v4770_v41 = vpop.permute.xlu0 %4769 }
 0x67b   : > { %v4799_v51 = vmul.f32 %v4770_v41, %v4703_v29 }
 0x67d   : > { %v4827_v50 = vsel %vm4803_vm1, %v4799_v51, 0.0 }
 0x67e   : > { %v4828_v6 = vadd.f32 %v4827_v50, %v4826_v59 }
 0x680   : > { %v4830_v13 = vadd.f32 %v4829_v49, %v4828_v6 }
 0x68a   : > { %v4780_v52 = vpop.permute.xlu1 %4779 }
 0x68b   : > { %v4801_v21 = vmul.f32 %v4780_v52, %v4705_v60 }
 0x68d   : > { %v4831_v24 = vsel %vm4803_vm1, %v4801_v21, 0.0 }
 0x68e   : > { %v4832_v12 = vadd.f32 %v4831_v24, %v4830_v13 }
 0x692   : > { %v4785_v54 = vpop.permute.xlu0 %4784 }
 0x693   : > { %v4802_v5 = vmul.f32 %v4785_v54, %v4706_v45 }
 0x695   : > { %v4833_v44 = vsel %vm4803_vm1, %v4802_v5, 0.0 }
 0x696   : > { %v4834_v32 = vadd.f32 %v4833_v44, %v4832_v12 }
 0x698   : > { %v4835_v37 = vrot.slane %v4834_v32, 4 }
 0x69a   : > { %v4836_v16 = vadd.f32 %v4835_v37, %v4834_v32 }
 0x69c   : > { %v4837_v62 = vrot.slane %v4836_v16, 2 }
 0x69e   : > { %v4838_v39 = vadd.f32 %v4837_v62, %v4836_v16 }
 0x6a0   : > { %v4839_v53 = vrot.slane %v4838_v39, 1 }
 0x6a2   : > { %v4840_v7 = vadd.f32 %v4839_v53, %v4838_v39 }
 0x6a4   : > { %v4842_v22 = vadd.f32 %v4841_v15, %v4840_v7 }
 0x6a6   : > { %v4843_v20 = vmax.f32 %v4842_v22, 0.0 }
 0x6a8   : > { %v4845_v61 = vmul.f32 %v4844_v47, %v4843_v20 }
 0x6aa   : > { %v4847_v17 = vsel %vm4846_vm2, %v4845_v61, 0.0 }
 0x6ab   : > { %4848 = vadd.xlane.f32.xlu2 %v4847_v17 }
 0x71e   : > { %v4849_v33 = vpop.xlane.xlu2 %4848 }
 0x71f   : > { %v4851_v42 = vadd.f32 %v4850_v27, %v4849_v33 }
 0x721   : > { %4854 = vperm.xlu1 %5566, %v4851_v42  }
 0x793   : > { %v4855_v48 = vpop.permute.xlu1 %4854 }
 0x794   : > { %4857 = vst [vmem:[%s5845_s10] sm:$0x1] %v4855_v48 }
 0x795 PF: > { %s4867_s24 = scalar_lea.hbm %s8117_s9, %s5667_s17  ;;  %s4869_s26 = sshll.u32 %s5845_s10, 4  ;;  %s4870_s26 = int_to_ptr.vmem [resolvable:$true] %s4869_s26 }
 0x796   : > { %s4871_s14 = sshll.u32 %s4867_s24, 4  ;;  %s8212_s25 = sand.u32 1, %s5647_s12   ;;  %s4872_s14 = int_to_ptr.hbm [resolvable:$true] %s4871_s14 }
 0x797   : > { %s4859_s29 = scalar_lea.sflag [#allocation6], %s8212_s25  ;;  %s5583_s30 = sshra.s32 %s4872_s14, 4  ;;  %s5584_s30 = int_to_ptr.hbm [resolvable:$true] %s5583_s30 }
 0x798   : > { %s5585_s16 = scalar_lea.hbm %s5584_s30, 1  ;;  %s5589_s11 = scalar_lea.hbm %s8117_s9, 2 }
 0x799   : > { %p5586_p5 = scmp.ne.s32.totalorder %s5584_s30, %s5585_s16  ;;  %p5590_p9 = scmp.lt.s32.totalorder %s5584_s30, %s8117_s9 }
 0x79a   : > { %p5591_p10 = scmp.lt.s32.totalorder %s5589_s11, %s5585_s16 }
 0x79b   : > { %p5587_p6 = pnand %p5586_p5, %p5809_p7 }
 0x79c   : > { %p5592_p11 = por %p5591_p10, %p5590_p9 }
 0x79d   : > { %p5588_p8 = pneg %p5587_p6 }
 0x79f   : > { %p5593_p13 = pnand %p5592_p11, %p5588_p8 }
 0x7a1   : > { %5596 = shalt.err (!%p5593_p13)
}
 0x7a2   : > { %5473 = dma.vmem_to_hbm [thread:$0]  (%p5809_p7), %s4870_s26, 16, %s4872_s14, %s4859_s29  }
 0x7a3 PF: > { %s8213_s17 = sld [smem:[#allocation8_spill]]  ;;  %p5479_p0 = scmp.ge.s32.totalorder %s5679_s19, 2 }
 0x7a5   : > { %p5476_p1 = pnand %p5479_p0, %p5817_p12 }
 0x7a7   : > { %p5477_p2 = pneg %p5476_p1 }
 0x7a9   : > { %s4883_s24 = sand.u32 1, %s8213_s17  }
 0x7aa   : > { %s4884_s25 = scalar_lea.sflag [#allocation6], %s4883_s24 }
 0x7ab   : > { %5638 = dma.done.wait (%p5477_p2), %s4884_s25, 16  }
 0x7ac   : > { %5640 = vsyncadd (%p5477_p2), %s4884_s25, 4294967280  ;;  %s24_s19 = sadd.s32 1, %s5679_s19   ;;  %s8215_s0 = sld [smem:[#allocation9_spill]] }
 0x7ad   : > { %p21_p3 = scmp.ge.s32.totalorder %s24_s19, 6   ;;  %s8216_s28 = sld [smem:[#allocation10_spill]] }
 0x7ae   : > { %s8217_s11 = smov %s5647_s12  ;;  %s8218_s12 = smov %s5651_s13 }
 0x7af   : > { %s8219_s13 = smov %s5822_s22  ;;  %s8220_s14 = smov %s5659_s15 }
 0x7b0   : > { %s8221_s15 = smov %s5825_s20  ;;  %s8222_s16 = smov %s5671_s18 }
 0x7b1   : > { %s8223_s17 = smov %s5675_s8  ;;  %23 = sbr.rel (!%p21_p3) target bundleno = 9 (0x9), region = 142 }
 0x7b2   : > { %s8224_s18 = smov %s8215_s0 }
 0x7b3   : > { %s8225_s8 = smov %s8216_s28 }
 0x7b6   :  { %4889 = vsyncpa [#allocation6], 1 }
 0x7b7   :  { %4891 = vsyncpa [#allocation6 + $0x1], 1 }

</bundles_post_ra>
